<compile_context>
chip_gen: v5e
topology: v5e:2x2
jax: 0.10.0
libtpu: 0.0.40
codegen_flags: <defaults>
</compile_context>

<pallas_src>
import functools

import jax
import jax.numpy as jnp
from jax.experimental import pallas as pl
from jax.experimental.pallas import tpu as pltpu


def _round_up(n, m):
    return ((n + m - 1) // m) * m


def _choose_time_chunk(seq_len, max_chunk=32):
    """Largest divisor of seq_len <= max_chunk (caps the gx scratch size)."""
    if seq_len <= max_chunk:
        return seq_len
    best = 1
    for d in range(max_chunk, 0, -1):
        if seq_len % d == 0:
            best = d
            break
    # A tiny chunk would kill the hoisting benefit; fall back to full sequence.
    return best if best >= 8 else seq_len


def _aligned(idx, align):
    """pl.multiple_of hint for dynamic indices; pass-through for static ints."""
    if isinstance(idx, int):
        return idx
    return pl.multiple_of(idx, align)


def _vmem_bytes(shape, dtype):
    """Approximate tiled VMEM footprint of one buffer (lane pad 128, sublane 8)."""
    itemsize = jnp.dtype(dtype).itemsize
    lanes = _round_up(shape[-1], 128)
    rows = 1
    for d in shape[:-1]:
        rows *= d
    packing = max(1, 4 // itemsize)
    rows = _round_up(max(rows, 1), 8 * packing)
    return rows * lanes * itemsize


def _encoder_kernel(x_ref, w_ih0_ref, w_hh0_ref, b0_ref,
                    w_ih_r_ref, w_hh_r_ref, b_r_ref,
                    out_ref, h_out_ref, c_out_ref,
                    gx_scr, act_a, act_b,
                    *, seq_len, batch_p, hidden_p, num_layers,
                    t_chunk, inner_unroll):
    """Whole multi-layer LSTM encoder in one invocation (no grid).

    x_ref      : (S*Bp, D_in)   flattened time-major rows, matmul dtype
    w_ih0_ref  : (D_in, 4*Hp)   layer-0 input weights (pre-transposed, padded)
    w_hh0_ref  : (Hp, 4*Hp)     layer-0 recurrent weights
    b0_ref     : (1, 4*Hp)      layer-0 fused bias (b_ih + b_hh), f32
    w_ih_r_ref : (max(L-1,1), Hp, 4*Hp)  layers 1..L-1 input weights
    w_hh_r_ref : (max(L-1,1), Hp, 4*Hp)  layers 1..L-1 recurrent weights
    b_r_ref    : (max(L-1,1), 1, 4*Hp)   layers 1..L-1 fused biases
    out_ref    : (S*Bp, Hp)     per-timestep hidden states of the LAST layer
    h_out_ref  : (L, Bp, Hp)    final hidden state per layer
    c_out_ref  : (L, Bp, Hp)    final cell state per layer
    gx_scr     : (t_chunk*Bp, 4*Hp) f32  chunked hoisted input projection
    act_a/b    : (S*Bp, Hp) f32 ping-pong inter-layer activation scratch
    """
    S, Bp, Hp = seq_len, batch_p, hidden_p
    n_chunks = S // t_chunk
    rows_per_chunk = t_chunk * Bp
    mm_dtype = x_ref.dtype

    def run_layer(in_ref, w_ih, w_hh, b, dst_ref):
        def chunk_body(ci, carry):
            h0, c0 = carry
            row0 = ci * rows_per_chunk
            # (1) Hoisted input projection for this time chunk: ONE MXU matmul
            #     (t_chunk*Bp, d_in) @ (d_in, 4*Hp) with f32 accumulation.
            x_chunk = in_ref[pl.ds(_aligned(row0, 8), rows_per_chunk), :]
            x_chunk = x_chunk.astype(mm_dtype)
            gx_scr[...] = (
                jnp.dot(x_chunk, w_ih, preferred_element_type=jnp.float32) + b)

            # (2) Serial recurrence: only the (Bp,Hp)@(Hp,4Hp) matmul and the
            #     gate nonlinearities remain on the per-step critical path.
            def step(ti, carry2):
                h, c = carry2
                r = ti * Bp
                gates = gx_scr[pl.ds(_aligned(r, Bp), Bp), :] + jnp.dot(
                    h.astype(mm_dtype), w_hh,
                    preferred_element_type=jnp.float32)
                # Hp is a multiple of 128 -> lane-aligned gate blocks.
                i_g = jax.nn.sigmoid(gates[:, 0 * Hp:1 * Hp])
                f_g = jax.nn.sigmoid(gates[:, 1 * Hp:2 * Hp])
                g_g = jnp.tanh(gates[:, 2 * Hp:3 * Hp])
                o_g = jax.nn.sigmoid(gates[:, 3 * Hp:4 * Hp])
                c_new = f_g * c + i_g * g_g
                h_new = o_g * jnp.tanh(c_new)
                dst_ref[pl.ds(_aligned(row0 + r, Bp), Bp), :] = (
                    h_new.astype(dst_ref.dtype))
                return (h_new, c_new)

            return jax.lax.fori_loop(0, t_chunk, step, (h0, c0),
                                     unroll=inner_unroll)

        zeros = jnp.zeros((Bp, Hp), jnp.float32)
        if n_chunks == 1:
            return chunk_body(0, (zeros, zeros))
        return jax.lax.fori_loop(0, n_chunks, chunk_body, (zeros, zeros))

    # Layer 0: input_dim -> hidden_dim.  Writes into the ping buffer (or the
    # output buffer directly if there is only one layer).
    dst0 = out_ref if num_layers == 1 else act_a
    h_n, c_n = run_layer(x_ref, w_ih0_ref[...], w_hh0_ref[...], b0_ref[...],
                         dst0)
    h_out_ref[0] = h_n
    c_out_ref[0] = c_n

    # Layers 1..L-1: read the previous layer's activations per chunk from one
    # ping-pong scratch and write into the other (no read/write aliasing).
    prev_ref, spare_ref = dst0, act_b
    for l in range(1, num_layers):
        dst = out_ref if l == num_layers - 1 else spare_ref
        h_n, c_n = run_layer(prev_ref, w_ih_r_ref[l - 1], w_hh_r_ref[l - 1],
                             b_r_ref[l - 1], dst)
        h_out_ref[l] = h_n
        c_out_ref[l] = c_n
        prev_ref, spare_ref = dst, prev_ref


def _pad_gate_cols(w, H, Hp):
    """(..., 4H) -> (..., 4Hp): zero-pad each gate's column block to Hp lanes."""
    lead = w.shape[:-1]
    w4 = w.reshape(lead + (4, H))
    pad = [(0, 0)] * len(lead) + [(0, 0), (0, Hp - H)]
    return jnp.pad(w4, pad).reshape(lead + (4 * Hp,))


def prepare_encoder_params(params, hidden_dim, mm_dtype=jnp.bfloat16):
    """One-time weight padding / stacking / casting (out of the per-call path).

    Gate layout stays PyTorch's [i|f|g|o]; each gate block is zero-padded
    H -> Hp (multiple of 128) and recurrent rows H -> Hp, so padded hidden
    columns stay exactly zero through the recurrence.
    """
    L = len(params)
    H = hidden_dim
    Hp = _round_up(H, 128)

    def pad_layer(w_ih, w_hh, b, pad_in_rows):
        if pad_in_rows:
            w_ih = jnp.pad(w_ih, ((0, Hp - H), (0, 0)))
        w_ih = _pad_gate_cols(w_ih, H, Hp).astype(mm_dtype)
        w_hh = _pad_gate_cols(jnp.pad(w_hh, ((0, Hp - H), (0, 0))),
                              H, Hp).astype(mm_dtype)
        b = _pad_gate_cols(b, H, Hp).astype(jnp.float32)
        return w_ih, w_hh, b

    w_ih0, w_hh0, b0 = pad_layer(*params[0], pad_in_rows=False)
    if L > 1:
        rest = [pad_layer(*p, pad_in_rows=True) for p in params[1:]]
        w_ih_r = jnp.stack([r[0] for r in rest], 0)
        w_hh_r = jnp.stack([r[1] for r in rest], 0)
        b_r = jnp.stack([r[2] for r in rest], 0)
    else:  # dummy (unused) stacks so the kernel signature is fixed
        w_ih_r = jnp.zeros((1, Hp, 4 * Hp), mm_dtype)
        w_hh_r = jnp.zeros((1, Hp, 4 * Hp), mm_dtype)
        b_r = jnp.zeros((1, 1, 4 * Hp), jnp.float32)

    return dict(w_ih0=w_ih0, w_hh0=w_hh0, b0=b0,
                w_ih_r=w_ih_r, w_hh_r=w_hh_r, b_r=b_r,
                hidden_dim=H, hidden_p=Hp, num_layers=L, mm_dtype=mm_dtype)


def encoder_forward(x, prepared):
    """Matches Encoder.forward: x (B, S, D_in) batch_first.
    Returns (outputs (B,S,H), hidden (L,B,H), cell (L,B,H))."""
    B, S, D = x.shape
    H = prepared['hidden_dim']
    Hp = prepared['hidden_p']
    L = prepared['num_layers']
    mm_dtype = prepared['mm_dtype']
    Bp = _round_up(B, 8)

    # (B,S,D) -> time-major, pad batch to a sublane multiple so every per-step
    # (Bp, feat) access in the kernel hits an aligned (8,128) tile.
    x_tm = jnp.transpose(x, (1, 0, 2)).astype(jnp.float32)
    x_pad = jnp.pad(x_tm, ((0, 0), (0, Bp - B), (0, 0)))
    x_flat = x_pad.reshape(S * Bp, D).astype(mm_dtype)

    t_chunk = _choose_time_chunk(S)
    assert S % t_chunk == 0
    inner_unroll = min(t_chunk, 8)

    act_a_shape = (S * Bp, Hp) if L >= 2 else (8, 128)
    act_b_shape = (S * Bp, Hp) if L >= 3 else (8, 128)
    gx_shape = (t_chunk * Bp, 4 * Hp)
    scratch_shapes = [
        pltpu.VMEM(gx_shape, jnp.float32),       # chunked hoisted projection
        pltpu.VMEM(act_a_shape, jnp.float32),    # inter-layer act (ping)
        pltpu.VMEM(act_b_shape, jnp.float32),    # inter-layer act (pong)
    ]

    out_shapes = (
        jax.ShapeDtypeStruct((S * Bp, Hp), jnp.float32),   # last-layer outputs
        jax.ShapeDtypeStruct((L, Bp, Hp), jnp.float32),    # final hidden/layer
        jax.ShapeDtypeStruct((L, Bp, Hp), jnp.float32),    # final cell/layer
    )

    operands = (x_flat, prepared['w_ih0'], prepared['w_hh0'], prepared['b0'],
                prepared['w_ih_r'], prepared['w_hh_r'], prepared['b_r'])

    # VMEM limit sized to the actual footprint (+50% margin, +4 MiB slack).
    footprint = sum(_vmem_bytes(a.shape, a.dtype) for a in operands)
    footprint += sum(_vmem_bytes(s.shape, s.dtype) for s in out_shapes)
    footprint += _vmem_bytes(gx_shape, jnp.float32)
    footprint += _vmem_bytes(act_a_shape, jnp.float32)
    footprint += _vmem_bytes(act_b_shape, jnp.float32)
    vmem_limit = int(min(1.5 * footprint + (4 << 20), 128 << 20))

    kernel = functools.partial(
        _encoder_kernel, seq_len=S, batch_p=Bp, hidden_p=Hp, num_layers=L,
        t_chunk=t_chunk, inner_unroll=inner_unroll)

    vmem = pltpu.MemorySpace.VMEM
    out_flat, hidden, cell = pl.pallas_call(
        kernel,
        out_shape=out_shapes,
        in_specs=[pl.BlockSpec(memory_space=vmem)] * len(operands),
        out_specs=tuple(pl.BlockSpec(memory_space=vmem) for _ in range(3)),
        scratch_shapes=scratch_shapes,
        compiler_params=pltpu.CompilerParams(vmem_limit_bytes=vmem_limit),
    )(*operands)

    outputs = jnp.transpose(out_flat.reshape(S, Bp, Hp)[:, :B, :H], (1, 0, 2))
    return outputs, hidden[:, :B, :H], cell[:, :B, :H]


def init_encoder_params(key, input_dim, hidden_dim, num_layers):
    """Deterministic PyTorch-style init: U(-1/sqrt(H), 1/sqrt(H)).
    Weights stored transposed as (in_features, 4H); b = b_ih + b_hh."""
    params = []
    bound = 1.0 / (hidden_dim ** 0.5)
    for layer in range(num_layers):
        d_in = input_dim if layer == 0 else hidden_dim
        key, k1, k2, k3, k4 = jax.random.split(key, 5)
        w_ih = jax.random.uniform(k1, (d_in, 4 * hidden_dim), jnp.float32, -bound, bound)
        w_hh = jax.random.uniform(k2, (hidden_dim, 4 * hidden_dim), jnp.float32, -bound, bound)
        b_ih = jax.random.uniform(k3, (4 * hidden_dim,), jnp.float32, -bound, bound)
        b_hh = jax.random.uniform(k4, (4 * hidden_dim,), jnp.float32, -bound, bound)
        params.append((w_ih, w_hh, (b_ih + b_hh).reshape(1, 4 * hidden_dim)))
    return params


def _reference_forward(x, params, hidden_dim):
    """Pure-JAX reference (lax.scan) for correctness check."""
    B = x.shape[0]
    x_tm = jnp.transpose(x, (1, 0, 2)).astype(jnp.float32)
    h_list, c_list = [], []
    layer_in = x_tm
    H = hidden_dim
    for (w_ih, w_hh, b) in params:
        def step(carry, x_t):
            h, c = carry
            gates = (jnp.dot(x_t, w_ih, precision=jax.lax.Precision.HIGHEST)
                     + jnp.dot(h, w_hh, precision=jax.lax.Precision.HIGHEST)
                     + b)
            i = jax.nn.sigmoid(gates[:, 0 * H:1 * H])
            f = jax.nn.sigmoid(gates[:, 1 * H:2 * H])
            g = jnp.tanh(gates[:, 2 * H:3 * H])
            o = jax.nn.sigmoid(gates[:, 3 * H:4 * H])
            c_new = f * c + i * g
            h_new = o * jnp.tanh(c_new)
            return (h_new, c_new), h_new
        init = (jnp.zeros((B, H), jnp.float32), jnp.zeros((B, H), jnp.float32))
        (h_n, c_n), out_tm = jax.lax.scan(step, init, layer_in)
        h_list.append(h_n)
        c_list.append(c_n)
        layer_in = out_tm
    return (jnp.transpose(layer_in, (1, 0, 2)),
            jnp.stack(h_list, 0), jnp.stack(c_list, 0))


if __name__ == "__main__":
    batch, seq, input_dim, hidden_dim, num_layers = 2, 8, 16, 32, 2

    key = jax.random.PRNGKey(0)
    k_x, k_p = jax.random.split(key)
    x = jax.random.normal(k_x, (batch, seq, input_dim), jnp.float32)
    params = init_encoder_params(k_p, input_dim, hidden_dim, num_layers)
    ref_out, ref_h, ref_c = _reference_forward(x, params, hidden_dim)

    # --- f32 MXU path: tight check against the f32 HIGHEST-precision ref. ---
    prep_f32 = prepare_encoder_params(params, hidden_dim, mm_dtype=jnp.float32)
    outputs, hidden, cell = encoder_forward(x, prep_f32)
    jax.block_until_ready((outputs, hidden, cell))
    assert outputs.shape == (batch, seq, hidden_dim)
    assert hidden.shape == (num_layers, batch, hidden_dim)
    assert cell.shape == (num_layers, batch, hidden_dim)
    assert jnp.allclose(outputs, ref_out, atol=1e-5, rtol=1e-5)
    assert jnp.allclose(hidden, ref_h, atol=1e-5, rtol=1e-5)
    assert jnp.allclose(cell, ref_c, atol=1e-5, rtol=1e-5)
    # Last-layer final hidden must equal last-timestep output.
    assert jnp.allclose(hidden[-1], outputs[:, -1, :], atol=1e-6)

    # --- bf16 MXU path (f32 accumulation & gate math): the perf path on
    #     v6e/v7x.  Tolerances loosened for bf16 matmul inputs. ---
    prep_bf16 = prepare_encoder_params(params, hidden_dim, mm_dtype=jnp.bfloat16)
    outputs_b, hidden_b, cell_b = encoder_forward(x, prep_bf16)
    jax.block_until_ready((outputs_b, hidden_b, cell_b))
    assert jnp.allclose(outputs_b, ref_out, atol=5e-2, rtol=5e-2)
    assert jnp.allclose(hidden_b, ref_h, atol=5e-2, rtol=5e-2)
    assert jnp.allclose(cell_b, ref_c, atol=5e-2, rtol=5e-2)

    # --- Longer sequence + 3 layers: exercises the chunked-gx loop and the
    #     ping-pong inter-layer activation scratch (f32 for a tight check). ---
    seq2, layers2 = 64, 3
    x2 = jax.random.normal(jax.random.PRNGKey(1), (batch, seq2, input_dim),
                           jnp.float32)
    params2 = init_encoder_params(jax.random.PRNGKey(2), input_dim,
                                  hidden_dim, layers2)
    prep2 = prepare_encoder_params(params2, hidden_dim, mm_dtype=jnp.float32)
    out2, h2, c2 = encoder_forward(x2, prep2)
    jax.block_until_ready((out2, h2, c2))
    ref2_out, ref2_h, ref2_c = _reference_forward(x2, params2, hidden_dim)
    assert jnp.allclose(out2, ref2_out, atol=1e-4, rtol=1e-4)
    assert jnp.allclose(h2, ref2_h, atol=1e-4, rtol=1e-4)
    assert jnp.allclose(c2, ref2_c, atol=1e-4, rtol=1e-4)

    print("KERNEL_OK")
</pallas_src>

<mosaic_0001>
module attributes {stable_mosaic.version = 11 : i64} {
  func.func @_encoder_kernel(%arg0: memref<64x16xf32, #tpu.memory_space<vmem>>, %arg1: memref<16x512xf32, #tpu.memory_space<vmem>>, %arg2: memref<128x512xf32, #tpu.memory_space<vmem>>, %arg3: memref<1x512xf32, #tpu.memory_space<vmem>>, %arg4: memref<1x128x512xf32, #tpu.memory_space<vmem>>, %arg5: memref<1x128x512xf32, #tpu.memory_space<vmem>>, %arg6: memref<1x1x512xf32, #tpu.memory_space<vmem>>, %arg7: memref<64x128xf32, #tpu.memory_space<vmem>>, %arg8: memref<2x8x128xf32, #tpu.memory_space<vmem>>, %arg9: memref<2x8x128xf32, #tpu.memory_space<vmem>>, %arg10: memref<64x512xf32, #tpu.memory_space<vmem>>, %arg11: memref<64x128xf32, #tpu.memory_space<vmem>>, %arg12: memref<8x128xf32, #tpu.memory_space<vmem>>) attributes {dimension_semantics = [], scalar_prefetch = 0 : i64, scratch_operands = 3 : i64, tpu.core_type = #tpu.core_type<tc>} {
    %c0 = arith.constant 0 : index
    %c0_0 = arith.constant 0 : index
    %0 = vector.load %arg1[%c0, %c0_0] : memref<16x512xf32, #tpu.memory_space<vmem>>, vector<16x512xf32>
    %c0_1 = arith.constant 0 : index
    %c0_2 = arith.constant 0 : index
    %1 = vector.load %arg2[%c0_1, %c0_2] : memref<128x512xf32, #tpu.memory_space<vmem>>, vector<128x512xf32>
    %c0_3 = arith.constant 0 : index
    %c0_4 = arith.constant 0 : index
    %2 = vector.load %arg3[%c0_3, %c0_4] : memref<1x512xf32, #tpu.memory_space<vmem>>, vector<1x512xf32>
    %cst = arith.constant 0.000000e+00 : f32
    %3 = vector.broadcast %cst : f32 to vector<8x128xf32>
    %c0_5 = arith.constant 0 : index
    %c0_6 = arith.constant 0 : index
    %4 = vector.load %arg0[%c0_5, %c0_6] : memref<64x16xf32, #tpu.memory_space<vmem>>, vector<64x16xf32>
    %cst_7 = arith.constant dense<0.000000e+00> : vector<64x512xf32>
    %5 = tpu.matmul %4, %0, %cst_7 {dimension_numbers = #tpu.dot_dimension_numbers<[1], [0], [0], [1], [0, 0, 1, 1], [], []>} : vector<64x16xf32>, vector<16x512xf32>, vector<64x512xf32> -> vector<64x512xf32>
    %6 = vector.broadcast %2 : vector<1x512xf32> to vector<64x512xf32>
    %7 = arith.addf %5, %6 : vector<64x512xf32>
    %c0_8 = arith.constant 0 : index
    %c0_9 = arith.constant 0 : index
    %8 = vector.load %arg10[%c0_8, %c0_9] : memref<64x512xf32, #tpu.memory_space<vmem>>, vector<64x512xf32>
    tpu.vector_store %arg10[%c0_8, %c0_9], %7 {strides = array<i32>} : memref<64x512xf32, #tpu.memory_space<vmem>>, vector<64x512xf32>,
    %c0_i32 = arith.constant 0 : i32
    %c8_i32 = arith.constant 8 : i32
    %9 = arith.muli %c0_i32, %c8_i32 : i32
    %10 = tpu.assume_multiple %9, 8 : i32
    %11 = arith.index_cast %10 : i32 to index
    %c0_10 = arith.constant 0 : index
    %12 = vector.load %arg10[%11, %c0_10] : memref<64x512xf32, #tpu.memory_space<vmem>>, vector<8x512xf32>
    %cst_11 = arith.constant dense<0.000000e+00> : vector<8x512xf32>
    %13 = tpu.matmul %3, %1, %cst_11 {dimension_numbers = #tpu.dot_dimension_numbers<[1], [0], [0], [1], [0, 0, 1, 1], [], []>} : vector<8x128xf32>, vector<128x512xf32>, vector<8x512xf32> -> vector<8x512xf32>
    %14 = arith.addf %12, %13 : vector<8x512xf32>
    %15 = vector.extract_strided_slice %14 {offsets = [0, 0], sizes = [8, 128], strides = [1, 1]} : vector<8x512xf32> to vector<8x128xf32>
    %16 = arith.negf %15 : vector<8x128xf32>
    %17 = math.exp %16 : vector<8x128xf32>
    %cst_12 = arith.constant 1.000000e+00 : f32
    %18 = vector.broadcast %cst_12 : f32 to vector<8x128xf32>
    %19 = arith.addf %18, %17 : vector<8x128xf32>
    %20 = arith.divf %18, %19 : vector<8x128xf32>
    %21 = vector.extract_strided_slice %14 {offsets = [0, 128], sizes = [8, 128], strides = [1, 1]} : vector<8x512xf32> to vector<8x128xf32>
    %22 = arith.negf %21 : vector<8x128xf32>
    %23 = math.exp %22 : vector<8x128xf32>
    %cst_13 = arith.constant 1.000000e+00 : f32
    %24 = vector.broadcast %cst_13 : f32 to vector<8x128xf32>
    %25 = arith.addf %24, %23 : vector<8x128xf32>
    %26 = arith.divf %24, %25 : vector<8x128xf32>
    %27 = vector.extract_strided_slice %14 {offsets = [0, 256], sizes = [8, 128], strides = [1, 1]} : vector<8x512xf32> to vector<8x128xf32>
    %28 = math.tanh %27 : vector<8x128xf32>
    %29 = vector.extract_strided_slice %14 {offsets = [0, 384], sizes = [8, 128], strides = [1, 1]} : vector<8x512xf32> to vector<8x128xf32>
    %30 = arith.negf %29 : vector<8x128xf32>
    %31 = math.exp %30 : vector<8x128xf32>
    %cst_14 = arith.constant 1.000000e+00 : f32
    %32 = vector.broadcast %cst_14 : f32 to vector<8x128xf32>
    %33 = arith.addf %32, %31 : vector<8x128xf32>
    %34 = arith.divf %32, %33 : vector<8x128xf32>
    %35 = arith.mulf %26, %3 : vector<8x128xf32>
    %36 = arith.mulf %20, %28 : vector<8x128xf32>
    %37 = arith.addf %35, %36 : vector<8x128xf32>
    %38 = math.tanh %37 : vector<8x128xf32>
    %39 = arith.mulf %34, %38 : vector<8x128xf32>
    %c0_i32_15 = arith.constant 0 : i32
    %40 = arith.addi %c0_i32_15, %9 : i32
    %41 = tpu.assume_multiple %40, 8 : i32
    %42 = arith.index_cast %41 : i32 to index
    %c0_16 = arith.constant 0 : index
    %43 = vector.load %arg11[%42, %c0_16] : memref<64x128xf32, #tpu.memory_space<vmem>>, vector<8x128xf32>
    tpu.vector_store %arg11[%42, %c0_16], %39 {strides = array<i32>} : memref<64x128xf32, #tpu.memory_space<vmem>>, vector<8x128xf32>,
    %c1_i32 = arith.constant 1 : i32
    %c8_i32_17 = arith.constant 8 : i32
    %44 = arith.muli %c1_i32, %c8_i32_17 : i32
    %45 = tpu.assume_multiple %44, 8 : i32
    %46 = arith.index_cast %45 : i32 to index
    %c0_18 = arith.constant 0 : index
    %47 = vector.load %arg10[%46, %c0_18] : memref<64x512xf32, #tpu.memory_space<vmem>>, vector<8x512xf32>
    %cst_19 = arith.constant dense<0.000000e+00> : vector<8x512xf32>
    %48 = tpu.matmul %39, %1, %cst_19 {dimension_numbers = #tpu.dot_dimension_numbers<[1], [0], [0], [1], [0, 0, 1, 1], [], []>} : vector<8x128xf32>, vector<128x512xf32>, vector<8x512xf32> -> vector<8x512xf32>
    %49 = arith.addf %47, %48 : vector<8x512xf32>
    %50 = vector.extract_strided_slice %49 {offsets = [0, 0], sizes = [8, 128], strides = [1, 1]} : vector<8x512xf32> to vector<8x128xf32>
    %51 = arith.negf %50 : vector<8x128xf32>
    %52 = math.exp %51 : vector<8x128xf32>
    %cst_20 = arith.constant 1.000000e+00 : f32
    %53 = vector.broadcast %cst_20 : f32 to vector<8x128xf32>
    %54 = arith.addf %53, %52 : vector<8x128xf32>
    %55 = arith.divf %53, %54 : vector<8x128xf32>
    %56 = vector.extract_strided_slice %49 {offsets = [0, 128], sizes = [8, 128], strides = [1, 1]} : vector<8x512xf32> to vector<8x128xf32>
    %57 = arith.negf %56 : vector<8x128xf32>
    %58 = math.exp %57 : vector<8x128xf32>
    %cst_21 = arith.constant 1.000000e+00 : f32
    %59 = vector.broadcast %cst_21 : f32 to vector<8x128xf32>
    %60 = arith.addf %59, %58 : vector<8x128xf32>
    %61 = arith.divf %59, %60 : vector<8x128xf32>
    %62 = vector.extract_strided_slice %49 {offsets = [0, 256], sizes = [8, 128], strides = [1, 1]} : vector<8x512xf32> to vector<8x128xf32>
    %63 = math.tanh %62 : vector<8x128xf32>
    %64 = vector.extract_strided_slice %49 {offsets = [0, 384], sizes = [8, 128], strides = [1, 1]} : vector<8x512xf32> to vector<8x128xf32>
    %65 = arith.negf %64 : vector<8x128xf32>
    %66 = math.exp %65 : vector<8x128xf32>
    %cst_22 = arith.constant 1.000000e+00 : f32
    %67 = vector.broadcast %cst_22 : f32 to vector<8x128xf32>
    %68 = arith.addf %67, %66 : vector<8x128xf32>
    %69 = arith.divf %67, %68 : vector<8x128xf32>
    %70 = arith.mulf %61, %37 : vector<8x128xf32>
    %71 = arith.mulf %55, %63 : vector<8x128xf32>
    %72 = arith.addf %70, %71 : vector<8x128xf32>
    %73 = math.tanh %72 : vector<8x128xf32>
    %74 = arith.mulf %69, %73 : vector<8x128xf32>
    %c0_i32_23 = arith.constant 0 : i32
    %75 = arith.addi %c0_i32_23, %44 : i32
    %76 = tpu.assume_multiple %75, 8 : i32
    %77 = arith.index_cast %76 : i32 to index
    %c0_24 = arith.constant 0 : index
    %78 = vector.load %arg11[%77, %c0_24] : memref<64x128xf32, #tpu.memory_space<vmem>>, vector<8x128xf32>
    tpu.vector_store %arg11[%77, %c0_24], %74 {strides = array<i32>} : memref<64x128xf32, #tpu.memory_space<vmem>>, vector<8x128xf32>,
    %c2_i32 = arith.constant 2 : i32
    %c8_i32_25 = arith.constant 8 : i32
    %79 = arith.muli %c2_i32, %c8_i32_25 : i32
    %80 = tpu.assume_multiple %79, 8 : i32
    %81 = arith.index_cast %80 : i32 to index
    %c0_26 = arith.constant 0 : index
    %82 = vector.load %arg10[%81, %c0_26] : memref<64x512xf32, #tpu.memory_space<vmem>>, vector<8x512xf32>
    %cst_27 = arith.constant dense<0.000000e+00> : vector<8x512xf32>
    %83 = tpu.matmul %74, %1, %cst_27 {dimension_numbers = #tpu.dot_dimension_numbers<[1], [0], [0], [1], [0, 0, 1, 1], [], []>} : vector<8x128xf32>, vector<128x512xf32>, vector<8x512xf32> -> vector<8x512xf32>
    %84 = arith.addf %82, %83 : vector<8x512xf32>
    %85 = vector.extract_strided_slice %84 {offsets = [0, 0], sizes = [8, 128], strides = [1, 1]} : vector<8x512xf32> to vector<8x128xf32>
    %86 = arith.negf %85 : vector<8x128xf32>
    %87 = math.exp %86 : vector<8x128xf32>
    %cst_28 = arith.constant 1.000000e+00 : f32
    %88 = vector.broadcast %cst_28 : f32 to vector<8x128xf32>
    %89 = arith.addf %88, %87 : vector<8x128xf32>
    %90 = arith.divf %88, %89 : vector<8x128xf32>
    %91 = vector.extract_strided_slice %84 {offsets = [0, 128], sizes = [8, 128], strides = [1, 1]} : vector<8x512xf32> to vector<8x128xf32>
    %92 = arith.negf %91 : vector<8x128xf32>
    %93 = math.exp %92 : vector<8x128xf32>
    %cst_29 = arith.constant 1.000000e+00 : f32
    %94 = vector.broadcast %cst_29 : f32 to vector<8x128xf32>
    %95 = arith.addf %94, %93 : vector<8x128xf32>
    %96 = arith.divf %94, %95 : vector<8x128xf32>
    %97 = vector.extract_strided_slice %84 {offsets = [0, 256], sizes = [8, 128], strides = [1, 1]} : vector<8x512xf32> to vector<8x128xf32>
    %98 = math.tanh %97 : vector<8x128xf32>
    %99 = vector.extract_strided_slice %84 {offsets = [0, 384], sizes = [8, 128], strides = [1, 1]} : vector<8x512xf32> to vector<8x128xf32>
    %100 = arith.negf %99 : vector<8x128xf32>
    %101 = math.exp %100 : vector<8x128xf32>
    %cst_30 = arith.constant 1.000000e+00 : f32
    %102 = vector.broadcast %cst_30 : f32 to vector<8x128xf32>
    %103 = arith.addf %102, %101 : vector<8x128xf32>
    %104 = arith.divf %102, %103 : vector<8x128xf32>
    %105 = arith.mulf %96, %72 : vector<8x128xf32>
    %106 = arith.mulf %90, %98 : vector<8x128xf32>
    %107 = arith.addf %105, %106 : vector<8x128xf32>
    %108 = math.tanh %107 : vector<8x128xf32>
    %109 = arith.mulf %104, %108 : vector<8x128xf32>
    %c0_i32_31 = arith.constant 0 : i32
    %110 = arith.addi %c0_i32_31, %79 : i32
    %111 = tpu.assume_multiple %110, 8 : i32
    %112 = arith.index_cast %111 : i32 to index
    %c0_32 = arith.constant 0 : index
    %113 = vector.load %arg11[%112, %c0_32] : memref<64x128xf32, #tpu.memory_space<vmem>>, vector<8x128xf32>
    tpu.vector_store %arg11[%112, %c0_32], %109 {strides = array<i32>} : memref<64x128xf32, #tpu.memory_space<vmem>>, vector<8x128xf32>,
    %c3_i32 = arith.constant 3 : i32
    %c8_i32_33 = arith.constant 8 : i32
    %114 = arith.muli %c3_i32, %c8_i32_33 : i32
    %115 = tpu.assume_multiple %114, 8 : i32
    %116 = arith.index_cast %115 : i32 to index
    %c0_34 = arith.constant 0 : index
    %117 = vector.load %arg10[%116, %c0_34] : memref<64x512xf32, #tpu.memory_space<vmem>>, vector<8x512xf32>
    %cst_35 = arith.constant dense<0.000000e+00> : vector<8x512xf32>
    %118 = tpu.matmul %109, %1, %cst_35 {dimension_numbers = #tpu.dot_dimension_numbers<[1], [0], [0], [1], [0, 0, 1, 1], [], []>} : vector<8x128xf32>, vector<128x512xf32>, vector<8x512xf32> -> vector<8x512xf32>
    %119 = arith.addf %117, %118 : vector<8x512xf32>
    %120 = vector.extract_strided_slice %119 {offsets = [0, 0], sizes = [8, 128], strides = [1, 1]} : vector<8x512xf32> to vector<8x128xf32>
    %121 = arith.negf %120 : vector<8x128xf32>
    %122 = math.exp %121 : vector<8x128xf32>
    %cst_36 = arith.constant 1.000000e+00 : f32
    %123 = vector.broadcast %cst_36 : f32 to vector<8x128xf32>
    %124 = arith.addf %123, %122 : vector<8x128xf32>
    %125 = arith.divf %123, %124 : vector<8x128xf32>
    %126 = vector.extract_strided_slice %119 {offsets = [0, 128], sizes = [8, 128], strides = [1, 1]} : vector<8x512xf32> to vector<8x128xf32>
    %127 = arith.negf %126 : vector<8x128xf32>
    %128 = math.exp %127 : vector<8x128xf32>
    %cst_37 = arith.constant 1.000000e+00 : f32
    %129 = vector.broadcast %cst_37 : f32 to vector<8x128xf32>
    %130 = arith.addf %129, %128 : vector<8x128xf32>
    %131 = arith.divf %129, %130 : vector<8x128xf32>
    %132 = vector.extract_strided_slice %119 {offsets = [0, 256], sizes = [8, 128], strides = [1, 1]} : vector<8x512xf32> to vector<8x128xf32>
    %133 = math.tanh %132 : vector<8x128xf32>
    %134 = vector.extract_strided_slice %119 {offsets = [0, 384], sizes = [8, 128], strides = [1, 1]} : vector<8x512xf32> to vector<8x128xf32>
    %135 = arith.negf %134 : vector<8x128xf32>
    %136 = math.exp %135 : vector<8x128xf32>
    %cst_38 = arith.constant 1.000000e+00 : f32
    %137 = vector.broadcast %cst_38 : f32 to vector<8x128xf32>
    %138 = arith.addf %137, %136 : vector<8x128xf32>
    %139 = arith.divf %137, %138 : vector<8x128xf32>
    %140 = arith.mulf %131, %107 : vector<8x128xf32>
    %141 = arith.mulf %125, %133 : vector<8x128xf32>
    %142 = arith.addf %140, %141 : vector<8x128xf32>
    %143 = math.tanh %142 : vector<8x128xf32>
    %144 = arith.mulf %139, %143 : vector<8x128xf32>
    %c0_i32_39 = arith.constant 0 : i32
    %145 = arith.addi %c0_i32_39, %114 : i32
    %146 = tpu.assume_multiple %145, 8 : i32
    %147 = arith.index_cast %146 : i32 to index
    %c0_40 = arith.constant 0 : index
    %148 = vector.load %arg11[%147, %c0_40] : memref<64x128xf32, #tpu.memory_space<vmem>>, vector<8x128xf32>
    tpu.vector_store %arg11[%147, %c0_40], %144 {strides = array<i32>} : memref<64x128xf32, #tpu.memory_space<vmem>>, vector<8x128xf32>,
    %c4_i32 = arith.constant 4 : i32
    %c8_i32_41 = arith.constant 8 : i32
    %149 = arith.muli %c4_i32, %c8_i32_41 : i32
    %150 = tpu.assume_multiple %149, 8 : i32
    %151 = arith.index_cast %150 : i32 to index
    %c0_42 = arith.constant 0 : index
    %152 = vector.load %arg10[%151, %c0_42] : memref<64x512xf32, #tpu.memory_space<vmem>>, vector<8x512xf32>
    %cst_43 = arith.constant dense<0.000000e+00> : vector<8x512xf32>
    %153 = tpu.matmul %144, %1, %cst_43 {dimension_numbers = #tpu.dot_dimension_numbers<[1], [0], [0], [1], [0, 0, 1, 1], [], []>} : vector<8x128xf32>, vector<128x512xf32>, vector<8x512xf32> -> vector<8x512xf32>
    %154 = arith.addf %152, %153 : vector<8x512xf32>
    %155 = vector.extract_strided_slice %154 {offsets = [0, 0], sizes = [8, 128], strides = [1, 1]} : vector<8x512xf32> to vector<8x128xf32>
    %156 = arith.negf %155 : vector<8x128xf32>
    %157 = math.exp %156 : vector<8x128xf32>
    %cst_44 = arith.constant 1.000000e+00 : f32
    %158 = vector.broadcast %cst_44 : f32 to vector<8x128xf32>
    %159 = arith.addf %158, %157 : vector<8x128xf32>
    %160 = arith.divf %158, %159 : vector<8x128xf32>
    %161 = vector.extract_strided_slice %154 {offsets = [0, 128], sizes = [8, 128], strides = [1, 1]} : vector<8x512xf32> to vector<8x128xf32>
    %162 = arith.negf %161 : vector<8x128xf32>
    %163 = math.exp %162 : vector<8x128xf32>
    %cst_45 = arith.constant 1.000000e+00 : f32
    %164 = vector.broadcast %cst_45 : f32 to vector<8x128xf32>
    %165 = arith.addf %164, %163 : vector<8x128xf32>
    %166 = arith.divf %164, %165 : vector<8x128xf32>
    %167 = vector.extract_strided_slice %154 {offsets = [0, 256], sizes = [8, 128], strides = [1, 1]} : vector<8x512xf32> to vector<8x128xf32>
    %168 = math.tanh %167 : vector<8x128xf32>
    %169 = vector.extract_strided_slice %154 {offsets = [0, 384], sizes = [8, 128], strides = [1, 1]} : vector<8x512xf32> to vector<8x128xf32>
    %170 = arith.negf %169 : vector<8x128xf32>
    %171 = math.exp %170 : vector<8x128xf32>
    %cst_46 = arith.constant 1.000000e+00 : f32
    %172 = vector.broadcast %cst_46 : f32 to vector<8x128xf32>
    %173 = arith.addf %172, %171 : vector<8x128xf32>
    %174 = arith.divf %172, %173 : vector<8x128xf32>
    %175 = arith.mulf %166, %142 : vector<8x128xf32>
    %176 = arith.mulf %160, %168 : vector<8x128xf32>
    %177 = arith.addf %175, %176 : vector<8x128xf32>
    %178 = math.tanh %177 : vector<8x128xf32>
    %179 = arith.mulf %174, %178 : vector<8x128xf32>
    %c0_i32_47 = arith.constant 0 : i32
    %180 = arith.addi %c0_i32_47, %149 : i32
    %181 = tpu.assume_multiple %180, 8 : i32
    %182 = arith.index_cast %181 : i32 to index
    %c0_48 = arith.constant 0 : index
    %183 = vector.load %arg11[%182, %c0_48] : memref<64x128xf32, #tpu.memory_space<vmem>>, vector<8x128xf32>
    tpu.vector_store %arg11[%182, %c0_48], %179 {strides = array<i32>} : memref<64x128xf32, #tpu.memory_space<vmem>>, vector<8x128xf32>,
    %c5_i32 = arith.constant 5 : i32
    %c8_i32_49 = arith.constant 8 : i32
    %184 = arith.muli %c5_i32, %c8_i32_49 : i32
    %185 = tpu.assume_multiple %184, 8 : i32
    %186 = arith.index_cast %185 : i32 to index
    %c0_50 = arith.constant 0 : index
    %187 = vector.load %arg10[%186, %c0_50] : memref<64x512xf32, #tpu.memory_space<vmem>>, vector<8x512xf32>
    %cst_51 = arith.constant dense<0.000000e+00> : vector<8x512xf32>
    %188 = tpu.matmul %179, %1, %cst_51 {dimension_numbers = #tpu.dot_dimension_numbers<[1], [0], [0], [1], [0, 0, 1, 1], [], []>} : vector<8x128xf32>, vector<128x512xf32>, vector<8x512xf32> -> vector<8x512xf32>
    %189 = arith.addf %187, %188 : vector<8x512xf32>
    %190 = vector.extract_strided_slice %189 {offsets = [0, 0], sizes = [8, 128], strides = [1, 1]} : vector<8x512xf32> to vector<8x128xf32>
    %191 = arith.negf %190 : vector<8x128xf32>
    %192 = math.exp %191 : vector<8x128xf32>
    %cst_52 = arith.constant 1.000000e+00 : f32
    %193 = vector.broadcast %cst_52 : f32 to vector<8x128xf32>
    %194 = arith.addf %193, %192 : vector<8x128xf32>
    %195 = arith.divf %193, %194 : vector<8x128xf32>
    %196 = vector.extract_strided_slice %189 {offsets = [0, 128], sizes = [8, 128], strides = [1, 1]} : vector<8x512xf32> to vector<8x128xf32>
    %197 = arith.negf %196 : vector<8x128xf32>
    %198 = math.exp %197 : vector<8x128xf32>
    %cst_53 = arith.constant 1.000000e+00 : f32
    %199 = vector.broadcast %cst_53 : f32 to vector<8x128xf32>
    %200 = arith.addf %199, %198 : vector<8x128xf32>
    %201 = arith.divf %199, %200 : vector<8x128xf32>
    %202 = vector.extract_strided_slice %189 {offsets = [0, 256], sizes = [8, 128], strides = [1, 1]} : vector<8x512xf32> to vector<8x128xf32>
    %203 = math.tanh %202 : vector<8x128xf32>
    %204 = vector.extract_strided_slice %189 {offsets = [0, 384], sizes = [8, 128], strides = [1, 1]} : vector<8x512xf32> to vector<8x128xf32>
    %205 = arith.negf %204 : vector<8x128xf32>
    %206 = math.exp %205 : vector<8x128xf32>
    %cst_54 = arith.constant 1.000000e+00 : f32
    %207 = vector.broadcast %cst_54 : f32 to vector<8x128xf32>
    %208 = arith.addf %207, %206 : vector<8x128xf32>
    %209 = arith.divf %207, %208 : vector<8x128xf32>
    %210 = arith.mulf %201, %177 : vector<8x128xf32>
    %211 = arith.mulf %195, %203 : vector<8x128xf32>
    %212 = arith.addf %210, %211 : vector<8x128xf32>
    %213 = math.tanh %212 : vector<8x128xf32>
    %214 = arith.mulf %209, %213 : vector<8x128xf32>
    %c0_i32_55 = arith.constant 0 : i32
    %215 = arith.addi %c0_i32_55, %184 : i32
    %216 = tpu.assume_multiple %215, 8 : i32
    %217 = arith.index_cast %216 : i32 to index
    %c0_56 = arith.constant 0 : index
    %218 = vector.load %arg11[%217, %c0_56] : memref<64x128xf32, #tpu.memory_space<vmem>>, vector<8x128xf32>
    tpu.vector_store %arg11[%217, %c0_56], %214 {strides = array<i32>} : memref<64x128xf32, #tpu.memory_space<vmem>>, vector<8x128xf32>,
    %c6_i32 = arith.constant 6 : i32
    %c8_i32_57 = arith.constant 8 : i32
    %219 = arith.muli %c6_i32, %c8_i32_57 : i32
    %220 = tpu.assume_multiple %219, 8 : i32
    %221 = arith.index_cast %220 : i32 to index
    %c0_58 = arith.constant 0 : index
    %222 = vector.load %arg10[%221, %c0_58] : memref<64x512xf32, #tpu.memory_space<vmem>>, vector<8x512xf32>
    %cst_59 = arith.constant dense<0.000000e+00> : vector<8x512xf32>
    %223 = tpu.matmul %214, %1, %cst_59 {dimension_numbers = #tpu.dot_dimension_numbers<[1], [0], [0], [1], [0, 0, 1, 1], [], []>} : vector<8x128xf32>, vector<128x512xf32>, vector<8x512xf32> -> vector<8x512xf32>
    %224 = arith.addf %222, %223 : vector<8x512xf32>
    %225 = vector.extract_strided_slice %224 {offsets = [0, 0], sizes = [8, 128], strides = [1, 1]} : vector<8x512xf32> to vector<8x128xf32>
    %226 = arith.negf %225 : vector<8x128xf32>
    %227 = math.exp %226 : vector<8x128xf32>
    %cst_60 = arith.constant 1.000000e+00 : f32
    %228 = vector.broadcast %cst_60 : f32 to vector<8x128xf32>
    %229 = arith.addf %228, %227 : vector<8x128xf32>
    %230 = arith.divf %228, %229 : vector<8x128xf32>
    %231 = vector.extract_strided_slice %224 {offsets = [0, 128], sizes = [8, 128], strides = [1, 1]} : vector<8x512xf32> to vector<8x128xf32>
    %232 = arith.negf %231 : vector<8x128xf32>
    %233 = math.exp %232 : vector<8x128xf32>
    %cst_61 = arith.constant 1.000000e+00 : f32
    %234 = vector.broadcast %cst_61 : f32 to vector<8x128xf32>
    %235 = arith.addf %234, %233 : vector<8x128xf32>
    %236 = arith.divf %234, %235 : vector<8x128xf32>
    %237 = vector.extract_strided_slice %224 {offsets = [0, 256], sizes = [8, 128], strides = [1, 1]} : vector<8x512xf32> to vector<8x128xf32>
    %238 = math.tanh %237 : vector<8x128xf32>
    %239 = vector.extract_strided_slice %224 {offsets = [0, 384], sizes = [8, 128], strides = [1, 1]} : vector<8x512xf32> to vector<8x128xf32>
    %240 = arith.negf %239 : vector<8x128xf32>
    %241 = math.exp %240 : vector<8x128xf32>
    %cst_62 = arith.constant 1.000000e+00 : f32
    %242 = vector.broadcast %cst_62 : f32 to vector<8x128xf32>
    %243 = arith.addf %242, %241 : vector<8x128xf32>
    %244 = arith.divf %242, %243 : vector<8x128xf32>
    %245 = arith.mulf %236, %212 : vector<8x128xf32>
    %246 = arith.mulf %230, %238 : vector<8x128xf32>
    %247 = arith.addf %245, %246 : vector<8x128xf32>
    %248 = math.tanh %247 : vector<8x128xf32>
    %249 = arith.mulf %244, %248 : vector<8x128xf32>
    %c0_i32_63 = arith.constant 0 : i32
    %250 = arith.addi %c0_i32_63, %219 : i32
    %251 = tpu.assume_multiple %250, 8 : i32
    %252 = arith.index_cast %251 : i32 to index
    %c0_64 = arith.constant 0 : index
    %253 = vector.load %arg11[%252, %c0_64] : memref<64x128xf32, #tpu.memory_space<vmem>>, vector<8x128xf32>
    tpu.vector_store %arg11[%252, %c0_64], %249 {strides = array<i32>} : memref<64x128xf32, #tpu.memory_space<vmem>>, vector<8x128xf32>,
    %c7_i32 = arith.constant 7 : i32
    %c8_i32_65 = arith.constant 8 : i32
    %254 = arith.muli %c7_i32, %c8_i32_65 : i32
    %255 = tpu.assume_multiple %254, 8 : i32
    %256 = arith.index_cast %255 : i32 to index
    %c0_66 = arith.constant 0 : index
    %257 = vector.load %arg10[%256, %c0_66] : memref<64x512xf32, #tpu.memory_space<vmem>>, vector<8x512xf32>
    %cst_67 = arith.constant dense<0.000000e+00> : vector<8x512xf32>
    %258 = tpu.matmul %249, %1, %cst_67 {dimension_numbers = #tpu.dot_dimension_numbers<[1], [0], [0], [1], [0, 0, 1, 1], [], []>} : vector<8x128xf32>, vector<128x512xf32>, vector<8x512xf32> -> vector<8x512xf32>
    %259 = arith.addf %257, %258 : vector<8x512xf32>
    %260 = vector.extract_strided_slice %259 {offsets = [0, 0], sizes = [8, 128], strides = [1, 1]} : vector<8x512xf32> to vector<8x128xf32>
    %261 = arith.negf %260 : vector<8x128xf32>
    %262 = math.exp %261 : vector<8x128xf32>
    %cst_68 = arith.constant 1.000000e+00 : f32
    %263 = vector.broadcast %cst_68 : f32 to vector<8x128xf32>
    %264 = arith.addf %263, %262 : vector<8x128xf32>
    %265 = arith.divf %263, %264 : vector<8x128xf32>
    %266 = vector.extract_strided_slice %259 {offsets = [0, 128], sizes = [8, 128], strides = [1, 1]} : vector<8x512xf32> to vector<8x128xf32>
    %267 = arith.negf %266 : vector<8x128xf32>
    %268 = math.exp %267 : vector<8x128xf32>
    %cst_69 = arith.constant 1.000000e+00 : f32
    %269 = vector.broadcast %cst_69 : f32 to vector<8x128xf32>
    %270 = arith.addf %269, %268 : vector<8x128xf32>
    %271 = arith.divf %269, %270 : vector<8x128xf32>
    %272 = vector.extract_strided_slice %259 {offsets = [0, 256], sizes = [8, 128], strides = [1, 1]} : vector<8x512xf32> to vector<8x128xf32>
    %273 = math.tanh %272 : vector<8x128xf32>
    %274 = vector.extract_strided_slice %259 {offsets = [0, 384], sizes = [8, 128], strides = [1, 1]} : vector<8x512xf32> to vector<8x128xf32>
    %275 = arith.negf %274 : vector<8x128xf32>
    %276 = math.exp %275 : vector<8x128xf32>
    %cst_70 = arith.constant 1.000000e+00 : f32
    %277 = vector.broadcast %cst_70 : f32 to vector<8x128xf32>
    %278 = arith.addf %277, %276 : vector<8x128xf32>
    %279 = arith.divf %277, %278 : vector<8x128xf32>
    %280 = arith.mulf %271, %247 : vector<8x128xf32>
    %281 = arith.mulf %265, %273 : vector<8x128xf32>
    %282 = arith.addf %280, %281 : vector<8x128xf32>
    %283 = math.tanh %282 : vector<8x128xf32>
    %284 = arith.mulf %279, %283 : vector<8x128xf32>
    %c0_i32_71 = arith.constant 0 : i32
    %285 = arith.addi %c0_i32_71, %254 : i32
    %286 = tpu.assume_multiple %285, 8 : i32
    %287 = arith.index_cast %286 : i32 to index
    %c0_72 = arith.constant 0 : index
    %288 = vector.load %arg11[%287, %c0_72] : memref<64x128xf32, #tpu.memory_space<vmem>>, vector<8x128xf32>
    tpu.vector_store %arg11[%287, %c0_72], %284 {strides = array<i32>} : memref<64x128xf32, #tpu.memory_space<vmem>>, vector<8x128xf32>,
    %c8_i32_73 = arith.constant 8 : i32
    %c0_74 = arith.constant 0 : index
    %c0_75 = arith.constant 0 : index
    %c0_76 = arith.constant 0 : index
    %289 = vector.load %arg8[%c0_74, %c0_75, %c0_76] : memref<2x8x128xf32, #tpu.memory_space<vmem>>, vector<1x8x128xf32>
    %290 = vector.shape_cast %289 : vector<1x8x128xf32> to vector<8x128xf32>
    %291 = vector.shape_cast %284 : vector<8x128xf32> to vector<1x8x128xf32>
    tpu.vector_store %arg8[%c0_74, %c0_75, %c0_76], %291 {strides = array<i32>} : memref<2x8x128xf32, #tpu.memory_space<vmem>>, vector<1x8x128xf32>,
    %c0_77 = arith.constant 0 : index
    %c0_78 = arith.constant 0 : index
    %c0_79 = arith.constant 0 : index
    %292 = vector.load %arg9[%c0_77, %c0_78, %c0_79] : memref<2x8x128xf32, #tpu.memory_space<vmem>>, vector<1x8x128xf32>
    %293 = vector.shape_cast %292 : vector<1x8x128xf32> to vector<8x128xf32>
    %294 = vector.shape_cast %282 : vector<8x128xf32> to vector<1x8x128xf32>
    tpu.vector_store %arg9[%c0_77, %c0_78, %c0_79], %294 {strides = array<i32>} : memref<2x8x128xf32, #tpu.memory_space<vmem>>, vector<1x8x128xf32>,
    %c0_80 = arith.constant 0 : index
    %c0_81 = arith.constant 0 : index
    %c0_82 = arith.constant 0 : index
    %295 = vector.load %arg4[%c0_80, %c0_81, %c0_82] : memref<1x128x512xf32, #tpu.memory_space<vmem>>, vector<1x128x512xf32>
    %296 = vector.shape_cast %295 : vector<1x128x512xf32> to vector<128x512xf32>
    %c0_83 = arith.constant 0 : index
    %c0_84 = arith.constant 0 : index
    %c0_85 = arith.constant 0 : index
    %297 = vector.load %arg5[%c0_83, %c0_84, %c0_85] : memref<1x128x512xf32, #tpu.memory_space<vmem>>, vector<1x128x512xf32>
    %298 = vector.shape_cast %297 : vector<1x128x512xf32> to vector<128x512xf32>
    %c0_86 = arith.constant 0 : index
    %c0_87 = arith.constant 0 : index
    %c0_88 = arith.constant 0 : index
    %299 = vector.load %arg6[%c0_86, %c0_87, %c0_88] : memref<1x1x512xf32, #tpu.memory_space<vmem>>, vector<1x1x512xf32>
    %300 = vector.shape_cast %299 : vector<1x1x512xf32> to vector<1x512xf32>
    %cst_89 = arith.constant 0.000000e+00 : f32
    %301 = vector.broadcast %cst_89 : f32 to vector<8x128xf32>
    %c0_90 = arith.constant 0 : index
    %c0_91 = arith.constant 0 : index
    %302 = vector.load %arg11[%c0_90, %c0_91] : memref<64x128xf32, #tpu.memory_space<vmem>>, vector<64x128xf32>
    %cst_92 = arith.constant dense<0.000000e+00> : vector<64x512xf32>
    %303 = tpu.matmul %302, %296, %cst_92 {dimension_numbers = #tpu.dot_dimension_numbers<[1], [0], [0], [1], [0, 0, 1, 1], [], []>} : vector<64x128xf32>, vector<128x512xf32>, vector<64x512xf32> -> vector<64x512xf32>
    %304 = vector.broadcast %300 : vector<1x512xf32> to vector<64x512xf32>
    %305 = arith.addf %303, %304 : vector<64x512xf32>
    %c0_93 = arith.constant 0 : index
    %c0_94 = arith.constant 0 : index
    %306 = vector.load %arg10[%c0_93, %c0_94] : memref<64x512xf32, #tpu.memory_space<vmem>>, vector<64x512xf32>
    tpu.vector_store %arg10[%c0_93, %c0_94], %305 {strides = array<i32>} : memref<64x512xf32, #tpu.memory_space<vmem>>, vector<64x512xf32>,
    %c0_i32_95 = arith.constant 0 : i32
    %c8_i32_96 = arith.constant 8 : i32
    %307 = arith.muli %c0_i32_95, %c8_i32_96 : i32
    %308 = tpu.assume_multiple %307, 8 : i32
    %309 = arith.index_cast %308 : i32 to index
    %c0_97 = arith.constant 0 : index
    %310 = vector.load %arg10[%309, %c0_97] : memref<64x512xf32, #tpu.memory_space<vmem>>, vector<8x512xf32>
    %cst_98 = arith.constant dense<0.000000e+00> : vector<8x512xf32>
    %311 = tpu.matmul %301, %298, %cst_98 {dimension_numbers = #tpu.dot_dimension_numbers<[1], [0], [0], [1], [0, 0, 1, 1], [], []>} : vector<8x128xf32>, vector<128x512xf32>, vector<8x512xf32> -> vector<8x512xf32>
    %312 = arith.addf %310, %311 : vector<8x512xf32>
    %313 = vector.extract_strided_slice %312 {offsets = [0, 0], sizes = [8, 128], strides = [1, 1]} : vector<8x512xf32> to vector<8x128xf32>
    %314 = arith.negf %313 : vector<8x128xf32>
    %315 = math.exp %314 : vector<8x128xf32>
    %cst_99 = arith.constant 1.000000e+00 : f32
    %316 = vector.broadcast %cst_99 : f32 to vector<8x128xf32>
    %317 = arith.addf %316, %315 : vector<8x128xf32>
    %318 = arith.divf %316, %317 : vector<8x128xf32>
    %319 = vector.extract_strided_slice %312 {offsets = [0, 128], sizes = [8, 128], strides = [1, 1]} : vector<8x512xf32> to vector<8x128xf32>
    %320 = arith.negf %319 : vector<8x128xf32>
    %321 = math.exp %320 : vector<8x128xf32>
    %cst_100 = arith.constant 1.000000e+00 : f32
    %322 = vector.broadcast %cst_100 : f32 to vector<8x128xf32>
    %323 = arith.addf %322, %321 : vector<8x128xf32>
    %324 = arith.divf %322, %323 : vector<8x128xf32>
    %325 = vector.extract_strided_slice %312 {offsets = [0, 256], sizes = [8, 128], strides = [1, 1]} : vector<8x512xf32> to vector<8x128xf32>
    %326 = math.tanh %325 : vector<8x128xf32>
    %327 = vector.extract_strided_slice %312 {offsets = [0, 384], sizes = [8, 128], strides = [1, 1]} : vector<8x512xf32> to vector<8x128xf32>
    %328 = arith.negf %327 : vector<8x128xf32>
    %329 = math.exp %328 : vector<8x128xf32>
    %cst_101 = arith.constant 1.000000e+00 : f32
    %330 = vector.broadcast %cst_101 : f32 to vector<8x128xf32>
    %331 = arith.addf %330, %329 : vector<8x128xf32>
    %332 = arith.divf %330, %331 : vector<8x128xf32>
    %333 = arith.mulf %324, %301 : vector<8x128xf32>
    %334 = arith.mulf %318, %326 : vector<8x128xf32>
    %335 = arith.addf %333, %334 : vector<8x128xf32>
    %336 = math.tanh %335 : vector<8x128xf32>
    %337 = arith.mulf %332, %336 : vector<8x128xf32>
    %c0_i32_102 = arith.constant 0 : i32
    %338 = arith.addi %c0_i32_102, %307 : i32
    %339 = tpu.assume_multiple %338, 8 : i32
    %340 = arith.index_cast %339 : i32 to index
    %c0_103 = arith.constant 0 : index
    %341 = vector.load %arg7[%340, %c0_103] : memref<64x128xf32, #tpu.memory_space<vmem>>, vector<8x128xf32>
    tpu.vector_store %arg7[%340, %c0_103], %337 {strides = array<i32>} : memref<64x128xf32, #tpu.memory_space<vmem>>, vector<8x128xf32>,
    %c1_i32_104 = arith.constant 1 : i32
    %c8_i32_105 = arith.constant 8 : i32
    %342 = arith.muli %c1_i32_104, %c8_i32_105 : i32
    %343 = tpu.assume_multiple %342, 8 : i32
    %344 = arith.index_cast %343 : i32 to index
    %c0_106 = arith.constant 0 : index
    %345 = vector.load %arg10[%344, %c0_106] : memref<64x512xf32, #tpu.memory_space<vmem>>, vector<8x512xf32>
    %cst_107 = arith.constant dense<0.000000e+00> : vector<8x512xf32>
    %346 = tpu.matmul %337, %298, %cst_107 {dimension_numbers = #tpu.dot_dimension_numbers<[1], [0], [0], [1], [0, 0, 1, 1], [], []>} : vector<8x128xf32>, vector<128x512xf32>, vector<8x512xf32> -> vector<8x512xf32>
    %347 = arith.addf %345, %346 : vector<8x512xf32>
    %348 = vector.extract_strided_slice %347 {offsets = [0, 0], sizes = [8, 128], strides = [1, 1]} : vector<8x512xf32> to vector<8x128xf32>
    %349 = arith.negf %348 : vector<8x128xf32>
    %350 = math.exp %349 : vector<8x128xf32>
    %cst_108 = arith.constant 1.000000e+00 : f32
    %351 = vector.broadcast %cst_108 : f32 to vector<8x128xf32>
    %352 = arith.addf %351, %350 : vector<8x128xf32>
    %353 = arith.divf %351, %352 : vector<8x128xf32>
    %354 = vector.extract_strided_slice %347 {offsets = [0, 128], sizes = [8, 128], strides = [1, 1]} : vector<8x512xf32> to vector<8x128xf32>
    %355 = arith.negf %354 : vector<8x128xf32>
    %356 = math.exp %355 : vector<8x128xf32>
    %cst_109 = arith.constant 1.000000e+00 : f32
    %357 = vector.broadcast %cst_109 : f32 to vector<8x128xf32>
    %358 = arith.addf %357, %356 : vector<8x128xf32>
    %359 = arith.divf %357, %358 : vector<8x128xf32>
    %360 = vector.extract_strided_slice %347 {offsets = [0, 256], sizes = [8, 128], strides = [1, 1]} : vector<8x512xf32> to vector<8x128xf32>
    %361 = math.tanh %360 : vector<8x128xf32>
    %362 = vector.extract_strided_slice %347 {offsets = [0, 384], sizes = [8, 128], strides = [1, 1]} : vector<8x512xf32> to vector<8x128xf32>
    %363 = arith.negf %362 : vector<8x128xf32>
    %364 = math.exp %363 : vector<8x128xf32>
    %cst_110 = arith.constant 1.000000e+00 : f32
    %365 = vector.broadcast %cst_110 : f32 to vector<8x128xf32>
    %366 = arith.addf %365, %364 : vector<8x128xf32>
    %367 = arith.divf %365, %366 : vector<8x128xf32>
    %368 = arith.mulf %359, %335 : vector<8x128xf32>
    %369 = arith.mulf %353, %361 : vector<8x128xf32>
    %370 = arith.addf %368, %369 : vector<8x128xf32>
    %371 = math.tanh %370 : vector<8x128xf32>
    %372 = arith.mulf %367, %371 : vector<8x128xf32>
    %c0_i32_111 = arith.constant 0 : i32
    %373 = arith.addi %c0_i32_111, %342 : i32
    %374 = tpu.assume_multiple %373, 8 : i32
    %375 = arith.index_cast %374 : i32 to index
    %c0_112 = arith.constant 0 : index
    %376 = vector.load %arg7[%375, %c0_112] : memref<64x128xf32, #tpu.memory_space<vmem>>, vector<8x128xf32>
    tpu.vector_store %arg7[%375, %c0_112], %372 {strides = array<i32>} : memref<64x128xf32, #tpu.memory_space<vmem>>, vector<8x128xf32>,
    %c2_i32_113 = arith.constant 2 : i32
    %c8_i32_114 = arith.constant 8 : i32
    %377 = arith.muli %c2_i32_113, %c8_i32_114 : i32
    %378 = tpu.assume_multiple %377, 8 : i32
    %379 = arith.index_cast %378 : i32 to index
    %c0_115 = arith.constant 0 : index
    %380 = vector.load %arg10[%379, %c0_115] : memref<64x512xf32, #tpu.memory_space<vmem>>, vector<8x512xf32>
    %cst_116 = arith.constant dense<0.000000e+00> : vector<8x512xf32>
    %381 = tpu.matmul %372, %298, %cst_116 {dimension_numbers = #tpu.dot_dimension_numbers<[1], [0], [0], [1], [0, 0, 1, 1], [], []>} : vector<8x128xf32>, vector<128x512xf32>, vector<8x512xf32> -> vector<8x512xf32>
    %382 = arith.addf %380, %381 : vector<8x512xf32>
    %383 = vector.extract_strided_slice %382 {offsets = [0, 0], sizes = [8, 128], strides = [1, 1]} : vector<8x512xf32> to vector<8x128xf32>
    %384 = arith.negf %383 : vector<8x128xf32>
    %385 = math.exp %384 : vector<8x128xf32>
    %cst_117 = arith.constant 1.000000e+00 : f32
    %386 = vector.broadcast %cst_117 : f32 to vector<8x128xf32>
    %387 = arith.addf %386, %385 : vector<8x128xf32>
    %388 = arith.divf %386, %387 : vector<8x128xf32>
    %389 = vector.extract_strided_slice %382 {offsets = [0, 128], sizes = [8, 128], strides = [1, 1]} : vector<8x512xf32> to vector<8x128xf32>
    %390 = arith.negf %389 : vector<8x128xf32>
    %391 = math.exp %390 : vector<8x128xf32>
    %cst_118 = arith.constant 1.000000e+00 : f32
    %392 = vector.broadcast %cst_118 : f32 to vector<8x128xf32>
    %393 = arith.addf %392, %391 : vector<8x128xf32>
    %394 = arith.divf %392, %393 : vector<8x128xf32>
    %395 = vector.extract_strided_slice %382 {offsets = [0, 256], sizes = [8, 128], strides = [1, 1]} : vector<8x512xf32> to vector<8x128xf32>
    %396 = math.tanh %395 : vector<8x128xf32>
    %397 = vector.extract_strided_slice %382 {offsets = [0, 384], sizes = [8, 128], strides = [1, 1]} : vector<8x512xf32> to vector<8x128xf32>
    %398 = arith.negf %397 : vector<8x128xf32>
    %399 = math.exp %398 : vector<8x128xf32>
    %cst_119 = arith.constant 1.000000e+00 : f32
    %400 = vector.broadcast %cst_119 : f32 to vector<8x128xf32>
    %401 = arith.addf %400, %399 : vector<8x128xf32>
    %402 = arith.divf %400, %401 : vector<8x128xf32>
    %403 = arith.mulf %394, %370 : vector<8x128xf32>
    %404 = arith.mulf %388, %396 : vector<8x128xf32>
    %405 = arith.addf %403, %404 : vector<8x128xf32>
    %406 = math.tanh %405 : vector<8x128xf32>
    %407 = arith.mulf %402, %406 : vector<8x128xf32>
    %c0_i32_120 = arith.constant 0 : i32
    %408 = arith.addi %c0_i32_120, %377 : i32
    %409 = tpu.assume_multiple %408, 8 : i32
    %410 = arith.index_cast %409 : i32 to index
    %c0_121 = arith.constant 0 : index
    %411 = vector.load %arg7[%410, %c0_121] : memref<64x128xf32, #tpu.memory_space<vmem>>, vector<8x128xf32>
    tpu.vector_store %arg7[%410, %c0_121], %407 {strides = array<i32>} : memref<64x128xf32, #tpu.memory_space<vmem>>, vector<8x128xf32>,
    %c3_i32_122 = arith.constant 3 : i32
    %c8_i32_123 = arith.constant 8 : i32
    %412 = arith.muli %c3_i32_122, %c8_i32_123 : i32
    %413 = tpu.assume_multiple %412, 8 : i32
    %414 = arith.index_cast %413 : i32 to index
    %c0_124 = arith.constant 0 : index
    %415 = vector.load %arg10[%414, %c0_124] : memref<64x512xf32, #tpu.memory_space<vmem>>, vector<8x512xf32>
    %cst_125 = arith.constant dense<0.000000e+00> : vector<8x512xf32>
    %416 = tpu.matmul %407, %298, %cst_125 {dimension_numbers = #tpu.dot_dimension_numbers<[1], [0], [0], [1], [0, 0, 1, 1], [], []>} : vector<8x128xf32>, vector<128x512xf32>, vector<8x512xf32> -> vector<8x512xf32>
    %417 = arith.addf %415, %416 : vector<8x512xf32>
    %418 = vector.extract_strided_slice %417 {offsets = [0, 0], sizes = [8, 128], strides = [1, 1]} : vector<8x512xf32> to vector<8x128xf32>
    %419 = arith.negf %418 : vector<8x128xf32>
    %420 = math.exp %419 : vector<8x128xf32>
    %cst_126 = arith.constant 1.000000e+00 : f32
    %421 = vector.broadcast %cst_126 : f32 to vector<8x128xf32>
    %422 = arith.addf %421, %420 : vector<8x128xf32>
    %423 = arith.divf %421, %422 : vector<8x128xf32>
    %424 = vector.extract_strided_slice %417 {offsets = [0, 128], sizes = [8, 128], strides = [1, 1]} : vector<8x512xf32> to vector<8x128xf32>
    %425 = arith.negf %424 : vector<8x128xf32>
    %426 = math.exp %425 : vector<8x128xf32>
    %cst_127 = arith.constant 1.000000e+00 : f32
    %427 = vector.broadcast %cst_127 : f32 to vector<8x128xf32>
    %428 = arith.addf %427, %426 : vector<8x128xf32>
    %429 = arith.divf %427, %428 : vector<8x128xf32>
    %430 = vector.extract_strided_slice %417 {offsets = [0, 256], sizes = [8, 128], strides = [1, 1]} : vector<8x512xf32> to vector<8x128xf32>
    %431 = math.tanh %430 : vector<8x128xf32>
    %432 = vector.extract_strided_slice %417 {offsets = [0, 384], sizes = [8, 128], strides = [1, 1]} : vector<8x512xf32> to vector<8x128xf32>
    %433 = arith.negf %432 : vector<8x128xf32>
    %434 = math.exp %433 : vector<8x128xf32>
    %cst_128 = arith.constant 1.000000e+00 : f32
    %435 = vector.broadcast %cst_128 : f32 to vector<8x128xf32>
    %436 = arith.addf %435, %434 : vector<8x128xf32>
    %437 = arith.divf %435, %436 : vector<8x128xf32>
    %438 = arith.mulf %429, %405 : vector<8x128xf32>
    %439 = arith.mulf %423, %431 : vector<8x128xf32>
    %440 = arith.addf %438, %439 : vector<8x128xf32>
    %441 = math.tanh %440 : vector<8x128xf32>
    %442 = arith.mulf %437, %441 : vector<8x128xf32>
    %c0_i32_129 = arith.constant 0 : i32
    %443 = arith.addi %c0_i32_129, %412 : i32
    %444 = tpu.assume_multiple %443, 8 : i32
    %445 = arith.index_cast %444 : i32 to index
    %c0_130 = arith.constant 0 : index
    %446 = vector.load %arg7[%445, %c0_130] : memref<64x128xf32, #tpu.memory_space<vmem>>, vector<8x128xf32>
    tpu.vector_store %arg7[%445, %c0_130], %442 {strides = array<i32>} : memref<64x128xf32, #tpu.memory_space<vmem>>, vector<8x128xf32>,
    %c4_i32_131 = arith.constant 4 : i32
    %c8_i32_132 = arith.constant 8 : i32
    %447 = arith.muli %c4_i32_131, %c8_i32_132 : i32
    %448 = tpu.assume_multiple %447, 8 : i32
    %449 = arith.index_cast %448 : i32 to index
    %c0_133 = arith.constant 0 : index
    %450 = vector.load %arg10[%449, %c0_133] : memref<64x512xf32, #tpu.memory_space<vmem>>, vector<8x512xf32>
    %cst_134 = arith.constant dense<0.000000e+00> : vector<8x512xf32>
    %451 = tpu.matmul %442, %298, %cst_134 {dimension_numbers = #tpu.dot_dimension_numbers<[1], [0], [0], [1], [0, 0, 1, 1], [], []>} : vector<8x128xf32>, vector<128x512xf32>, vector<8x512xf32> -> vector<8x512xf32>
    %452 = arith.addf %450, %451 : vector<8x512xf32>
    %453 = vector.extract_strided_slice %452 {offsets = [0, 0], sizes = [8, 128], strides = [1, 1]} : vector<8x512xf32> to vector<8x128xf32>
    %454 = arith.negf %453 : vector<8x128xf32>
    %455 = math.exp %454 : vector<8x128xf32>
    %cst_135 = arith.constant 1.000000e+00 : f32
    %456 = vector.broadcast %cst_135 : f32 to vector<8x128xf32>
    %457 = arith.addf %456, %455 : vector<8x128xf32>
    %458 = arith.divf %456, %457 : vector<8x128xf32>
    %459 = vector.extract_strided_slice %452 {offsets = [0, 128], sizes = [8, 128], strides = [1, 1]} : vector<8x512xf32> to vector<8x128xf32>
    %460 = arith.negf %459 : vector<8x128xf32>
    %461 = math.exp %460 : vector<8x128xf32>
    %cst_136 = arith.constant 1.000000e+00 : f32
    %462 = vector.broadcast %cst_136 : f32 to vector<8x128xf32>
    %463 = arith.addf %462, %461 : vector<8x128xf32>
    %464 = arith.divf %462, %463 : vector<8x128xf32>
    %465 = vector.extract_strided_slice %452 {offsets = [0, 256], sizes = [8, 128], strides = [1, 1]} : vector<8x512xf32> to vector<8x128xf32>
    %466 = math.tanh %465 : vector<8x128xf32>
    %467 = vector.extract_strided_slice %452 {offsets = [0, 384], sizes = [8, 128], strides = [1, 1]} : vector<8x512xf32> to vector<8x128xf32>
    %468 = arith.negf %467 : vector<8x128xf32>
    %469 = math.exp %468 : vector<8x128xf32>
    %cst_137 = arith.constant 1.000000e+00 : f32
    %470 = vector.broadcast %cst_137 : f32 to vector<8x128xf32>
    %471 = arith.addf %470, %469 : vector<8x128xf32>
    %472 = arith.divf %470, %471 : vector<8x128xf32>
    %473 = arith.mulf %464, %440 : vector<8x128xf32>
    %474 = arith.mulf %458, %466 : vector<8x128xf32>
    %475 = arith.addf %473, %474 : vector<8x128xf32>
    %476 = math.tanh %475 : vector<8x128xf32>
    %477 = arith.mulf %472, %476 : vector<8x128xf32>
    %c0_i32_138 = arith.constant 0 : i32
    %478 = arith.addi %c0_i32_138, %447 : i32
    %479 = tpu.assume_multiple %478, 8 : i32
    %480 = arith.index_cast %479 : i32 to index
    %c0_139 = arith.constant 0 : index
    %481 = vector.load %arg7[%480, %c0_139] : memref<64x128xf32, #tpu.memory_space<vmem>>, vector<8x128xf32>
    tpu.vector_store %arg7[%480, %c0_139], %477 {strides = array<i32>} : memref<64x128xf32, #tpu.memory_space<vmem>>, vector<8x128xf32>,
    %c5_i32_140 = arith.constant 5 : i32
    %c8_i32_141 = arith.constant 8 : i32
    %482 = arith.muli %c5_i32_140, %c8_i32_141 : i32
    %483 = tpu.assume_multiple %482, 8 : i32
    %484 = arith.index_cast %483 : i32 to index
    %c0_142 = arith.constant 0 : index
    %485 = vector.load %arg10[%484, %c0_142] : memref<64x512xf32, #tpu.memory_space<vmem>>, vector<8x512xf32>
    %cst_143 = arith.constant dense<0.000000e+00> : vector<8x512xf32>
    %486 = tpu.matmul %477, %298, %cst_143 {dimension_numbers = #tpu.dot_dimension_numbers<[1], [0], [0], [1], [0, 0, 1, 1], [], []>} : vector<8x128xf32>, vector<128x512xf32>, vector<8x512xf32> -> vector<8x512xf32>
    %487 = arith.addf %485, %486 : vector<8x512xf32>
    %488 = vector.extract_strided_slice %487 {offsets = [0, 0], sizes = [8, 128], strides = [1, 1]} : vector<8x512xf32> to vector<8x128xf32>
    %489 = arith.negf %488 : vector<8x128xf32>
    %490 = math.exp %489 : vector<8x128xf32>
    %cst_144 = arith.constant 1.000000e+00 : f32
    %491 = vector.broadcast %cst_144 : f32 to vector<8x128xf32>
    %492 = arith.addf %491, %490 : vector<8x128xf32>
    %493 = arith.divf %491, %492 : vector<8x128xf32>
    %494 = vector.extract_strided_slice %487 {offsets = [0, 128], sizes = [8, 128], strides = [1, 1]} : vector<8x512xf32> to vector<8x128xf32>
    %495 = arith.negf %494 : vector<8x128xf32>
    %496 = math.exp %495 : vector<8x128xf32>
    %cst_145 = arith.constant 1.000000e+00 : f32
    %497 = vector.broadcast %cst_145 : f32 to vector<8x128xf32>
    %498 = arith.addf %497, %496 : vector<8x128xf32>
    %499 = arith.divf %497, %498 : vector<8x128xf32>
    %500 = vector.extract_strided_slice %487 {offsets = [0, 256], sizes = [8, 128], strides = [1, 1]} : vector<8x512xf32> to vector<8x128xf32>
    %501 = math.tanh %500 : vector<8x128xf32>
    %502 = vector.extract_strided_slice %487 {offsets = [0, 384], sizes = [8, 128], strides = [1, 1]} : vector<8x512xf32> to vector<8x128xf32>
    %503 = arith.negf %502 : vector<8x128xf32>
    %504 = math.exp %503 : vector<8x128xf32>
    %cst_146 = arith.constant 1.000000e+00 : f32
    %505 = vector.broadcast %cst_146 : f32 to vector<8x128xf32>
    %506 = arith.addf %505, %504 : vector<8x128xf32>
    %507 = arith.divf %505, %506 : vector<8x128xf32>
    %508 = arith.mulf %499, %475 : vector<8x128xf32>
    %509 = arith.mulf %493, %501 : vector<8x128xf32>
    %510 = arith.addf %508, %509 : vector<8x128xf32>
    %511 = math.tanh %510 : vector<8x128xf32>
    %512 = arith.mulf %507, %511 : vector<8x128xf32>
    %c0_i32_147 = arith.constant 0 : i32
    %513 = arith.addi %c0_i32_147, %482 : i32
    %514 = tpu.assume_multiple %513, 8 : i32
    %515 = arith.index_cast %514 : i32 to index
    %c0_148 = arith.constant 0 : index
    %516 = vector.load %arg7[%515, %c0_148] : memref<64x128xf32, #tpu.memory_space<vmem>>, vector<8x128xf32>
    tpu.vector_store %arg7[%515, %c0_148], %512 {strides = array<i32>} : memref<64x128xf32, #tpu.memory_space<vmem>>, vector<8x128xf32>,
    %c6_i32_149 = arith.constant 6 : i32
    %c8_i32_150 = arith.constant 8 : i32
    %517 = arith.muli %c6_i32_149, %c8_i32_150 : i32
    %518 = tpu.assume_multiple %517, 8 : i32
    %519 = arith.index_cast %518 : i32 to index
    %c0_151 = arith.constant 0 : index
    %520 = vector.load %arg10[%519, %c0_151] : memref<64x512xf32, #tpu.memory_space<vmem>>, vector<8x512xf32>
    %cst_152 = arith.constant dense<0.000000e+00> : vector<8x512xf32>
    %521 = tpu.matmul %512, %298, %cst_152 {dimension_numbers = #tpu.dot_dimension_numbers<[1], [0], [0], [1], [0, 0, 1, 1], [], []>} : vector<8x128xf32>, vector<128x512xf32>, vector<8x512xf32> -> vector<8x512xf32>
    %522 = arith.addf %520, %521 : vector<8x512xf32>
    %523 = vector.extract_strided_slice %522 {offsets = [0, 0], sizes = [8, 128], strides = [1, 1]} : vector<8x512xf32> to vector<8x128xf32>
    %524 = arith.negf %523 : vector<8x128xf32>
    %525 = math.exp %524 : vector<8x128xf32>
    %cst_153 = arith.constant 1.000000e+00 : f32
    %526 = vector.broadcast %cst_153 : f32 to vector<8x128xf32>
    %527 = arith.addf %526, %525 : vector<8x128xf32>
    %528 = arith.divf %526, %527 : vector<8x128xf32>
    %529 = vector.extract_strided_slice %522 {offsets = [0, 128], sizes = [8, 128], strides = [1, 1]} : vector<8x512xf32> to vector<8x128xf32>
    %530 = arith.negf %529 : vector<8x128xf32>
    %531 = math.exp %530 : vector<8x128xf32>
    %cst_154 = arith.constant 1.000000e+00 : f32
    %532 = vector.broadcast %cst_154 : f32 to vector<8x128xf32>
    %533 = arith.addf %532, %531 : vector<8x128xf32>
    %534 = arith.divf %532, %533 : vector<8x128xf32>
    %535 = vector.extract_strided_slice %522 {offsets = [0, 256], sizes = [8, 128], strides = [1, 1]} : vector<8x512xf32> to vector<8x128xf32>
    %536 = math.tanh %535 : vector<8x128xf32>
    %537 = vector.extract_strided_slice %522 {offsets = [0, 384], sizes = [8, 128], strides = [1, 1]} : vector<8x512xf32> to vector<8x128xf32>
    %538 = arith.negf %537 : vector<8x128xf32>
    %539 = math.exp %538 : vector<8x128xf32>
    %cst_155 = arith.constant 1.000000e+00 : f32
    %540 = vector.broadcast %cst_155 : f32 to vector<8x128xf32>
    %541 = arith.addf %540, %539 : vector<8x128xf32>
    %542 = arith.divf %540, %541 : vector<8x128xf32>
    %543 = arith.mulf %534, %510 : vector<8x128xf32>
    %544 = arith.mulf %528, %536 : vector<8x128xf32>
    %545 = arith.addf %543, %544 : vector<8x128xf32>
    %546 = math.tanh %545 : vector<8x128xf32>
    %547 = arith.mulf %542, %546 : vector<8x128xf32>
    %c0_i32_156 = arith.constant 0 : i32
    %548 = arith.addi %c0_i32_156, %517 : i32
    %549 = tpu.assume_multiple %548, 8 : i32
    %550 = arith.index_cast %549 : i32 to index
    %c0_157 = arith.constant 0 : index
    %551 = vector.load %arg7[%550, %c0_157] : memref<64x128xf32, #tpu.memory_space<vmem>>, vector<8x128xf32>
    tpu.vector_store %arg7[%550, %c0_157], %547 {strides = array<i32>} : memref<64x128xf32, #tpu.memory_space<vmem>>, vector<8x128xf32>,
    %c7_i32_158 = arith.constant 7 : i32
    %c8_i32_159 = arith.constant 8 : i32
    %552 = arith.muli %c7_i32_158, %c8_i32_159 : i32
    %553 = tpu.assume_multiple %552, 8 : i32
    %554 = arith.index_cast %553 : i32 to index
    %c0_160 = arith.constant 0 : index
    %555 = vector.load %arg10[%554, %c0_160] : memref<64x512xf32, #tpu.memory_space<vmem>>, vector<8x512xf32>
    %cst_161 = arith.constant dense<0.000000e+00> : vector<8x512xf32>
    %556 = tpu.matmul %547, %298, %cst_161 {dimension_numbers = #tpu.dot_dimension_numbers<[1], [0], [0], [1], [0, 0, 1, 1], [], []>} : vector<8x128xf32>, vector<128x512xf32>, vector<8x512xf32> -> vector<8x512xf32>
    %557 = arith.addf %555, %556 : vector<8x512xf32>
    %558 = vector.extract_strided_slice %557 {offsets = [0, 0], sizes = [8, 128], strides = [1, 1]} : vector<8x512xf32> to vector<8x128xf32>
    %559 = arith.negf %558 : vector<8x128xf32>
    %560 = math.exp %559 : vector<8x128xf32>
    %cst_162 = arith.constant 1.000000e+00 : f32
    %561 = vector.broadcast %cst_162 : f32 to vector<8x128xf32>
    %562 = arith.addf %561, %560 : vector<8x128xf32>
    %563 = arith.divf %561, %562 : vector<8x128xf32>
    %564 = vector.extract_strided_slice %557 {offsets = [0, 128], sizes = [8, 128], strides = [1, 1]} : vector<8x512xf32> to vector<8x128xf32>
    %565 = arith.negf %564 : vector<8x128xf32>
    %566 = math.exp %565 : vector<8x128xf32>
    %cst_163 = arith.constant 1.000000e+00 : f32
    %567 = vector.broadcast %cst_163 : f32 to vector<8x128xf32>
    %568 = arith.addf %567, %566 : vector<8x128xf32>
    %569 = arith.divf %567, %568 : vector<8x128xf32>
    %570 = vector.extract_strided_slice %557 {offsets = [0, 256], sizes = [8, 128], strides = [1, 1]} : vector<8x512xf32> to vector<8x128xf32>
    %571 = math.tanh %570 : vector<8x128xf32>
    %572 = vector.extract_strided_slice %557 {offsets = [0, 384], sizes = [8, 128], strides = [1, 1]} : vector<8x512xf32> to vector<8x128xf32>
    %573 = arith.negf %572 : vector<8x128xf32>
    %574 = math.exp %573 : vector<8x128xf32>
    %cst_164 = arith.constant 1.000000e+00 : f32
    %575 = vector.broadcast %cst_164 : f32 to vector<8x128xf32>
    %576 = arith.addf %575, %574 : vector<8x128xf32>
    %577 = arith.divf %575, %576 : vector<8x128xf32>
    %578 = arith.mulf %569, %545 : vector<8x128xf32>
    %579 = arith.mulf %563, %571 : vector<8x128xf32>
    %580 = arith.addf %578, %579 : vector<8x128xf32>
    %581 = math.tanh %580 : vector<8x128xf32>
    %582 = arith.mulf %577, %581 : vector<8x128xf32>
    %c0_i32_165 = arith.constant 0 : i32
    %583 = arith.addi %c0_i32_165, %552 : i32
    %584 = tpu.assume_multiple %583, 8 : i32
    %585 = arith.index_cast %584 : i32 to index
    %c0_166 = arith.constant 0 : index
    %586 = vector.load %arg7[%585, %c0_166] : memref<64x128xf32, #tpu.memory_space<vmem>>, vector<8x128xf32>
    tpu.vector_store %arg7[%585, %c0_166], %582 {strides = array<i32>} : memref<64x128xf32, #tpu.memory_space<vmem>>, vector<8x128xf32>,
    %c8_i32_167 = arith.constant 8 : i32
    %c1 = arith.constant 1 : index
    %c0_168 = arith.constant 0 : index
    %c0_169 = arith.constant 0 : index
    %587 = vector.load %arg8[%c1, %c0_168, %c0_169] : memref<2x8x128xf32, #tpu.memory_space<vmem>>, vector<1x8x128xf32>
    %588 = vector.shape_cast %587 : vector<1x8x128xf32> to vector<8x128xf32>
    %589 = vector.shape_cast %582 : vector<8x128xf32> to vector<1x8x128xf32>
    tpu.vector_store %arg8[%c1, %c0_168, %c0_169], %589 {strides = array<i32>} : memref<2x8x128xf32, #tpu.memory_space<vmem>>, vector<1x8x128xf32>,
    %c1_170 = arith.constant 1 : index
    %c0_171 = arith.constant 0 : index
    %c0_172 = arith.constant 0 : index
    %590 = vector.load %arg9[%c1_170, %c0_171, %c0_172] : memref<2x8x128xf32, #tpu.memory_space<vmem>>, vector<1x8x128xf32>
    %591 = vector.shape_cast %590 : vector<1x8x128xf32> to vector<8x128xf32>
    %592 = vector.shape_cast %580 : vector<8x128xf32> to vector<1x8x128xf32>
    tpu.vector_store %arg9[%c1_170, %c0_171, %c0_172], %592 {strides = array<i32>} : memref<2x8x128xf32, #tpu.memory_space<vmem>>, vector<1x8x128xf32>,
    return
  }
}

</mosaic_0001>

<bundles_post_ra>
// kernel: tpu_custom_call.1
= control target key start
LH: loop header
LB: loop body
LE: loop exit
PB: predicated region body
PF: predicated region fallthrough
CT: control target
= control target key end

     0   :  { %15 = vsyncpa [#allocation6], 0  ;;  %s6016_s0 = inlined_call_operand.vmem [shape: f32[64,16], index: 0, kind: input, shape index: {}]   ;;  %s6017_s1 = inlined_call_operand.vmem [shape: f32[16,512], index: 1, kind: input, shape index: {}]   ;;  %s6018_s2 = inlined_call_operand.hbm [shape: f32[128,512], index: 2, kind: input, shape index: {}]   ;;  %s6019_s3 = inlined_call_operand.vmem [shape: f32[1,512], index: 3, kind: input, shape index: {}]   ;;  %s6020_s4 = inlined_call_operand.hbm [shape: f32[1,128,512], index: 4, kind: input, shape index: {}]   ;;  %s6021_s5 = inlined_call_operand.hbm [shape: f32[1,128,512], index: 5, kind: input, shape index: {}]   ;;  %s6022_s6 = inlined_call_operand.vmem [shape: f32[1,1,512], index: 6, kind: input, shape index: {}]   ;;  %s6023_s7 = inlined_call_operand.hbm [shape: f32[64,128], index: 7, kind: output, shape index: {0}]   ;;  %s6024_s8 = inlined_call_operand.hbm [shape: f32[2,8,128], index: 8, kind: output, shape index: {1}]   ;;  %s6025_s9 = inlined_call_operand.hbm [shape: f32[2,8,128], index: 9, kind: output, shape index: {2}]  }
   0x1   :  { %16 = vsyncpa [#allocation9], 0 }
   0x2   :  { %17 = vsyncpa [#allocation7], 0 }
   0x3   :  { %18 = vsyncpa [#allocation13], 0  ;;  %s42_s11 = sshll.u32 %s6020_s4, 4  ;;  %s3896_s12 = smov [#allocation8]   ;;  %s43_s11 = int_to_ptr.hbm [resolvable:$true] %s42_s11 }
   0x4   :  { %s44_s13 = sshll.u32 %s3896_s12, 4  ;;  %s27_s16 = sshll.u32 %s6018_s2, 4  ;;  %s45_s13 = int_to_ptr.vmem [resolvable:$true] %s44_s13  ;;  %s28_s16 = int_to_ptr.hbm [resolvable:$true] %s27_s16 }
   0x5   :  { %s3897_s17 = smov 512   ;;  %s3898_s18 = smov 32  }
   0x6   :  { %50 = dma.hbm_to_vmem [thread:$0]  %s43_s11, 8192, %s45_s13, [#allocation9], %s3897_s17, %s3897_s17, %s3898_s18  }
   0x7   :  { %s3899_s19 = smov [#allocation5]   ;;  %s55_s23 = sshll.u32 %s6021_s5, 4  ;;  %s56_s23 = int_to_ptr.hbm [resolvable:$true] %s55_s23 }
   0x8   :  { %s29_s20 = sshll.u32 %s3899_s19, 4  ;;  %s3900_s4 = smov [#allocation10]   ;;  %s30_s20 = int_to_ptr.vmem [resolvable:$true] %s29_s20 }
   0x9   :  { %35 = dma.hbm_to_vmem [thread:$0]  %s28_s16, 8192, %s30_s20, [#allocation6], %s3897_s17, %s3897_s17, %s3898_s18  }
   0xa   :  { %s57_s24 = sshll.u32 %s3900_s4, 4  ;;  %s58_s24 = int_to_ptr.vmem [resolvable:$true] %s57_s24 }
   0xb   :  { %63 = dma.hbm_to_vmem [thread:$0]  %s56_s23, 8192, %s58_s24, [#allocation9], %s3897_s17, %s3897_s17, %s3898_s18  }
   0xc   :  { %3888 = dma.done.wait [#allocation6], 8192  }
   0xd   :  { %3889 = vsyncadd [#allocation6], 4294959104 }
   0xe   :  { %3890 = dma.done.wait [#allocation9], 16384  }
   0xf   :  { %3891 = vsyncadd [#allocation9], 4294950912  ;;  %v82_v0 = vld [vmem:[%s6017_s1 + $0x20] sm:$0xff]  ;;  %v83_v1 = vld [vmem:[%s6017_s1 + $0x28] sm:$0xff]  ;;  %vm168_vm0 = vcmask 130048   ;;  %s3226_s14 = sshll.u32 %s6024_s8, 4  ;;  %s3227_s14 = int_to_ptr.hbm [resolvable:$true] %s3226_s14 }
  0x10   :  { %v84_v2 = vld [vmem:[%s6017_s1 + $0x30] sm:$0xff]  ;;  %207 = vmatpush.msra.mxu0 %v82_v0  ;;  %248 = vmatpush.msra.mxu1 %v83_v1  ;;  %v85_v3 = vld [vmem:[%s6017_s1 + $0x38] sm:$0xff]  ;;  %v78_v4 = vld [vmem:[%s6017_s1] sm:$0xff]  ;;  %s3903_s15 = smov [#allocation11]   ;;  %s3213_s19 = sshll.u32 %s6023_s7, 4  ;;  %s3214_s19 = int_to_ptr.hbm [resolvable:$true] %s3213_s19 }
  0x11   :  { %v79_v5 = vld [vmem:[%s6017_s1 + $0x8] sm:$0xff]  ;;  %289 = vmatpush.msra.mxu2 %v84_v2  ;;  %330 = vmatpush.msra.mxu3 %v85_v3  ;;  %v80_v6 = vld [vmem:[%s6017_s1 + $0x10] sm:$0xff]  ;;  %v81_v7 = vld [vmem:[%s6017_s1 + $0x18] sm:$0xff]  ;;  %s3211_s16 = sshll.u32 %s3903_s15, 4  ;;  %s3904_s1 = smov [#allocation14]   ;;  %s3212_s16 = int_to_ptr.vmem [resolvable:$true] %s3211_s16 }
  0x12   :  { %v151_v8 = vld [vmem:[%s6016_s0] sm:$0xff]  ;;  %208 = vmatpush.msra.mxu0 %v78_v4  ;;  %249 = vmatpush.msra.mxu1 %v79_v5  ;;  %v3995_v10 = vld [vmem:[#allocation5 + $0x1e8] sm:$0xff]  ;;  %v3999_v11 = vld [vmem:[#allocation5 + $0x1f8] sm:$0xff]  ;;  %s3237_s20 = sshll.u32 %s3904_s1, 4  ;;  %s3239_s23 = sshll.u32 %s6025_s9, 4  ;;  %s3238_s20 = int_to_ptr.vmem [resolvable:$true] %s3237_s20  ;;  %s3240_s23 = int_to_ptr.hbm [resolvable:$true] %s3239_s23 }
  0x13   :  { %290 = vmatpush.msra.mxu2 %v80_v6  ;;  %331 = vmatpush.msra.mxu3 %v81_v7  ;;  %v3993_v9 = vld [vmem:[#allocation5 + $0x1e0] sm:$0xff]  ;;  %v4005_v13 = vld [vmem:[#allocation5 + $0x1c8] sm:$0xff]  ;;  %v4009_v14 = vld [vmem:[#allocation5 + $0x1d8] sm:$0xff]  ;;  %s3905_s8 = smov 128   ;;  %s3906_s7 = smov 8  }
  0x14   :  { %3269 = vmatmul.msk.f32.vlgmr.msra.gmra.mxu0 %vm168_vm0, %v151_v8  ;;  %3277 = vmatmul.msk.f32.vlgmr.msra.gmra.mxu1 %vm168_vm0, %v151_v8  ;;  %v4003_v12 = vld [vmem:[#allocation5 + $0x1c0] sm:$0xff]  ;;  %v4011_v15 = vld [vmem:[#allocation5 + $0x1f0] sm:$0xff]  ;;  %v4016_v17 = vld [vmem:[#allocation5 + $0x1a8] sm:$0xff] }
  0x15   :  { %3285 = vmatmul.msk.f32.vlgmr.msra.gmra.mxu2 %vm168_vm0, %v151_v8  ;;  %3293 = vmatmul.msk.f32.vlgmr.msra.gmra.mxu3 %vm168_vm0, %v151_v8  ;;  %v4014_v16 = vld [vmem:[#allocation5 + $0x1a0] sm:$0xff]  ;;  %v4019_v18 = vld [vmem:[#allocation5 + $0x1d0] sm:$0xff]  ;;  %v4023_v19 = vld [vmem:[#allocation5 + $0x1b8] sm:$0xff] }
  0x16   :  { %396 = vmatpush.msrb.mxu0 %v3993_v9  ;;  %416 = vmatpush.msrb.mxu1 %v3995_v10  ;;  %v152_v20 = vld [vmem:[%s6016_s0 + $0x8] sm:$0xff]  ;;  %v4030_v21 = vld [vmem:[#allocation5 + $0x1b0] sm:$0xff]  ;;  %v4034_v22 = vld [vmem:[#allocation5 + $0x180] sm:$0xff] }
  0x17   :  { %456 = vmatpush.msrb.mxu3 %v3999_v11  ;;  %436 = vmatpush.msrb.mxu2 %v4011_v15  ;;  %v4036_v23 = vld [vmem:[#allocation5 + $0x188] sm:$0xff]  ;;  %v4042_v24 = vld [vmem:[#allocation5 + $0x198] sm:$0xff]  ;;  %v4044_v25 = vld [vmem:[#allocation5 + $0x190] sm:$0xff] }
  0x18   :  { %397 = vmatpush.msrb.mxu0 %v4003_v12  ;;  %417 = vmatpush.msrb.mxu1 %v4005_v13  ;;  %v4048_v26 = vld [vmem:[#allocation5 + $0x160] sm:$0xff]  ;;  %v4050_v27 = vld [vmem:[#allocation5 + $0x168] sm:$0xff]  ;;  %v4054_v28 = vld [vmem:[#allocation5 + $0x178] sm:$0xff] }
  0x19   :  { %457 = vmatpush.msrb.mxu3 %v4009_v14  ;;  %437 = vmatpush.msrb.mxu2 %v4019_v18  ;;  %v4056_v29 = vld [vmem:[#allocation5 + $0x170] sm:$0xff]  ;;  %v4059_v30 = vld [vmem:[#allocation5 + $0x140] sm:$0xff]  ;;  %v4061_v31 = vld [vmem:[#allocation5 + $0x148] sm:$0xff] }
  0x1a   :  { %398 = vmatpush.msrb.mxu0 %v4014_v16  ;;  %418 = vmatpush.msrb.mxu1 %v4016_v17  ;;  %v4066_v32 = vld [vmem:[#allocation5 + $0x158] sm:$0xff]  ;;  %v4068_v33 = vld [vmem:[#allocation5 + $0x150] sm:$0xff]  ;;  %v4077_v35 = vld [vmem:[#allocation5 + $0x120] sm:$0xff] }
  0x1b   :  { %458 = vmatpush.msrb.mxu3 %v4023_v19  ;;  %438 = vmatpush.msrb.mxu2 %v4030_v21  ;;  %v153_v34 = vld [vmem:[%s6016_s0 + $0x10] sm:$0xff]  ;;  %v4079_v36 = vld [vmem:[#allocation5 + $0x128] sm:$0xff]  ;;  %v4085_v37 = vld [vmem:[#allocation5 + $0x138] sm:$0xff] }
  0x1c   :  { %3270 = vmatmul.msk.f32.gmra.mxu0 %vm168_vm0, %v152_v20  ;;  %3278 = vmatmul.msk.f32.gmra.mxu1 %vm168_vm0, %v152_v20  ;;  %v4087_v38 = vld [vmem:[#allocation5 + $0x130] sm:$0xff]  ;;  %v4091_v39 = vld [vmem:[#allocation5 + $0x100] sm:$0xff]  ;;  %v4093_v40 = vld [vmem:[#allocation5 + $0x108] sm:$0xff] }
  0x1d   :  { %3286 = vmatmul.msk.f32.gmra.mxu2 %vm168_vm0, %v152_v20  ;;  %3294 = vmatmul.msk.f32.gmra.mxu3 %vm168_vm0, %v152_v20  ;;  %v4097_v41 = vld [vmem:[#allocation5 + $0x118] sm:$0xff]  ;;  %v4099_v42 = vld [vmem:[#allocation5 + $0x110] sm:$0xff]  ;;  %v4102_v43 = vld [vmem:[#allocation5 + $0xe0] sm:$0xff] }
  0x1e   :  { %399 = vmatpush.msrb.mxu0 %v4034_v22  ;;  %419 = vmatpush.msrb.mxu1 %v4036_v23  ;;  %v4104_v44 = vld [vmem:[#allocation5 + $0xe8] sm:$0xff]  ;;  %v4109_v45 = vld [vmem:[#allocation5 + $0xf8] sm:$0xff]  ;;  %v4111_v46 = vld [vmem:[#allocation5 + $0xf0] sm:$0xff] }
  0x1f   :  { %459 = vmatpush.msrb.mxu3 %v4042_v24  ;;  %439 = vmatpush.msrb.mxu2 %v4044_v25  ;;  %v154_v47 = vld [vmem:[%s6016_s0 + $0x18] sm:$0xff]  ;;  %v4120_v48 = vld [vmem:[#allocation5 + $0xc0] sm:$0xff]  ;;  %v4122_v49 = vld [vmem:[#allocation5 + $0xc8] sm:$0xff] }
  0x20   :  { %400 = vmatpush.msrb.mxu0 %v4048_v26  ;;  %420 = vmatpush.msrb.mxu1 %v4050_v27  ;;  %v4128_v50 = vld [vmem:[#allocation5 + $0xd8] sm:$0xff]  ;;  %v4130_v51 = vld [vmem:[#allocation5 + $0xd0] sm:$0xff]  ;;  %v4134_v52 = vld [vmem:[#allocation5 + $0xa0] sm:$0xff] }
  0x21   :  { %460 = vmatpush.msrb.mxu3 %v4054_v28  ;;  %440 = vmatpush.msrb.mxu2 %v4056_v29  ;;  %6294 = vst [vmem:[#allocation19_spill] sm:$0xff] %v4128_v50  ;;  %v4136_v53 = vld [vmem:[#allocation5 + $0xa8] sm:$0xff]  ;;  %v4140_v54 = vld [vmem:[#allocation5 + $0xb8] sm:$0xff]  ;;  %v4142_v55 = vld [vmem:[#allocation5 + $0xb0] sm:$0xff] }
  0x22   :  { %401 = vmatpush.msrb.mxu0 %v4059_v30  ;;  %421 = vmatpush.msrb.mxu1 %v4061_v31  ;;  %6295 = vst [vmem:[#allocation20_spill] sm:$0xff] %v4130_v51  ;;  %v4145_v56 = vld [vmem:[#allocation5 + $0x80] sm:$0xff]  ;;  %v4147_v57 = vld [vmem:[#allocation5 + $0x88] sm:$0xff]  ;;  %v4152_v58 = vld [vmem:[#allocation5 + $0x98] sm:$0xff] }
  0x23   :  { %461 = vmatpush.msrb.mxu3 %v4066_v32  ;;  %441 = vmatpush.msrb.mxu2 %v4068_v33  ;;  %6296 = vst [vmem:[#allocation21_spill] sm:$0xff] %v4134_v52  ;;  %v4154_v59 = vld [vmem:[#allocation5 + $0x90] sm:$0xff]  ;;  %v155_v60 = vld [vmem:[%s6016_s0 + $0x20] sm:$0xff]  ;;  %v4165_v62 = vld [vmem:[#allocation5 + $0x68] sm:$0xff] }
  0x24   :  { %3271 = vmatmul.msk.f32.gmra.mxu0 %vm168_vm0, %v153_v34  ;;  %3279 = vmatmul.msk.f32.gmra.mxu1 %vm168_vm0, %v153_v34  ;;  %6297 = vst [vmem:[#allocation22_spill] sm:$0xff] %v4136_v53  ;;  %v4163_v61 = vld [vmem:[#allocation5 + $0x60] sm:$0xff]  ;;  %v4171_v63 = vld [vmem:[#allocation5 + $0x78] sm:$0xff]  ;;  %v4173_v0 = vld [vmem:[#allocation5 + $0x70] sm:$0xff] }
  0x25   :  { %3287 = vmatmul.msk.f32.gmra.mxu2 %vm168_vm0, %v153_v34  ;;  %3295 = vmatmul.msk.f32.gmra.mxu3 %vm168_vm0, %v153_v34  ;;  %6298 = vst [vmem:[#allocation23_spill] sm:$0xff] %v4140_v54  ;;  %v4177_v1 = vld [vmem:[#allocation5 + $0x40] sm:$0xff]  ;;  %v4179_v2 = vld [vmem:[#allocation5 + $0x48] sm:$0xff]  ;;  %v4183_v3 = vld [vmem:[#allocation5 + $0x58] sm:$0xff] }
  0x26   :  { %402 = vmatpush.msrb.mxu0 %v4077_v35  ;;  %422 = vmatpush.msrb.mxu1 %v4079_v36  ;;  %6299 = vst [vmem:[#allocation24_spill] sm:$0xff] %v4142_v55  ;;  %v4185_v4 = vld [vmem:[#allocation5 + $0x50] sm:$0xff]  ;;  %v4188_v5 = vld [vmem:[#allocation5 + $0x20] sm:$0xff]  ;;  %v4190_v6 = vld [vmem:[#allocation5 + $0x28] sm:$0xff] }
  0x27   :  { %462 = vmatpush.msrb.mxu3 %v4085_v37  ;;  %442 = vmatpush.msrb.mxu2 %v4087_v38  ;;  %6300 = vst [vmem:[#allocation25_spill] sm:$0xff] %v4145_v56  ;;  %v4195_v7 = vld [vmem:[#allocation5 + $0x30] sm:$0xff]  ;;  %v4197_v8 = vld [vmem:[#allocation5 + $0x38] sm:$0xff]  ;;  %v156_v20 = vld [vmem:[%s6016_s0 + $0x28] sm:$0xff] }
  0x28   :  { %403 = vmatpush.msrb.mxu0 %v4091_v39  ;;  %423 = vmatpush.msrb.mxu1 %v4093_v40  ;;  %6301 = vst [vmem:[#allocation26_spill] sm:$0xff] %v4147_v57  ;;  %v4206_v34 = vld [vmem:[#allocation5] sm:$0xff] }
  0x29   :  { %463 = vmatpush.msrb.mxu3 %v4097_v41  ;;  %443 = vmatpush.msrb.mxu2 %v4099_v42  ;;  %6302 = vst [vmem:[#allocation27_spill] sm:$0xff] %v4152_v58 }
  0x2a   :  { %404 = vmatpush.msrb.mxu0 %v4102_v43  ;;  %424 = vmatpush.msrb.mxu1 %v4104_v44  ;;  %6303 = vst [vmem:[#allocation28_spill] sm:$0xff] %v4154_v59 }
  0x2b   :  { %464 = vmatpush.msrb.mxu3 %v4109_v45  ;;  %444 = vmatpush.msrb.mxu2 %v4111_v46  ;;  %6304 = vst [vmem:[#allocation29_spill] sm:$0xff] %v4163_v61 }
  0x2c   :  { %3272 = vmatmul.msk.f32.gmra.mxu0 %vm168_vm0, %v154_v47  ;;  %3280 = vmatmul.msk.f32.gmra.mxu1 %vm168_vm0, %v154_v47  ;;  %6305 = vst [vmem:[#allocation30_spill] sm:$0xff] %v4165_v62 }
  0x2d   :  { %3288 = vmatmul.msk.f32.gmra.mxu2 %vm168_vm0, %v154_v47  ;;  %3296 = vmatmul.msk.f32.gmra.mxu3 %vm168_vm0, %v154_v47  ;;  %6306 = vst [vmem:[#allocation31_spill] sm:$0xff] %v4171_v63  ;;  %v4208_v47 = vld [vmem:[#allocation5 + $0x8] sm:$0xff] }
  0x2e   :  { %405 = vmatpush.msrb.mxu0 %v4120_v48  ;;  %425 = vmatpush.msrb.mxu1 %v4122_v49  ;;  %6307 = vst [vmem:[#allocation32_spill] sm:$0xff] %v4173_v0 }
  0x2f   :  { %465 = vmatpush.msrb.mxu3 %v4128_v50  ;;  %445 = vmatpush.msrb.mxu2 %v4130_v51  ;;  %6308 = vst [vmem:[#allocation33_spill] sm:$0xff] %v4177_v1 }
  0x30   :  { %406 = vmatpush.msrb.mxu0 %v4134_v52  ;;  %426 = vmatpush.msrb.mxu1 %v4136_v53  ;;  %6309 = vst [vmem:[#allocation34_spill] sm:$0xff] %v4179_v2 }
  0x31   :  { %466 = vmatpush.msrb.mxu3 %v4140_v54  ;;  %446 = vmatpush.msrb.mxu2 %v4142_v55  ;;  %6310 = vst [vmem:[#allocation35_spill] sm:$0xff] %v4183_v3 }
  0x32   :  { %407 = vmatpush.msrb.mxu0 %v4145_v56  ;;  %427 = vmatpush.msrb.mxu1 %v4147_v57  ;;  %6311 = vst [vmem:[#allocation36_spill] sm:$0xff] %v4185_v4 }
  0x33   :  { %467 = vmatpush.msrb.mxu3 %v4152_v58  ;;  %447 = vmatpush.msrb.mxu2 %v4154_v59  ;;  %6312 = vst [vmem:[#allocation37_spill] sm:$0xff] %v4188_v5 }
  0x34   :  { %3273 = vmatmul.msk.f32.gmra.mxu0 %vm168_vm0, %v155_v60  ;;  %3281 = vmatmul.msk.f32.gmra.mxu1 %vm168_vm0, %v155_v60  ;;  %6313 = vst [vmem:[#allocation38_spill] sm:$0xff] %v4190_v6 }
  0x35   :  { %3289 = vmatmul.msk.f32.gmra.mxu2 %vm168_vm0, %v155_v60  ;;  %3297 = vmatmul.msk.f32.gmra.mxu3 %vm168_vm0, %v155_v60  ;;  %6314 = vst [vmem:[#allocation39_spill] sm:$0xff] %v4195_v7  ;;  %v4214_v60 = vld [vmem:[#allocation5 + $0x10] sm:$0xff] }
  0x36   :  { %408 = vmatpush.msrb.mxu0 %v4163_v61  ;;  %428 = vmatpush.msrb.mxu1 %v4165_v62  ;;  %6315 = vst [vmem:[#allocation40_spill] sm:$0xff] %v4197_v8 }
  0x37   :  { %468 = vmatpush.msrb.mxu3 %v4171_v63  ;;  %448 = vmatpush.msrb.mxu2 %v4173_v0  ;;  %6316 = vst [vmem:[#allocation41_spill] sm:$0xff] %v4206_v34 }
  0x38   :  { %409 = vmatpush.msrb.mxu0 %v4177_v1  ;;  %429 = vmatpush.msrb.mxu1 %v4179_v2  ;;  %6317 = vst [vmem:[#allocation42_spill] sm:$0xff] %v4208_v47 }
  0x39   :  { %469 = vmatpush.msrb.mxu3 %v4183_v3  ;;  %449 = vmatpush.msrb.mxu2 %v4185_v4  ;;  %6318 = vst [vmem:[#allocation43_spill] sm:$0xff] %v4214_v60  ;;  %v4216_v3 = vld [vmem:[#allocation5 + $0x18] sm:$0xff] }
  0x3a   :  { %410 = vmatpush.msrb.mxu0 %v4188_v5  ;;  %430 = vmatpush.msrb.mxu1 %v4190_v6  ;;  %6319 = vst [vmem:[#allocation44_spill] sm:$0xff] %v4216_v3 }
  0x3b   :  { %450 = vmatpush.msrb.mxu2 %v4195_v7  ;;  %470 = vmatpush.msrb.mxu3 %v4197_v8  ;;  %v157_v8 = vld [vmem:[%s6016_s0 + $0x30] sm:$0xff] }
  0x3c   :  { %3274 = vmatmul.msk.f32.gmra.mxu0 %vm168_vm0, %v156_v20  ;;  %3282 = vmatmul.msk.f32.gmra.mxu1 %vm168_vm0, %v156_v20 }
  0x3d   :  { %3290 = vmatmul.msk.f32.gmra.mxu2 %vm168_vm0, %v156_v20  ;;  %3298 = vmatmul.msk.f32.gmra.mxu3 %vm168_vm0, %v156_v20  ;;  %v158_v20 = vld [vmem:[%s6016_s0 + $0x38] sm:$0xff] }
  0x3e   :  { %411 = vmatpush.msrb.mxu0 %v4206_v34  ;;  %431 = vmatpush.msrb.mxu1 %v4208_v47 }
  0x3f   :  { %451 = vmatpush.msrb.mxu2 %v4214_v60  ;;  %471 = vmatpush.msrb.mxu3 %v4216_v3 }
  0x40   :  { %551 = vmatpush.msra.mxu0 %v3993_v9  ;;  %571 = vmatpush.msra.mxu1 %v3995_v10 }
  0x41   :  { %591 = vmatpush.msra.mxu2 %v4011_v15  ;;  %611 = vmatpush.msra.mxu3 %v3999_v11 }
  0x42   :  { %552 = vmatpush.msra.mxu0 %v4003_v12  ;;  %572 = vmatpush.msra.mxu1 %v4005_v13 }
  0x43   :  { %592 = vmatpush.msra.mxu2 %v4019_v18  ;;  %612 = vmatpush.msra.mxu3 %v4009_v14 }
  0x44   :  { %3275 = vmatmul.msk.f32.gmra.mxu0 %vm168_vm0, %v157_v8  ;;  %3283 = vmatmul.msk.f32.gmra.mxu1 %vm168_vm0, %v157_v8 }
  0x45   :  { %3291 = vmatmul.msk.f32.gmra.mxu2 %vm168_vm0, %v157_v8  ;;  %3299 = vmatmul.msk.f32.gmra.mxu3 %vm168_vm0, %v157_v8  ;;  %v6030_v8 = vmov 0.0  }
  0x46   :  { %553 = vmatpush.msra.mxu0 %v4014_v16  ;;  %573 = vmatpush.msra.mxu1 %v4016_v17 }
  0x47   :  { %593 = vmatpush.msra.mxu2 %v4030_v21  ;;  %613 = vmatpush.msra.mxu3 %v4023_v19 }
  0x48   :  { %554 = vmatpush.msra.mxu0 %v4034_v22  ;;  %574 = vmatpush.msra.mxu1 %v4036_v23 }
  0x49   :  { %594 = vmatpush.msra.mxu2 %v4044_v25  ;;  %614 = vmatpush.msra.mxu3 %v4042_v24 }
  0x4a   :  { %555 = vmatpush.msra.mxu0 %v4048_v26  ;;  %575 = vmatpush.msra.mxu1 %v4050_v27 }
  0x4b   :  { %595 = vmatpush.msra.mxu2 %v4056_v29  ;;  %615 = vmatpush.msra.mxu3 %v4054_v28 }
  0x4c   :  { %3276 = vmatmul.msk.f32.gmra.mxu0 %vm168_vm0, %v158_v20  ;;  %3284 = vmatmul.msk.f32.gmra.mxu1 %vm168_vm0, %v158_v20 }
  0x4d   :  { %3292 = vmatmul.msk.f32.gmra.mxu2 %vm168_vm0, %v158_v20  ;;  %3300 = vmatmul.msk.f32.gmra.mxu3 %vm168_vm0, %v158_v20  ;;  %v6320_v20 = vld [vmem:[#allocation35_spill] sm:$0xff] }
  0x4e   :  { %556 = vmatpush.msra.mxu0 %v4059_v30  ;;  %576 = vmatpush.msra.mxu1 %v4061_v31 }
  0x4f   :  { %596 = vmatpush.msra.mxu2 %v4068_v33  ;;  %616 = vmatpush.msra.mxu3 %v4066_v32 }
  0x50   :  { %557 = vmatpush.msra.mxu0 %v4077_v35  ;;  %577 = vmatpush.msra.mxu1 %v4079_v36 }
  0x51   :  { %597 = vmatpush.msra.mxu2 %v4087_v38  ;;  %617 = vmatpush.msra.mxu3 %v4085_v37 }
  0x52   :  { %558 = vmatpush.msra.mxu0 %v4091_v39  ;;  %578 = vmatpush.msra.mxu1 %v4093_v40 }
  0x53   :  { %598 = vmatpush.msra.mxu2 %v4099_v42  ;;  %618 = vmatpush.msra.mxu3 %v4097_v41 }
  0x54   :  { %412 = vmatmul.f32.vlgmr.msrb.gmra.mxu0 %v6030_v8  ;;  %432 = vmatmul.f32.vlgmr.msrb.gmra.mxu1 %v6030_v8 }
  0x55   :  { %452 = vmatmul.f32.vlgmr.msrb.gmra.mxu2 %v6030_v8  ;;  %472 = vmatmul.f32.vlgmr.msrb.gmra.mxu3 %v6030_v8  ;;  %v6321_v8 = vld [vmem:[#allocation40_spill] sm:$0xff] }
  0x56   :  { %559 = vmatpush.msra.mxu0 %v4102_v43  ;;  %579 = vmatpush.msra.mxu1 %v4104_v44 }
  0x57   :  { %599 = vmatpush.msra.mxu2 %v4111_v46  ;;  %619 = vmatpush.msra.mxu3 %v4109_v45 }
  0x58   :  { %560 = vmatpush.msra.mxu0 %v4120_v48  ;;  %580 = vmatpush.msra.mxu1 %v4122_v49 }
  0x59   :  { %600 = vmatpush.msra.mxu2 %v4130_v51  ;;  %620 = vmatpush.msra.mxu3 %v4128_v50 }
  0x5a   :  { %561 = vmatpush.msra.mxu0 %v4134_v52  ;;  %581 = vmatpush.msra.mxu1 %v4136_v53 }
  0x5b   :  { %601 = vmatpush.msra.mxu2 %v4142_v55  ;;  %621 = vmatpush.msra.mxu3 %v4140_v54 }
  0x5c   :  { %562 = vmatpush.msra.mxu0 %v4145_v56  ;;  %582 = vmatpush.msra.mxu1 %v4147_v57 }
  0x5d   :  { %602 = vmatpush.msra.mxu2 %v4154_v59  ;;  %622 = vmatpush.msra.mxu3 %v4152_v58 }
  0x5e   :  { %563 = vmatpush.msra.mxu0 %v4163_v61  ;;  %583 = vmatpush.msra.mxu1 %v4165_v62 }
  0x5f   :  { %603 = vmatpush.msra.mxu2 %v4173_v0  ;;  %623 = vmatpush.msra.mxu3 %v4171_v63 }
  0x60   :  { %564 = vmatpush.msra.mxu0 %v4177_v1  ;;  %584 = vmatpush.msra.mxu1 %v4179_v2 }
  0x61   :  { %604 = vmatpush.msra.mxu2 %v4185_v4  ;;  %624 = vmatpush.msra.mxu3 %v6320_v20 }
  0x62   :  { %565 = vmatpush.msra.mxu0 %v4188_v5  ;;  %585 = vmatpush.msra.mxu1 %v4190_v6 }
  0x63   :  { %605 = vmatpush.msra.mxu2 %v4195_v7  ;;  %625 = vmatpush.msra.mxu3 %v6321_v8 }
  0x64   :  { %566 = vmatpush.msra.mxu0 %v4206_v34  ;;  %586 = vmatpush.msra.mxu1 %v4208_v47 }
  0x65   :  { %606 = vmatpush.msra.mxu2 %v4214_v60  ;;  %626 = vmatpush.msra.mxu3 %v4216_v3 }
  0x66   :  { %707 = vmatpush.msrb.mxu0 %v3993_v9  ;;  %727 = vmatpush.msrb.mxu1 %v3995_v10 }
  0x67   :  { %747 = vmatpush.msrb.mxu2 %v4011_v15  ;;  %767 = vmatpush.msrb.mxu3 %v3999_v11 }
  0x68   :  { %708 = vmatpush.msrb.mxu0 %v4003_v12  ;;  %728 = vmatpush.msrb.mxu1 %v4005_v13 }
  0x69   :  { %748 = vmatpush.msrb.mxu2 %v4019_v18  ;;  %768 = vmatpush.msrb.mxu3 %v4009_v14 }
  0x6a   :  { %709 = vmatpush.msrb.mxu0 %v4014_v16  ;;  %729 = vmatpush.msrb.mxu1 %v4016_v17 }
  0x6b   :  { %749 = vmatpush.msrb.mxu2 %v4030_v21  ;;  %769 = vmatpush.msrb.mxu3 %v4023_v19 }
  0x6c   :  { %710 = vmatpush.msrb.mxu0 %v4034_v22  ;;  %730 = vmatpush.msrb.mxu1 %v4036_v23 }
  0x6d   :  { %750 = vmatpush.msrb.mxu2 %v4044_v25  ;;  %770 = vmatpush.msrb.mxu3 %v4042_v24 }
  0x6e   :  { %711 = vmatpush.msrb.mxu0 %v4048_v26  ;;  %731 = vmatpush.msrb.mxu1 %v4050_v27 }
  0x6f   :  { %751 = vmatpush.msrb.mxu2 %v4056_v29  ;;  %771 = vmatpush.msrb.mxu3 %v4054_v28 }
  0x70   :  { %712 = vmatpush.msrb.mxu0 %v4059_v30  ;;  %732 = vmatpush.msrb.mxu1 %v4061_v31 }
  0x71   :  { %752 = vmatpush.msrb.mxu2 %v4068_v33  ;;  %772 = vmatpush.msrb.mxu3 %v4066_v32 }
  0x72   :  { %713 = vmatpush.msrb.mxu0 %v4077_v35  ;;  %733 = vmatpush.msrb.mxu1 %v4079_v36 }
  0x73   :  { %753 = vmatpush.msrb.mxu2 %v4087_v38  ;;  %773 = vmatpush.msrb.mxu3 %v4085_v37 }
  0x74   :  { %714 = vmatpush.msrb.mxu0 %v4091_v39  ;;  %734 = vmatpush.msrb.mxu1 %v4093_v40 }
  0x75   :  { %754 = vmatpush.msrb.mxu2 %v4099_v42  ;;  %774 = vmatpush.msrb.mxu3 %v4097_v41 }
  0x76   :  { %715 = vmatpush.msrb.mxu0 %v4102_v43  ;;  %735 = vmatpush.msrb.mxu1 %v4104_v44 }
  0x77   :  { %755 = vmatpush.msrb.mxu2 %v4111_v46  ;;  %775 = vmatpush.msrb.mxu3 %v4109_v45 }
  0x78   :  { %716 = vmatpush.msrb.mxu0 %v4120_v48  ;;  %736 = vmatpush.msrb.mxu1 %v4122_v49 }
  0x79   :  { %756 = vmatpush.msrb.mxu2 %v4130_v51  ;;  %776 = vmatpush.msrb.mxu3 %v4128_v50 }
  0x7a   :  { %717 = vmatpush.msrb.mxu0 %v4134_v52  ;;  %737 = vmatpush.msrb.mxu1 %v4136_v53 }
  0x7b   :  { %757 = vmatpush.msrb.mxu2 %v4142_v55  ;;  %777 = vmatpush.msrb.mxu3 %v4140_v54 }
  0x7c   :  { %718 = vmatpush.msrb.mxu0 %v4145_v56  ;;  %738 = vmatpush.msrb.mxu1 %v4147_v57 }
  0x7d   :  { %758 = vmatpush.msrb.mxu2 %v4154_v59  ;;  %778 = vmatpush.msrb.mxu3 %v4152_v58 }
  0x7e   :  { %719 = vmatpush.msrb.mxu0 %v4163_v61  ;;  %739 = vmatpush.msrb.mxu1 %v4165_v62 }
  0x7f   :  { %759 = vmatpush.msrb.mxu2 %v4173_v0  ;;  %779 = vmatpush.msrb.mxu3 %v4171_v63 }
  0x80   :  { %720 = vmatpush.msrb.mxu0 %v4177_v1  ;;  %740 = vmatpush.msrb.mxu1 %v4179_v2 }
  0x81   :  { %760 = vmatpush.msrb.mxu2 %v4185_v4  ;;  %780 = vmatpush.msrb.mxu3 %v6320_v20 }
  0x82   :  { %721 = vmatpush.msrb.mxu0 %v4188_v5  ;;  %741 = vmatpush.msrb.mxu1 %v4190_v6 }
  0x83   :  { %761 = vmatpush.msrb.mxu2 %v4195_v7  ;;  %781 = vmatpush.msrb.mxu3 %v6321_v8 }
  0x84   :  { %722 = vmatpush.msrb.mxu0 %v4206_v34  ;;  %742 = vmatpush.msrb.mxu1 %v4208_v47 }
  0x85   :  { %762 = vmatpush.msrb.mxu2 %v4214_v60  ;;  %782 = vmatpush.msrb.mxu3 %v4216_v3 }
  0x91   :  { %v210_v2 = vpop.f32.mrf.mxu0  ;;  %v251_v4 = vpop.f32.mrf.mxu1 }
  0x98   :  { %v292_v1 = vpop.f32.mrf.mxu2  ;;  %v333_v20 = vpop.f32.mrf.mxu3 }
  0x99   :  { %v4370_v63 = vpop.f32.mrf.mxu0  ;;  %v4372_v5 = vpop.f32.mrf.mxu1 }
  0x9a   :  { %6322 = vst [vmem:[#allocation45_spill] sm:$0xff] %v4370_v63 }
  0x9b   :  { %6323 = vst [vmem:[#allocation46_spill] sm:$0xff] %v4372_v5 }
  0xa0   :  { %v4374_v6 = vpop.f32.mrf.mxu2  ;;  %v4376_v7 = vpop.f32.mrf.mxu3 }
  0xa1   :  { %6324 = vst [vmem:[#allocation47_spill] sm:$0xff] %v4374_v6  ;;  %v4378_v8 = vpop.f32.mrf.mxu0  ;;  %v4380_v34 = vpop.f32.mrf.mxu1 }
  0xa2   :  { %6325 = vst [vmem:[#allocation48_spill] sm:$0xff] %v4376_v7 }
  0xa3   :  { %6326 = vst [vmem:[#allocation49_spill] sm:$0xff] %v4378_v8 }
  0xa4   :  { %6327 = vst [vmem:[#allocation50_spill] sm:$0xff] %v4380_v34 }
  0xa8   :  { %v4382_v47 = vpop.f32.mrf.mxu2  ;;  %v4384_v60 = vpop.f32.mrf.mxu3 }
  0xa9   :  { %6328 = vst [vmem:[#allocation51_spill] sm:$0xff] %v4382_v47  ;;  %v4386_v3 = vpop.f32.mrf.mxu0  ;;  %v4388_v0 = vpop.f32.mrf.mxu1 }
  0xaa   :  { %6329 = vst [vmem:[#allocation52_spill] sm:$0xff] %v4384_v60 }
  0xab   :  { %6330 = vst [vmem:[#allocation53_spill] sm:$0xff] %v4386_v3 }
  0xac   :  { %6331 = vst [vmem:[#allocation54_spill] sm:$0xff] %v4388_v0 }
  0xb0   :  { %v4390_v62 = vpop.f32.mrf.mxu2  ;;  %v4392_v63 = vpop.f32.mrf.mxu3 }
  0xb1   :  { %6332 = vst [vmem:[#allocation55_spill] sm:$0xff] %v4390_v62  ;;  %v4394_v5 = vpop.f32.mrf.mxu0  ;;  %v4396_v6 = vpop.f32.mrf.mxu1 }
  0xb2   :  { %6333 = vst [vmem:[#allocation56_spill] sm:$0xff] %v4392_v63 }
  0xb3   :  { %6334 = vst [vmem:[#allocation57_spill] sm:$0xff] %v4394_v5 }
  0xb4   :  { %6335 = vst [vmem:[#allocation58_spill] sm:$0xff] %v4396_v6 }
  0xb8   :  { %v4398_v7 = vpop.f32.mrf.mxu3  ;;  %v4404_v47 = vpop.f32.mrf.mxu2 }
  0xb9   :  { %6336 = vst [vmem:[#allocation59_spill] sm:$0xff] %v4398_v7  ;;  %v4400_v8 = vpop.f32.mrf.mxu0  ;;  %v4402_v34 = vpop.f32.mrf.mxu1  ;;  %v150_v7 = vld [vmem:[%s6019_s3] sm:$0xf] }
  0xba   :  { %6337 = vst [vmem:[#allocation60_spill] sm:$0xff] %v4400_v8  ;;  %v4433_v59 = vperm.slane %v150_v7, 3 }
  0xbb   :  { %6338 = vst [vmem:[#allocation61_spill] sm:$0xff] %v4402_v34  ;;  %v4423_v34 = vperm.slane %v150_v7, 0 }
  0xbc   :  { %6339 = vst [vmem:[#allocation62_spill] sm:$0xff] %v4404_v47  ;;  %v4425_v47 = vperm.slane %v150_v7, 1  ;;  %v334_v57 = vadd.f32 %v333_v20, %v4433_v59 }
  0xbd   :  { %6347 = vst [vmem:[#allocation70_spill] sm:$0xff] %v4423_v34 }
  0xbe   :  { %6348 = vst [vmem:[#allocation71_spill] sm:$0xff] %v4425_v47 }
  0xbf   :  { %6351 = vst [vmem:[#allocation74_spill] sm:$0xff] %v4433_v59 }
  0xc0   :  { %v4406_v60 = vpop.f32.mrf.mxu3  ;;  %v4412_v62 = vpop.f32.mrf.mxu2 }
  0xc1   :  { %6340 = vst [vmem:[#allocation63_spill] sm:$0xff] %v4406_v60  ;;  %v4408_v3 = vpop.f32.mrf.mxu0  ;;  %v4410_v0 = vpop.f32.mrf.mxu1 }
  0xc2   :  { %6341 = vst [vmem:[#allocation64_spill] sm:$0xff] %v4408_v3  ;;  %v252_v3 = vadd.f32 %v251_v4, %v4425_v47 }
  0xc3   :  { %6342 = vst [vmem:[#allocation65_spill] sm:$0xff] %v4410_v0  ;;  %v211_v0 = vadd.f32 %v210_v2, %v4423_v34 }
  0xc4   :  { %6343 = vst [vmem:[#allocation66_spill] sm:$0xff] %v4412_v62 }
  0xc8   :  { %v4414_v63 = vpop.f32.mrf.mxu3  ;;  %v4427_v60 = vpop.f32.mrf.mxu2 }
  0xc9   :  { %6344 = vst [vmem:[#allocation67_spill] sm:$0xff] %v4414_v63  ;;  %v4419_v6 = vpop.f32.mrf.mxu0  ;;  %v4421_v8 = vpop.f32.mrf.mxu1 }
  0xca   :  { %6345 = vst [vmem:[#allocation68_spill] sm:$0xff] %v4419_v6 }
  0xcb   :  { %6346 = vst [vmem:[#allocation69_spill] sm:$0xff] %v4421_v8 }
  0xcc   :  { %6349 = vst [vmem:[#allocation72_spill] sm:$0xff] %v4427_v60 }
  0xd0   :  { %v4431_v62 = vpop.f32.mrf.mxu3  ;;  %v4436_v56 = vpop.f32.mrf.mxu2 }
  0xd1   :  { %6350 = vst [vmem:[#allocation73_spill] sm:$0xff] %v4431_v62  ;;  %v413_v63 = vpop.f32.mrf.mxu0  ;;  %v433_v5 = vpop.f32.mrf.mxu1 }
  0xd2   :  { %v476_v61 = vadd.f32 %v413_v63, %v211_v0  ;;  %v477_v58 = vadd.f32 %v433_v5, %v252_v3  ;;  %6352 = vst [vmem:[#allocation75_spill] sm:$0xff] %v4436_v56  ;;  %v4438_v63 = vperm.slane %v150_v7, 2 }
  0xd4   :  { %v3301_v6 = vmul.f32 -1.442695, %v476_v61  ;;  %v3302_v8 = vmul.f32 -1.442695, %v477_v58  ;;  %6353 = vst [vmem:[#allocation76_spill] sm:$0xff] %v4438_v63  ;;  %v293_v0 = vadd.f32 %v292_v1, %v4438_v63 }
  0xd6   :  { %3360 = vpow2.f32 %v3301_v6 }
  0xd7   :  { %3362 = vpow2.f32 %v3302_v8 }
  0xd8   :  { %v473_v60 = vpop.f32.mrf.mxu3  ;;  %v453_v61 = vpop.f32.mrf.mxu2 }
  0xd9   :  { %v479_v2 = vadd.f32 %v473_v60, %v334_v57  ;;  %v478_v6 = vadd.f32 %v453_v61, %v293_v0 }
  0xdb   :  { %v3303_v34 = vmul.f32 -1.442695, %v479_v2 }
  0xdc   :  { %v3361_v4 = vpop.eup %3360 }
  0xdd   :  { %v3363_v47 = vpop.eup %3362  ;;  %v483_v62 = vadd.f32 1.0, %v3361_v4  ;;  %3364 = vpow2.f32 %v3303_v34 }
  0xde   :  { %v502_v54 = vadd.f32 1.0, %v3363_v47 }
  0xdf   :  { %3366 = vrcp.f32 %v483_v62  ;;  %v495_v4 = vand.u32 2147483648, %v483_v62  ;;  %v493_v47 = vand.u32 2147483647, %v483_v62  ;;  %vm489_vm3 = vweird.f32 %v483_v62 }
  0xe0   :  { %3368 = vrcp.f32 %v502_v54  ;;  %v514_v34 = vand.u32 2147483648, %v502_v54  ;;  %v512_v59 = vand.u32 2147483647, %v502_v54  ;;  %vm508_vm4 = vweird.f32 %v502_v54 }
  0xe1   :  { %v496_v61 = vor.u32 1.1754944e-38, %v495_v4  ;;  %vm494_vm6 = vcmp.eq.f32.partialorder %v493_v47, 8.507059e+37 }
  0xe2   :  { %v515_v63 = vor.u32 1.1754944e-38, %v514_v34  ;;  %vm513_vm8 = vcmp.eq.f32.partialorder %v512_v59, 8.507059e+37 }
  0xe3   :  { %v3365_v58 = vpop.eup %3364 }
  0xe4   :  { %v522_v3 = vadd.f32 1.0, %v3365_v58 }
  0xe5   :  { %v3367_v5 = vpop.eup %3366 }
  0xe6   :  { %v3369_v8 = vpop.eup %3368  ;;  %v485_v20 = vmul.f32 %v3367_v5, %v483_v62  ;;  %3370 = vrcp.f32 %v522_v3  ;;  %vm490_vm1 = vweird.f32 %v3367_v5  ;;  %vm528_vm10 = vweird.f32 %v522_v3 }
  0xe7   :  { %v504_v57 = vmul.f32 %v3369_v8, %v502_v54  ;;  %3372 = vtanh.f32 %v478_v6  ;;  %vm509_vm2 = vweird.f32 %v3369_v8  ;;  %vm491_vm5 = vmor %vm489_vm3, %vm490_vm1  ;;  %v532_v62 = vand.u32 2147483647, %v522_v3 }
  0xe8   :  { %v486_v60 = vsub.f32 1.0, %v485_v20  ;;  %vm510_vm7 = vmor %vm508_vm4, %vm509_vm2 }
  0xe9   :  { %v505_v2 = vsub.f32 1.0, %v504_v57  ;;  %vm533_vm12 = vcmp.eq.f32.partialorder %v532_v62, 8.507059e+37 }
  0xea   :  { %v487_v7 = vmul.f32 %v3367_v5, %v486_v60 }
  0xeb   :  { %v506_v56 = vmul.f32 %v3369_v8, %v505_v2 }
  0xec   :  { %v3371_v55 = vpop.eup %3370  ;;  %v488_v1 = vadd.f32 %v3367_v5, %v487_v7 }
  0xed   :  { %v507_v58 = vadd.f32 %v3369_v8, %v506_v56  ;;  %v524_v0 = vmul.f32 %v3371_v55, %v522_v3  ;;  %v3373_v6 = vpop.eup %3372  ;;  %vm529_vm9 = vweird.f32 %v3371_v55  ;;  %v534_v56 = vand.u32 2147483648, %v522_v3 }
  0xee   :  { %v492_v20 = vsel %vm491_vm5, %v3367_v5, %v488_v1  ;;  %vm530_vm11 = vmor %vm528_vm10, %vm529_vm9 }
  0xef   :  { %v497_v57 = vsel %vm494_vm6, %v496_v61, %v492_v20  ;;  %v511_v60 = vsel %vm510_vm7, %v3369_v8, %v507_v58  ;;  %v525_v53 = vsub.f32 1.0, %v524_v0  ;;  %v535_v4 = vor.u32 1.1754944e-38, %v534_v56  ;;  %v6387_v20 = vld [vmem:[#allocation76_spill] sm:$0xff] }
  0xf0   :  { %v516_v2 = vsel %vm513_vm8, %v515_v63, %v511_v60  ;;  %v539_v52 = vmul.f32 %v3373_v6, %v497_v57  ;;  %v6388_v6 = vld [vmem:[#allocation47_spill] sm:$0xff] }
  0xf1   :  { %v538_v50 = vmul.f32 0.0, %v516_v2  ;;  %v526_v51 = vmul.f32 %v3371_v55, %v525_v53  ;;  %v296_v57 = vadd.f32 %v6388_v6, %v6387_v20 }
  0xf3   :  { %v4441_v7 = vadd.f32 %v539_v52, %v538_v50  ;;  %v527_v54 = vadd.f32 %v3371_v55, %v526_v51  ;;  %v6385_v50 = vld [vmem:[#allocation74_spill] sm:$0xff]  ;;  %v6386_v51 = vld [vmem:[#allocation48_spill] sm:$0xff] }
  0xf4   :  { %v337_v52 = vadd.f32 %v6386_v51, %v6385_v50 }
  0xf5   :  { %3374 = vtanh.f32 %v4441_v7  ;;  %v531_v5 = vsel %vm530_vm11, %v3371_v55, %v527_v54 }
  0xf6   :  { %v536_v59 = vsel %vm533_vm12, %v535_v4, %v531_v5 }
  0xfb   :  { %v3375_v8 = vpop.eup %3374 }
  0xfc   :  { %v4444_v34 = vmul.f32 %v3375_v8, %v536_v59 }
  0xfe   :  { %6354 = vst [vmem:[#allocation77_spill] sm:$0xff] %v4444_v34  ;;  %567 = vmatmul.f32.vlgmr.msra.gmra.mxu0 %v4444_v34  ;;  %587 = vmatmul.f32.vlgmr.msra.gmra.mxu1 %v4444_v34 }
  0xff   :  { %607 = vmatmul.f32.vlgmr.msra.gmra.mxu2 %v4444_v34  ;;  %627 = vmatmul.f32.vlgmr.msra.gmra.mxu3 %v4444_v34  ;;  %v4628_v34 = vld [vmem:[#allocation5 + $0xe0] sm:$0xff] }
 0x100   :  { %863 = vmatpush.msra.mxu0 %v3993_v9  ;;  %883 = vmatpush.msra.mxu1 %v3995_v10  ;;  %v6355_v9 = vld [vmem:[#allocation20_spill] sm:$0xff]  ;;  %v6356_v10 = vld [vmem:[#allocation19_spill] sm:$0xff] }
 0x101   :  { %903 = vmatpush.msra.mxu2 %v4011_v15  ;;  %923 = vmatpush.msra.mxu3 %v3999_v11  ;;  %v6357_v11 = vld [vmem:[#allocation21_spill] sm:$0xff] }
 0x102   :  { %864 = vmatpush.msra.mxu0 %v4003_v12  ;;  %884 = vmatpush.msra.mxu1 %v4005_v13  ;;  %v6358_v12 = vld [vmem:[#allocation22_spill] sm:$0xff]  ;;  %v6359_v13 = vld [vmem:[#allocation24_spill] sm:$0xff]  ;;  %v6361_v15 = vld [vmem:[#allocation25_spill] sm:$0xff] }
 0x103   :  { %904 = vmatpush.msra.mxu2 %v4019_v18  ;;  %924 = vmatpush.msra.mxu3 %v4009_v14  ;;  %v6360_v14 = vld [vmem:[#allocation23_spill] sm:$0xff] }
 0x104   :  { %865 = vmatpush.msra.mxu0 %v4014_v16  ;;  %885 = vmatpush.msra.mxu1 %v4016_v17  ;;  %v6362_v16 = vld [vmem:[#allocation26_spill] sm:$0xff]  ;;  %v6363_v17 = vld [vmem:[#allocation28_spill] sm:$0xff]  ;;  %v6364_v18 = vld [vmem:[#allocation27_spill] sm:$0xff] }
 0x105   :  { %905 = vmatpush.msra.mxu2 %v4030_v21  ;;  %925 = vmatpush.msra.mxu3 %v4023_v19  ;;  %v6365_v19 = vld [vmem:[#allocation29_spill] sm:$0xff]  ;;  %v6366_v21 = vld [vmem:[#allocation30_spill] sm:$0xff] }
 0x106   :  { %866 = vmatpush.msra.mxu0 %v4034_v22  ;;  %886 = vmatpush.msra.mxu1 %v4036_v23  ;;  %v6367_v22 = vld [vmem:[#allocation32_spill] sm:$0xff]  ;;  %v6368_v23 = vld [vmem:[#allocation31_spill] sm:$0xff] }
 0x107   :  { %906 = vmatpush.msra.mxu2 %v4044_v25  ;;  %926 = vmatpush.msra.mxu3 %v4042_v24  ;;  %v6369_v24 = vld [vmem:[#allocation33_spill] sm:$0xff]  ;;  %v6370_v25 = vld [vmem:[#allocation34_spill] sm:$0xff] }
 0x108   :  { %867 = vmatpush.msra.mxu0 %v4048_v26  ;;  %887 = vmatpush.msra.mxu1 %v4050_v27  ;;  %v6371_v26 = vld [vmem:[#allocation36_spill] sm:$0xff]  ;;  %v6372_v27 = vld [vmem:[#allocation35_spill] sm:$0xff] }
 0x109   :  { %907 = vmatpush.msra.mxu2 %v4056_v29  ;;  %927 = vmatpush.msra.mxu3 %v4054_v28  ;;  %v6373_v28 = vld [vmem:[#allocation37_spill] sm:$0xff]  ;;  %v6374_v29 = vld [vmem:[#allocation38_spill] sm:$0xff] }
 0x10a   :  { %868 = vmatpush.msra.mxu0 %v4059_v30  ;;  %888 = vmatpush.msra.mxu1 %v4061_v31  ;;  %v6375_v30 = vld [vmem:[#allocation39_spill] sm:$0xff]  ;;  %v6376_v31 = vld [vmem:[#allocation40_spill] sm:$0xff] }
 0x10b   :  { %908 = vmatpush.msra.mxu2 %v4068_v33  ;;  %928 = vmatpush.msra.mxu3 %v4066_v32  ;;  %v6377_v32 = vld [vmem:[#allocation41_spill] sm:$0xff]  ;;  %v6378_v33 = vld [vmem:[#allocation42_spill] sm:$0xff] }
 0x10c   :  { %869 = vmatpush.msra.mxu0 %v4077_v35  ;;  %889 = vmatpush.msra.mxu1 %v4079_v36  ;;  %v6379_v35 = vld [vmem:[#allocation43_spill] sm:$0xff]  ;;  %v6380_v36 = vld [vmem:[#allocation44_spill] sm:$0xff] }
 0x10d   :  { %909 = vmatpush.msra.mxu2 %v4087_v38  ;;  %929 = vmatpush.msra.mxu3 %v4085_v37  ;;  %v6381_v37 = vld [vmem:[#allocation70_spill] sm:$0xff]  ;;  %v6382_v38 = vld [vmem:[#allocation45_spill] sm:$0xff] }
 0x10e   :  { %870 = vmatpush.msra.mxu0 %v4091_v39  ;;  %890 = vmatpush.msra.mxu1 %v4093_v40  ;;  %v214_v39 = vadd.f32 %v6382_v38, %v6381_v37  ;;  %v6383_v40 = vld [vmem:[#allocation71_spill] sm:$0xff] }
 0x10f   :  { %910 = vmatpush.msra.mxu2 %v4099_v42  ;;  %930 = vmatpush.msra.mxu3 %v4097_v41  ;;  %v6384_v41 = vld [vmem:[#allocation46_spill] sm:$0xff] }
 0x110   :  { %871 = vmatpush.msra.mxu0 %v4102_v43  ;;  %891 = vmatpush.msra.mxu1 %v4104_v44  ;;  %v255_v42 = vadd.f32 %v6384_v41, %v6383_v40 }
 0x111   :  { %911 = vmatpush.msra.mxu2 %v4111_v46  ;;  %931 = vmatpush.msra.mxu3 %v4109_v45 }
 0x112   :  { %872 = vmatpush.msra.mxu0 %v4120_v48  ;;  %892 = vmatpush.msra.mxu1 %v4122_v49 }
 0x113   :  { %912 = vmatpush.msra.mxu2 %v6355_v9  ;;  %932 = vmatpush.msra.mxu3 %v6356_v10 }
 0x114   :  { %873 = vmatpush.msra.mxu0 %v6357_v11  ;;  %893 = vmatpush.msra.mxu1 %v6358_v12 }
 0x115   :  { %913 = vmatpush.msra.mxu2 %v6359_v13  ;;  %933 = vmatpush.msra.mxu3 %v6360_v14 }
 0x116   :  { %874 = vmatpush.msra.mxu0 %v6361_v15  ;;  %894 = vmatpush.msra.mxu1 %v6362_v16 }
 0x117   :  { %914 = vmatpush.msra.mxu2 %v6363_v17  ;;  %934 = vmatpush.msra.mxu3 %v6364_v18 }
 0x118   :  { %875 = vmatpush.msra.mxu0 %v6365_v19  ;;  %895 = vmatpush.msra.mxu1 %v6366_v21 }
 0x119   :  { %915 = vmatpush.msra.mxu2 %v6367_v22  ;;  %935 = vmatpush.msra.mxu3 %v6368_v23 }
 0x11a   :  { %876 = vmatpush.msra.mxu0 %v6369_v24  ;;  %896 = vmatpush.msra.mxu1 %v6370_v25 }
 0x11b   :  { %916 = vmatpush.msra.mxu2 %v6371_v26  ;;  %936 = vmatpush.msra.mxu3 %v6372_v27 }
 0x11c   :  { %877 = vmatpush.msra.mxu0 %v6373_v28  ;;  %897 = vmatpush.msra.mxu1 %v6374_v29 }
 0x11d   :  { %917 = vmatpush.msra.mxu2 %v6375_v30  ;;  %937 = vmatpush.msra.mxu3 %v6376_v31 }
 0x11e   :  { %878 = vmatpush.msra.mxu0 %v6377_v32  ;;  %898 = vmatpush.msra.mxu1 %v6378_v33 }
 0x11f   :  { %918 = vmatpush.msra.mxu2 %v6379_v35  ;;  %938 = vmatpush.msra.mxu3 %v6380_v36 }
 0x17b   :  { %v568_v43 = vpop.f32.mrf.mxu0  ;;  %v588_v44 = vpop.f32.mrf.mxu1 }
 0x17c   :  { %v631_v45 = vadd.f32 %v568_v43, %v214_v39  ;;  %v632_v46 = vadd.f32 %v588_v44, %v255_v42 }
 0x17e   :  { %v3304_v48 = vmul.f32 -1.442695, %v631_v45  ;;  %v3305_v49 = vmul.f32 -1.442695, %v632_v46 }
 0x180   :  { %3376 = vpow2.f32 %v3304_v48 }
 0x181   :  { %3378 = vpow2.f32 %v3305_v49 }
 0x182   :  { %v628_v53 = vpop.f32.mrf.mxu3  ;;  %v608_v58 = vpop.f32.mrf.mxu2 }
 0x183   :  { %v634_v55 = vadd.f32 %v628_v53, %v337_v52  ;;  %v633_v54 = vadd.f32 %v608_v58, %v296_v57 }
 0x185   :  { %v3306_v63 = vmul.f32 -1.442695, %v634_v55 }
 0x186   :  { %v3377_v3 = vpop.eup %3376 }
 0x187   :  { %v3379_v47 = vpop.eup %3378  ;;  %v638_v1 = vadd.f32 1.0, %v3377_v3  ;;  %3380 = vpow2.f32 %v3306_v63 }
 0x188   :  { %v657_v61 = vadd.f32 1.0, %v3379_v47 }
 0x189   :  { %3382 = vrcp.f32 %v638_v1  ;;  %v650_v59 = vand.u32 2147483648, %v638_v1  ;;  %v648_v41 = vand.u32 2147483647, %v638_v1  ;;  %vm644_vm15 = vweird.f32 %v638_v1 }
 0x18a   :  { %3384 = vrcp.f32 %v657_v61  ;;  %v669_v38 = vand.u32 2147483648, %v657_v61  ;;  %v667_v43 = vand.u32 2147483647, %v657_v61  ;;  %vm663_vm0 = vweird.f32 %v657_v61 }
 0x18b   :  { %v651_v46 = vor.u32 1.1754944e-38, %v650_v59  ;;  %vm649_vm3 = vcmp.eq.f32.partialorder %v648_v41, 8.507059e+37  ;;  %v4541_v59 = vld [vmem:[#allocation5 + $0x1f8] sm:$0xff]  ;;  %v4550_v41 = vld [vmem:[#allocation5 + $0x1d0] sm:$0xff] }
 0x18c   :  { %v670_v51 = vor.u32 1.1754944e-38, %v669_v38  ;;  %vm668_vm4 = vcmp.eq.f32.partialorder %v667_v43, 8.507059e+37  ;;  %v4544_v38 = vld [vmem:[#allocation5 + $0x1c0] sm:$0xff] }
 0x18d   :  { %v3381_v0 = vpop.eup %3380  ;;  %v4556_v43 = vld [vmem:[#allocation5 + $0x1a0] sm:$0xff] }
 0x18e   :  { %v677_v60 = vadd.f32 1.0, %v3381_v0 }
 0x18f   :  { %v3383_v2 = vpop.eup %3382 }
 0x190   :  { %v3385_v56 = vpop.eup %3384  ;;  %v640_v62 = vmul.f32 %v3383_v2, %v638_v1  ;;  %3386 = vrcp.f32 %v677_v60  ;;  %vm645_vm13 = vweird.f32 %v3383_v2  ;;  %v689_v57 = vand.u32 2147483648, %v677_v60 }
 0x191   :  { %v659_v5 = vmul.f32 %v3385_v56, %v657_v61  ;;  %3388 = vtanh.f32 %v633_v54  ;;  %vm664_vm14 = vweird.f32 %v3385_v56  ;;  %vm646_vm1 = vmor %vm644_vm15, %vm645_vm13  ;;  %vm683_vm6 = vweird.f32 %v677_v60 }
 0x192   :  { %v641_v4 = vsub.f32 1.0, %v640_v62  ;;  %vm665_vm2 = vmor %vm663_vm0, %vm664_vm14  ;;  %v690_v62 = vor.u32 1.1754944e-38, %v689_v57  ;;  %v4607_v57 = vld [vmem:[#allocation5 + $0x128] sm:$0xff] }
 0x193   :  { %v660_v8 = vsub.f32 1.0, %v659_v5 }
 0x194   :  { %v642_v39 = vmul.f32 %v3383_v2, %v641_v4 }
 0x195   :  { %v661_v42 = vmul.f32 %v3385_v56, %v660_v8  ;;  %v4538_v8 = vld [vmem:[#allocation5 + $0x1f0] sm:$0xff] }
 0x196   :  { %v3387_v44 = vpop.eup %3386  ;;  %v643_v45 = vadd.f32 %v3383_v2, %v642_v39  ;;  %v4547_v39 = vld [vmem:[#allocation5 + $0x1c8] sm:$0xff] }
 0x197   :  { %v662_v48 = vadd.f32 %v3385_v56, %v661_v42  ;;  %v679_v49 = vmul.f32 %v3387_v44, %v677_v60  ;;  %v3389_v53 = vpop.eup %3388  ;;  %vm684_vm5 = vweird.f32 %v3387_v44  ;;  %v4553_v42 = vld [vmem:[#allocation5 + $0x1d8] sm:$0xff] }
 0x198   :  { %v647_v52 = vsel %vm646_vm1, %v3383_v2, %v643_v45  ;;  %v687_v2 = vand.u32 2147483647, %v677_v60  ;;  %vm685_vm7 = vmor %vm683_vm6, %vm684_vm5  ;;  %v4535_v60 = vld [vmem:[#allocation5 + $0x1e8] sm:$0xff]  ;;  %v4562_v45 = vld [vmem:[#allocation5 + $0x1b0] sm:$0xff] }
 0x199   :  { %v652_v55 = vsel %vm649_vm3, %v651_v46, %v647_v52  ;;  %v666_v63 = vsel %vm665_vm2, %v3385_v56, %v662_v48  ;;  %v680_v3 = vsub.f32 1.0, %v679_v49  ;;  %v4565_v46 = vld [vmem:[#allocation5 + $0x1b8] sm:$0xff]  ;;  %v4568_v48 = vld [vmem:[#allocation5 + $0x180] sm:$0xff]  ;;  %v4571_v49 = vld [vmem:[#allocation5 + $0x188] sm:$0xff] }
 0x19a   :  { %v671_v47 = vsel %vm668_vm4, %v670_v51, %v666_v63  ;;  %v694_v58 = vmul.f32 %v3389_v53, %v652_v55  ;;  %vm688_vm8 = vcmp.eq.f32.partialorder %v687_v2, 8.507059e+37  ;;  %v4574_v51 = vld [vmem:[#allocation5 + $0x190] sm:$0xff]  ;;  %v4577_v52 = vld [vmem:[#allocation5 + $0x198] sm:$0xff]  ;;  %v4580_v53 = vld [vmem:[#allocation5 + $0x160] sm:$0xff] }
 0x19b   :  { %v693_v0 = vmul.f32 %v671_v47, %v4441_v7  ;;  %v681_v6 = vmul.f32 %v3387_v44, %v680_v3  ;;  %v4532_v7 = vld [vmem:[#allocation5 + $0x1e0] sm:$0xff]  ;;  %v4583_v55 = vld [vmem:[#allocation5 + $0x168] sm:$0xff]  ;;  %v4586_v63 = vld [vmem:[#allocation5 + $0x170] sm:$0xff] }
 0x19c   :  { %v4589_v3 = vld [vmem:[#allocation5 + $0x178] sm:$0xff]  ;;  %v4592_v47 = vld [vmem:[#allocation5 + $0x140] sm:$0xff]  ;;  %v4610_v2 = vld [vmem:[#allocation5 + $0x130] sm:$0xff] }
 0x19d   :  { %v4523_v1 = vadd.f32 %v694_v58, %v693_v0  ;;  %v682_v61 = vadd.f32 %v3387_v44, %v681_v6  ;;  %v4595_v58 = vld [vmem:[#allocation5 + $0x148] sm:$0xff]  ;;  %v4598_v0 = vld [vmem:[#allocation5 + $0x150] sm:$0xff]  ;;  %v4601_v6 = vld [vmem:[#allocation5 + $0x158] sm:$0xff] }
 0x19f   :  { %3390 = vtanh.f32 %v4523_v1  ;;  %v686_v54 = vsel %vm685_vm7, %v3387_v44, %v682_v61  ;;  %v4559_v44 = vld [vmem:[#allocation5 + $0x1a8] sm:$0xff]  ;;  %v4604_v61 = vld [vmem:[#allocation5 + $0x120] sm:$0xff] }
 0x1a0   :  { %v691_v5 = vsel %vm688_vm8, %v690_v62, %v686_v54  ;;  %v4613_v54 = vld [vmem:[#allocation5 + $0x138] sm:$0xff]  ;;  %v4616_v62 = vld [vmem:[#allocation5 + $0x100] sm:$0xff] }
 0x1a1   :  { %6390 = vst [vmem:[#allocation19_spill] sm:$0xff] %v4613_v54 }
 0x1a2   :  { %6391 = vst [vmem:[#allocation21_spill] sm:$0xff] %v4616_v62 }
 0x1a5   :  { %v3391_v56 = vpop.eup %3390 }
 0x1a6   :  { %v4526_v4 = vmul.f32 %v3391_v56, %v691_v5  ;;  %v4619_v56 = vld [vmem:[#allocation5 + $0x108] sm:$0xff]  ;;  %v4622_v5 = vld [vmem:[#allocation5 + $0x110] sm:$0xff] }
 0x1a7   :  { %6392 = vst [vmem:[#allocation22_spill] sm:$0xff] %v4619_v56 }
 0x1a8   :  { %6389 = vst [vmem:[#allocation20_spill] sm:$0xff] %v4526_v4  ;;  %723 = vmatmul.f32.vlgmr.msrb.gmra.mxu0 %v4526_v4  ;;  %743 = vmatmul.f32.vlgmr.msrb.gmra.mxu1 %v4526_v4 }
 0x1a9   :  { %763 = vmatmul.f32.vlgmr.msrb.gmra.mxu2 %v4526_v4  ;;  %783 = vmatmul.f32.vlgmr.msrb.gmra.mxu3 %v4526_v4  ;;  %6393 = vst [vmem:[#allocation24_spill] sm:$0xff] %v4622_v5  ;;  %v4625_v4 = vld [vmem:[#allocation5 + $0x118] sm:$0xff] }
 0x1aa   :  { %1019 = vmatpush.msrb.mxu0 %v4532_v7  ;;  %1039 = vmatpush.msrb.mxu1 %v4535_v60  ;;  %6394 = vst [vmem:[#allocation23_spill] sm:$0xff] %v4625_v4 }
 0x1ab   :  { %1059 = vmatpush.msrb.mxu2 %v4538_v8  ;;  %1079 = vmatpush.msrb.mxu3 %v4541_v59 }
 0x1ac   :  { %1020 = vmatpush.msrb.mxu0 %v4544_v38  ;;  %1040 = vmatpush.msrb.mxu1 %v4547_v39 }
 0x1ad   :  { %1060 = vmatpush.msrb.mxu2 %v4550_v41  ;;  %1080 = vmatpush.msrb.mxu3 %v4553_v42 }
 0x1ae   :  { %1021 = vmatpush.msrb.mxu0 %v4556_v43  ;;  %1041 = vmatpush.msrb.mxu1 %v4559_v44 }
 0x1af   :  { %1061 = vmatpush.msrb.mxu2 %v4562_v45  ;;  %1081 = vmatpush.msrb.mxu3 %v4565_v46 }
 0x1b0   :  { %1022 = vmatpush.msrb.mxu0 %v4568_v48  ;;  %1042 = vmatpush.msrb.mxu1 %v4571_v49 }
 0x1b1   :  { %1062 = vmatpush.msrb.mxu2 %v4574_v51  ;;  %1082 = vmatpush.msrb.mxu3 %v4577_v52 }
 0x1b2   :  { %1023 = vmatpush.msrb.mxu0 %v4580_v53  ;;  %1043 = vmatpush.msrb.mxu1 %v4583_v55 }
 0x1b3   :  { %1063 = vmatpush.msrb.mxu2 %v4586_v63  ;;  %1083 = vmatpush.msrb.mxu3 %v4589_v3 }
 0x1b4   :  { %1024 = vmatpush.msrb.mxu0 %v4592_v47  ;;  %1044 = vmatpush.msrb.mxu1 %v4595_v58 }
 0x1b5   :  { %1064 = vmatpush.msrb.mxu2 %v4598_v0  ;;  %1084 = vmatpush.msrb.mxu3 %v4601_v6 }
 0x1b6   :  { %1025 = vmatpush.msrb.mxu0 %v4604_v61  ;;  %1045 = vmatpush.msrb.mxu1 %v4607_v57 }
 0x1b7   :  { %1065 = vmatpush.msrb.mxu2 %v4610_v2  ;;  %1085 = vmatpush.msrb.mxu3 %v4613_v54  ;;  %v4631_v54 = vld [vmem:[#allocation5 + $0xe8] sm:$0xff] }
 0x1b8   :  { %1026 = vmatpush.msrb.mxu0 %v4616_v62  ;;  %1046 = vmatpush.msrb.mxu1 %v4619_v56  ;;  %v4634_v62 = vld [vmem:[#allocation5 + $0xf0] sm:$0xff]  ;;  %v4637_v56 = vld [vmem:[#allocation5 + $0xf8] sm:$0xff] }
 0x1b9   :  { %1066 = vmatpush.msrb.mxu2 %v4622_v5  ;;  %1086 = vmatpush.msrb.mxu3 %v4625_v4  ;;  %v4640_v5 = vld [vmem:[#allocation5 + $0xc0] sm:$0xff]  ;;  %v4643_v4 = vld [vmem:[#allocation5 + $0xc8] sm:$0xff] }
 0x1ba   :  { %1027 = vmatpush.msrb.mxu0 %v4628_v34  ;;  %1047 = vmatpush.msrb.mxu1 %v4631_v54 }
 0x1bb   :  { %1067 = vmatpush.msrb.mxu2 %v4634_v62  ;;  %1087 = vmatpush.msrb.mxu3 %v4637_v56 }
 0x1bc   :  { %1028 = vmatpush.msrb.mxu0 %v4640_v5  ;;  %1048 = vmatpush.msrb.mxu1 %v4643_v4 }
 0x1bd   :  { %1068 = vmatpush.msrb.mxu2 %v6355_v9  ;;  %1088 = vmatpush.msrb.mxu3 %v6356_v10  ;;  %v6395_v9 = vld [vmem:[#allocation49_spill] sm:$0xff] }
 0x1be   :  { %1029 = vmatpush.msrb.mxu0 %v6357_v11  ;;  %1049 = vmatpush.msrb.mxu1 %v6358_v12  ;;  %v217_v10 = vadd.f32 %v6395_v9, %v6381_v37  ;;  %v6396_v11 = vld [vmem:[#allocation50_spill] sm:$0xff] }
 0x1bf   :  { %1069 = vmatpush.msrb.mxu2 %v6359_v13  ;;  %1089 = vmatpush.msrb.mxu3 %v6360_v14  ;;  %v258_v12 = vadd.f32 %v6396_v11, %v6383_v40 }
 0x1c0   :  { %1030 = vmatpush.msrb.mxu0 %v6361_v15  ;;  %1050 = vmatpush.msrb.mxu1 %v6362_v16 }
 0x1c1   :  { %1070 = vmatpush.msrb.mxu2 %v6363_v17  ;;  %1090 = vmatpush.msrb.mxu3 %v6364_v18 }
 0x1c2   :  { %1031 = vmatpush.msrb.mxu0 %v6365_v19  ;;  %1051 = vmatpush.msrb.mxu1 %v6366_v21  ;;  %v6397_v19 = vld [vmem:[#allocation52_spill] sm:$0xff] }
 0x1c3   :  { %1071 = vmatpush.msrb.mxu2 %v6367_v22  ;;  %1091 = vmatpush.msrb.mxu3 %v6368_v23  ;;  %v340_v21 = vadd.f32 %v6397_v19, %v6385_v50 }
 0x1c4   :  { %1032 = vmatpush.msrb.mxu0 %v6369_v24  ;;  %1052 = vmatpush.msrb.mxu1 %v6370_v25 }
 0x1c5   :  { %1072 = vmatpush.msrb.mxu2 %v6371_v26  ;;  %1092 = vmatpush.msrb.mxu3 %v6372_v27 }
 0x1c6   :  { %1033 = vmatpush.msrb.mxu0 %v6373_v28  ;;  %1053 = vmatpush.msrb.mxu1 %v6374_v29 }
 0x1c7   :  { %1073 = vmatpush.msrb.mxu2 %v6375_v30  ;;  %1093 = vmatpush.msrb.mxu3 %v6376_v31  ;;  %v6398_v31 = vld [vmem:[#allocation51_spill] sm:$0xff] }
 0x1c8   :  { %1034 = vmatpush.msrb.mxu0 %v6377_v32  ;;  %1054 = vmatpush.msrb.mxu1 %v6378_v33  ;;  %v299_v32 = vadd.f32 %v6398_v31, %v6387_v20 }
 0x1c9   :  { %1074 = vmatpush.msrb.mxu2 %v6379_v35  ;;  %1094 = vmatpush.msrb.mxu3 %v6380_v36 }
 0x225   :  { %v724_v13 = vpop.f32.mrf.mxu0  ;;  %v744_v14 = vpop.f32.mrf.mxu1 }
 0x226   :  { %v787_v15 = vadd.f32 %v724_v13, %v217_v10  ;;  %v788_v16 = vadd.f32 %v744_v14, %v258_v12 }
 0x228   :  { %v3307_v17 = vmul.f32 -1.442695, %v787_v15  ;;  %v3308_v18 = vmul.f32 -1.442695, %v788_v16 }
 0x22a   :  { %3392 = vpow2.f32 %v3307_v17 }
 0x22b   :  { %3394 = vpow2.f32 %v3308_v18 }
 0x22c   :  { %v784_v22 = vpop.f32.mrf.mxu3  ;;  %v764_v29 = vpop.f32.mrf.mxu2 }
 0x22d   :  { %v790_v23 = vadd.f32 %v784_v22, %v340_v21  ;;  %v789_v36 = vadd.f32 %v764_v29, %v299_v32 }
 0x22f   :  { %v3309_v24 = vmul.f32 -1.442695, %v790_v23 }
 0x230   :  { %v3393_v25 = vpop.eup %3392 }
 0x231   :  { %v3395_v26 = vpop.eup %3394  ;;  %v794_v27 = vadd.f32 1.0, %v3393_v25  ;;  %3396 = vpow2.f32 %v3309_v24 }
 0x232   :  { %v813_v28 = vadd.f32 1.0, %v3395_v26 }
 0x233   :  { %3398 = vrcp.f32 %v794_v27  ;;  %v806_v14 = vand.u32 2147483648, %v794_v27  ;;  %v804_v17 = vand.u32 2147483647, %v794_v27  ;;  %vm800_vm11 = vweird.f32 %v794_v27 }
 0x234   :  { %3400 = vrcp.f32 %v813_v28  ;;  %v825_v15 = vand.u32 2147483648, %v813_v28  ;;  %v823_v19 = vand.u32 2147483647, %v813_v28  ;;  %vm819_vm12 = vweird.f32 %v813_v28 }
 0x235   :  { %v807_v23 = vor.u32 1.1754944e-38, %v806_v14  ;;  %vm805_vm15 = vcmp.eq.f32.partialorder %v804_v17, 8.507059e+37 }
 0x236   :  { %v826_v26 = vor.u32 1.1754944e-38, %v825_v15  ;;  %vm824_vm0 = vcmp.eq.f32.partialorder %v823_v19, 8.507059e+37  ;;  %v6402_v19 = vld [vmem:[#allocation22_spill] sm:$0xff] }
 0x237   :  { %v3397_v30 = vpop.eup %3396 }
 0x238   :  { %v833_v33 = vadd.f32 1.0, %v3397_v30 }
 0x239   :  { %v3399_v35 = vpop.eup %3398 }
 0x23a   :  { %v3401_v9 = vpop.eup %3400  ;;  %v796_v10 = vmul.f32 %v3399_v35, %v794_v27  ;;  %3402 = vrcp.f32 %v833_v33  ;;  %vm801_vm9 = vweird.f32 %v3399_v35  ;;  %v845_v14 = vand.u32 2147483648, %v833_v33 }
 0x23b   :  { %v815_v11 = vmul.f32 %v3401_v9, %v813_v28  ;;  %3404 = vtanh.f32 %v789_v36  ;;  %vm820_vm10 = vweird.f32 %v3401_v9  ;;  %vm802_vm13 = vmor %vm800_vm11, %vm801_vm9  ;;  %vm839_vm2 = vweird.f32 %v833_v33 }
 0x23c   :  { %v797_v12 = vsub.f32 1.0, %v796_v10  ;;  %vm821_vm14 = vmor %vm819_vm12, %vm820_vm10 }
 0x23d   :  { %v816_v13 = vsub.f32 1.0, %v815_v11 }
 0x23e   :  { %v798_v16 = vmul.f32 %v3399_v35, %v797_v12 }
 0x23f   :  { %v817_v18 = vmul.f32 %v3401_v9, %v816_v13 }
 0x240   :  { %v3403_v21 = vpop.eup %3402  ;;  %v799_v22 = vadd.f32 %v3399_v35, %v798_v16  ;;  %v846_v16 = vor.u32 1.1754944e-38, %v845_v14  ;;  %v4770_v14 = vld [vmem:[#allocation5 + $0x40] sm:$0xff] }
 0x241   :  { %v818_v24 = vadd.f32 %v3401_v9, %v817_v18  ;;  %v835_v25 = vmul.f32 %v3403_v21, %v833_v33  ;;  %v3405_v30 = vpop.eup %3404  ;;  %vm840_vm1 = vweird.f32 %v3403_v21  ;;  %6419 = vst [vmem:[#allocation40_spill] sm:$0xff] %v4770_v14 }
 0x242   :  { %v803_v29 = vsel %vm802_vm13, %v3399_v35, %v799_v22  ;;  %v843_v35 = vand.u32 2147483647, %v833_v33  ;;  %vm841_vm3 = vmor %vm839_vm2, %vm840_vm1  ;;  %v6401_v33 = vld [vmem:[#allocation21_spill] sm:$0xff]  ;;  %v6404_v22 = vld [vmem:[#allocation23_spill] sm:$0xff] }
 0x243   :  { %v808_v31 = vsel %vm805_vm15, %v807_v23, %v803_v29  ;;  %v822_v32 = vsel %vm821_vm14, %v3401_v9, %v818_v24  ;;  %v836_v36 = vsub.f32 1.0, %v835_v25  ;;  %v4728_v23 = vld [vmem:[#allocation5 + $0xd0] sm:$0xff]  ;;  %v4731_v24 = vld [vmem:[#allocation5 + $0xd8] sm:$0xff]  ;;  %v4734_v25 = vld [vmem:[#allocation5 + $0xa0] sm:$0xff] }
 0x244   :  { %v827_v10 = vsel %vm824_vm0, %v826_v26, %v822_v32  ;;  %v850_v11 = vmul.f32 %v3405_v30, %v808_v31  ;;  %vm844_vm4 = vcmp.eq.f32.partialorder %v843_v35, 8.507059e+37  ;;  %6405 = vst [vmem:[#allocation26_spill] sm:$0xff] %v4728_v23  ;;  %v4737_v26 = vld [vmem:[#allocation5 + $0xa8] sm:$0xff]  ;;  %v4740_v29 = vld [vmem:[#allocation5 + $0xb0] sm:$0xff]  ;;  %v4743_v30 = vld [vmem:[#allocation5 + $0xb8] sm:$0xff] }
 0x245   :  { %v849_v12 = vmul.f32 %v827_v10, %v4523_v1  ;;  %v837_v13 = vmul.f32 %v3403_v21, %v836_v36  ;;  %v6400_v1 = vld [vmem:[#allocation19_spill] sm:$0xff]  ;;  %6406 = vst [vmem:[#allocation28_spill] sm:$0xff] %v4731_v24  ;;  %v4749_v32 = vld [vmem:[#allocation5 + $0x88] sm:$0xff]  ;;  %v4752_v36 = vld [vmem:[#allocation5 + $0x90] sm:$0xff] }
 0x246   :  { %6407 = vst [vmem:[#allocation27_spill] sm:$0xff] %v4734_v25  ;;  %v4746_v31 = vld [vmem:[#allocation5 + $0x80] sm:$0xff]  ;;  %v4755_v10 = vld [vmem:[#allocation5 + $0x98] sm:$0xff]  ;;  %v4773_v35 = vld [vmem:[#allocation5 + $0x48] sm:$0xff] }
 0x247   :  { %v4681_v27 = vadd.f32 %v850_v11, %v849_v12  ;;  %v838_v28 = vadd.f32 %v3403_v21, %v837_v13  ;;  %6408 = vst [vmem:[#allocation29_spill] sm:$0xff] %v4737_v26  ;;  %v4758_v11 = vld [vmem:[#allocation5 + $0x60] sm:$0xff]  ;;  %v4761_v12 = vld [vmem:[#allocation5 + $0x68] sm:$0xff]  ;;  %v4764_v13 = vld [vmem:[#allocation5 + $0x70] sm:$0xff] }
 0x248   :  { %6409 = vst [vmem:[#allocation30_spill] sm:$0xff] %v4740_v29 }
 0x249   :  { %3406 = vtanh.f32 %v4681_v27  ;;  %v842_v15 = vsel %vm841_vm3, %v3403_v21, %v838_v28  ;;  %v6403_v21 = vld [vmem:[#allocation24_spill] sm:$0xff]  ;;  %6410 = vst [vmem:[#allocation32_spill] sm:$0xff] %v4743_v30  ;;  %v4767_v28 = vld [vmem:[#allocation5 + $0x78] sm:$0xff] }
 0x24a   :  { %v847_v17 = vsel %vm844_vm4, %v846_v16, %v842_v15  ;;  %6411 = vst [vmem:[#allocation31_spill] sm:$0xff] %v4746_v31  ;;  %v4776_v15 = vld [vmem:[#allocation5 + $0x50] sm:$0xff]  ;;  %v4779_v16 = vld [vmem:[#allocation5 + $0x58] sm:$0xff] }
 0x24b   :  { %6412 = vst [vmem:[#allocation33_spill] sm:$0xff] %v4749_v32 }
 0x24c   :  { %6413 = vst [vmem:[#allocation34_spill] sm:$0xff] %v4752_v36 }
 0x24d   :  { %6414 = vst [vmem:[#allocation36_spill] sm:$0xff] %v4755_v10 }
 0x24e   :  { %6415 = vst [vmem:[#allocation35_spill] sm:$0xff] %v4758_v11 }
 0x24f   :  { %v3407_v9 = vpop.eup %3406  ;;  %6416 = vst [vmem:[#allocation37_spill] sm:$0xff] %v4761_v12 }
 0x250   :  { %v4684_v18 = vmul.f32 %v3407_v9, %v847_v17  ;;  %6417 = vst [vmem:[#allocation38_spill] sm:$0xff] %v4764_v13  ;;  %v4782_v9 = vld [vmem:[#allocation5 + $0x20] sm:$0xff]  ;;  %v4785_v17 = vld [vmem:[#allocation5 + $0x28] sm:$0xff] }
 0x251   :  { %6418 = vst [vmem:[#allocation39_spill] sm:$0xff] %v4767_v28 }
 0x252   :  { %6399 = vst [vmem:[#allocation25_spill] sm:$0xff] %v4684_v18  ;;  %879 = vmatmul.f32.vlgmr.msra.gmra.mxu0 %v4684_v18  ;;  %899 = vmatmul.f32.vlgmr.msra.gmra.mxu1 %v4684_v18 }
 0x253   :  { %919 = vmatmul.f32.vlgmr.msra.gmra.mxu2 %v4684_v18  ;;  %939 = vmatmul.f32.vlgmr.msra.gmra.mxu3 %v4684_v18  ;;  %6420 = vst [vmem:[#allocation41_spill] sm:$0xff] %v4773_v35  ;;  %v4788_v18 = vld [vmem:[#allocation5 + $0x30] sm:$0xff] }
 0x254   :  { %1175 = vmatpush.msra.mxu0 %v4532_v7  ;;  %1195 = vmatpush.msra.mxu1 %v4535_v60  ;;  %6421 = vst [vmem:[#allocation42_spill] sm:$0xff] %v4776_v15 }
 0x255   :  { %1215 = vmatpush.msra.mxu2 %v4538_v8  ;;  %1235 = vmatpush.msra.mxu3 %v4541_v59  ;;  %6422 = vst [vmem:[#allocation43_spill] sm:$0xff] %v4779_v16 }
 0x256   :  { %1176 = vmatpush.msra.mxu0 %v4544_v38  ;;  %1196 = vmatpush.msra.mxu1 %v4547_v39  ;;  %6423 = vst [vmem:[#allocation44_spill] sm:$0xff] %v4782_v9 }
 0x257   :  { %1216 = vmatpush.msra.mxu2 %v4550_v41  ;;  %1236 = vmatpush.msra.mxu3 %v4553_v42  ;;  %6424 = vst [vmem:[#allocation45_spill] sm:$0xff] %v4785_v17 }
 0x258   :  { %1177 = vmatpush.msra.mxu0 %v4556_v43  ;;  %1197 = vmatpush.msra.mxu1 %v4559_v44  ;;  %6425 = vst [vmem:[#allocation46_spill] sm:$0xff] %v4788_v18 }
 0x259   :  { %1217 = vmatpush.msra.mxu2 %v4562_v45  ;;  %1237 = vmatpush.msra.mxu3 %v4565_v46 }
 0x25a   :  { %1178 = vmatpush.msra.mxu0 %v4568_v48  ;;  %1198 = vmatpush.msra.mxu1 %v4571_v49 }
 0x25b   :  { %1218 = vmatpush.msra.mxu2 %v4574_v51  ;;  %1238 = vmatpush.msra.mxu3 %v4577_v52 }
 0x25c   :  { %1179 = vmatpush.msra.mxu0 %v4580_v53  ;;  %1199 = vmatpush.msra.mxu1 %v4583_v55 }
 0x25d   :  { %1219 = vmatpush.msra.mxu2 %v4586_v63  ;;  %1239 = vmatpush.msra.mxu3 %v4589_v3 }
 0x25e   :  { %1180 = vmatpush.msra.mxu0 %v4592_v47  ;;  %1200 = vmatpush.msra.mxu1 %v4595_v58 }
 0x25f   :  { %1220 = vmatpush.msra.mxu2 %v4598_v0  ;;  %1240 = vmatpush.msra.mxu3 %v4601_v6 }
 0x260   :  { %1181 = vmatpush.msra.mxu0 %v4604_v61  ;;  %1201 = vmatpush.msra.mxu1 %v4607_v57 }
 0x261   :  { %1221 = vmatpush.msra.mxu2 %v4610_v2  ;;  %1241 = vmatpush.msra.mxu3 %v6400_v1 }
 0x262   :  { %1182 = vmatpush.msra.mxu0 %v6401_v33  ;;  %1202 = vmatpush.msra.mxu1 %v6402_v19 }
 0x263   :  { %1222 = vmatpush.msra.mxu2 %v6403_v21  ;;  %1242 = vmatpush.msra.mxu3 %v6404_v22 }
 0x264   :  { %1183 = vmatpush.msra.mxu0 %v4628_v34  ;;  %1203 = vmatpush.msra.mxu1 %v4631_v54 }
 0x265   :  { %1223 = vmatpush.msra.mxu2 %v4634_v62  ;;  %1243 = vmatpush.msra.mxu3 %v4637_v56 }
 0x266   :  { %1184 = vmatpush.msra.mxu0 %v4640_v5  ;;  %1204 = vmatpush.msra.mxu1 %v4643_v4 }
 0x267   :  { %1224 = vmatpush.msra.mxu2 %v4728_v23  ;;  %1244 = vmatpush.msra.mxu3 %v4731_v24 }
 0x268   :  { %1185 = vmatpush.msra.mxu0 %v4734_v25  ;;  %1205 = vmatpush.msra.mxu1 %v4737_v26 }
 0x269   :  { %1225 = vmatpush.msra.mxu2 %v4740_v29  ;;  %1245 = vmatpush.msra.mxu3 %v4743_v30 }
 0x26a   :  { %1186 = vmatpush.msra.mxu0 %v4746_v31  ;;  %1206 = vmatpush.msra.mxu1 %v4749_v32 }
 0x26b   :  { %1226 = vmatpush.msra.mxu2 %v4752_v36  ;;  %1246 = vmatpush.msra.mxu3 %v4755_v10  ;;  %v6433_v36 = vld [vmem:[#allocation56_spill] sm:$0xff] }
 0x26c   :  { %1187 = vmatpush.msra.mxu0 %v4758_v11  ;;  %1207 = vmatpush.msra.mxu1 %v4761_v12 }
 0x26d   :  { %1227 = vmatpush.msra.mxu2 %v4764_v13  ;;  %1247 = vmatpush.msra.mxu3 %v4767_v28 }
 0x26e   :  { %1188 = vmatpush.msra.mxu0 %v4770_v14  ;;  %1208 = vmatpush.msra.mxu1 %v4773_v35  ;;  %v4791_v35 = vld [vmem:[#allocation5 + $0x38] sm:$0xff] }
 0x26f   :  { %1228 = vmatpush.msra.mxu2 %v4776_v15  ;;  %1248 = vmatpush.msra.mxu3 %v4779_v16  ;;  %6426 = vst [vmem:[#allocation48_spill] sm:$0xff] %v4791_v35  ;;  %v4794_v15 = vld [vmem:[#allocation5] sm:$0xff]  ;;  %v4797_v16 = vld [vmem:[#allocation5 + $0x8] sm:$0xff] }
 0x270   :  { %1189 = vmatpush.msra.mxu0 %v4782_v9  ;;  %1209 = vmatpush.msra.mxu1 %v4785_v17  ;;  %6427 = vst [vmem:[#allocation47_spill] sm:$0xff] %v4794_v15  ;;  %v4800_v9 = vld [vmem:[#allocation5 + $0x10] sm:$0xff]  ;;  %v4803_v17 = vld [vmem:[#allocation5 + $0x18] sm:$0xff] }
 0x271   :  { %1229 = vmatpush.msra.mxu2 %v4788_v18  ;;  %1249 = vmatpush.msra.mxu3 %v4791_v35  ;;  %6428 = vst [vmem:[#allocation49_spill] sm:$0xff] %v4797_v16  ;;  %v6431_v18 = vld [vmem:[#allocation53_spill] sm:$0xff]  ;;  %v6432_v35 = vld [vmem:[#allocation54_spill] sm:$0xff] }
 0x272   :  { %1190 = vmatpush.msra.mxu0 %v4794_v15  ;;  %1210 = vmatpush.msra.mxu1 %v4797_v16  ;;  %6429 = vst [vmem:[#allocation50_spill] sm:$0xff] %v4800_v9  ;;  %v220_v14 = vadd.f32 %v6431_v18, %v6381_v37  ;;  %v261_v28 = vadd.f32 %v6432_v35, %v6383_v40 }
 0x273   :  { %1230 = vmatpush.msra.mxu2 %v4800_v9  ;;  %6430 = vst [vmem:[#allocation52_spill] sm:$0xff] %v4803_v17  ;;  %1250 = vmatpush.msra.mxu3 %v4803_v17  ;;  %v343_v9 = vadd.f32 %v6433_v36, %v6385_v50 }
 0x2cf   :  { %v880_v13 = vpop.f32.mrf.mxu0  ;;  %v900_v15 = vpop.f32.mrf.mxu1 }
 0x2d0   :  { %v943_v12 = vadd.f32 %v880_v13, %v220_v14  ;;  %v944_v11 = vadd.f32 %v900_v15, %v261_v28 }
 0x2d2   :  { %v3310_v10 = vmul.f32 -1.442695, %v943_v12  ;;  %v3311_v16 = vmul.f32 -1.442695, %v944_v11  ;;  %v6434_v12 = vld [vmem:[#allocation55_spill] sm:$0xff] }
 0x2d3   :  { %v302_v11 = vadd.f32 %v6434_v12, %v6387_v20 }
 0x2d4   :  { %3408 = vpow2.f32 %v3310_v10 }
 0x2d5   :  { %3410 = vpow2.f32 %v3311_v16 }
 0x2d6   :  { %v940_v32 = vpop.f32.mrf.mxu3  ;;  %v920_v35 = vpop.f32.mrf.mxu2 }
 0x2d7   :  { %v946_v31 = vadd.f32 %v940_v32, %v343_v9  ;;  %v945_v14 = vadd.f32 %v920_v35, %v302_v11 }
 0x2d9   :  { %v3312_v17 = vmul.f32 -1.442695, %v946_v31 }
 0x2da   :  { %v3409_v30 = vpop.eup %3408 }
 0x2db   :  { %v3411_v29 = vpop.eup %3410  ;;  %v950_v18 = vadd.f32 1.0, %v3409_v30  ;;  %3412 = vpow2.f32 %v3312_v17 }
 0x2dc   :  { %v969_v37 = vadd.f32 1.0, %v3411_v29 }
 0x2dd   :  { %3414 = vrcp.f32 %v950_v18  ;;  %v962_v9 = vand.u32 2147483648, %v950_v18  ;;  %v960_v17 = vand.u32 2147483647, %v950_v18  ;;  %vm956_vm7 = vweird.f32 %v950_v18 }
 0x2de   :  { %3416 = vrcp.f32 %v969_v37  ;;  %v981_v30 = vand.u32 2147483648, %v969_v37  ;;  %v979_v40 = vand.u32 2147483647, %v969_v37  ;;  %vm975_vm8 = vweird.f32 %v969_v37 }
 0x2df   :  { %v963_v35 = vor.u32 1.1754944e-38, %v962_v9  ;;  %vm961_vm11 = vcmp.eq.f32.partialorder %v960_v17, 8.507059e+37 }
 0x2e0   :  { %vm980_vm12 = vcmp.eq.f32.partialorder %v979_v40, 8.507059e+37 }
 0x2e1   :  { %v3413_v13 = vpop.eup %3412 }
 0x2e2   :  { %v989_v10 = vadd.f32 1.0, %v3413_v13 }
 0x2e3   :  { %v3415_v28 = vpop.eup %3414 }
 0x2e4   :  { %v3417_v36 = vpop.eup %3416  ;;  %v952_v15 = vmul.f32 %v3415_v28, %v950_v18  ;;  %3418 = vrcp.f32 %v989_v10  ;;  %vm957_vm5 = vweird.f32 %v3415_v28  ;;  %vm995_vm14 = vweird.f32 %v989_v10 }
 0x2e5   :  { %v971_v32 = vmul.f32 %v3417_v36, %v969_v37  ;;  %3420 = vtanh.f32 %v945_v14  ;;  %vm976_vm6 = vweird.f32 %v3417_v36  ;;  %vm958_vm9 = vmor %vm956_vm7, %vm957_vm5 }
 0x2e6   :  { %v953_v31 = vsub.f32 1.0, %v952_v15  ;;  %vm977_vm10 = vmor %vm975_vm8, %vm976_vm6  ;;  %v982_v15 = vor.u32 1.1754944e-38, %v981_v30 }
 0x2e7   :  { %v972_v16 = vsub.f32 1.0, %v971_v32 }
 0x2e8   :  { %v954_v29 = vmul.f32 %v3415_v28, %v953_v31 }
 0x2e9   :  { %v973_v50 = vmul.f32 %v3417_v36, %v972_v16 }
 0x2ea   :  { %v3419_v26 = vpop.eup %3418  ;;  %v955_v12 = vadd.f32 %v3415_v28, %v954_v29 }
 0x2eb   :  { %v974_v13 = vadd.f32 %v3417_v36, %v973_v50  ;;  %v991_v11 = vmul.f32 %v3419_v26, %v989_v10  ;;  %v3421_v14 = vpop.eup %3420  ;;  %vm996_vm13 = vweird.f32 %v3419_v26  ;;  %v1001_v50 = vand.u32 2147483648, %v989_v10 }
 0x2ec   :  { %v959_v32 = vsel %vm958_vm9, %v3415_v28, %v955_v12  ;;  %v999_v28 = vand.u32 2147483647, %v989_v10  ;;  %vm997_vm15 = vmor %vm995_vm14, %vm996_vm13  ;;  %v6442_v10 = vld [vmem:[#allocation31_spill] sm:$0xff]  ;;  %v6443_v12 = vld [vmem:[#allocation33_spill] sm:$0xff] }
 0x2ed   :  { %v964_v20 = vsel %vm961_vm11, %v963_v35, %v959_v32  ;;  %v978_v31 = vsel %vm977_vm10, %v3417_v36, %v974_v13  ;;  %v992_v25 = vsub.f32 1.0, %v991_v11  ;;  %v1002_v30 = vor.u32 1.1754944e-38, %v1001_v50  ;;  %v6444_v35 = vld [vmem:[#allocation34_spill] sm:$0xff]  ;;  %v6445_v13 = vld [vmem:[#allocation36_spill] sm:$0xff]  ;;  %v6446_v11 = vld [vmem:[#allocation35_spill] sm:$0xff] }
 0x2ee   :  { %v983_v16 = vsel %vm980_vm12, %v982_v15, %v978_v31  ;;  %v1006_v24 = vmul.f32 %v3421_v14, %v964_v20  ;;  %vm1000_vm0 = vcmp.eq.f32.partialorder %v999_v28, 8.507059e+37  ;;  %v6436_v20 = vld [vmem:[#allocation26_spill] sm:$0xff]  ;;  %v6447_v15 = vld [vmem:[#allocation37_spill] sm:$0xff]  ;;  %v6449_v14 = vld [vmem:[#allocation39_spill] sm:$0xff] }
 0x2ef   :  { %v1005_v23 = vmul.f32 %v983_v16, %v4681_v27  ;;  %v993_v29 = vmul.f32 %v3419_v26, %v992_v25  ;;  %v6437_v27 = vld [vmem:[#allocation28_spill] sm:$0xff]  ;;  %v6440_v25 = vld [vmem:[#allocation30_spill] sm:$0xff]  ;;  %v6451_v16 = vld [vmem:[#allocation41_spill] sm:$0xff] }
 0x2f0   :  { %v6448_v32 = vld [vmem:[#allocation38_spill] sm:$0xff]  ;;  %v6450_v31 = vld [vmem:[#allocation40_spill] sm:$0xff]  ;;  %v6455_v28 = vld [vmem:[#allocation45_spill] sm:$0xff] }
 0x2f1   :  { %v4815_v18 = vadd.f32 %v1006_v24, %v1005_v23  ;;  %v994_v37 = vadd.f32 %v3419_v26, %v993_v29  ;;  %v6438_v23 = vld [vmem:[#allocation27_spill] sm:$0xff]  ;;  %v6439_v24 = vld [vmem:[#allocation29_spill] sm:$0xff]  ;;  %v6452_v29 = vld [vmem:[#allocation42_spill] sm:$0xff] }
 0x2f2   :  { %v6454_v50 = vld [vmem:[#allocation44_spill] sm:$0xff] }
 0x2f3   :  { %3422 = vtanh.f32 %v4815_v18  ;;  %v998_v9 = vsel %vm997_vm15, %v3419_v26, %v994_v37  ;;  %v6441_v26 = vld [vmem:[#allocation32_spill] sm:$0xff]  ;;  %v6453_v37 = vld [vmem:[#allocation43_spill] sm:$0xff] }
 0x2f4   :  { %v1003_v36 = vsel %vm1000_vm0, %v1002_v30, %v998_v9  ;;  %v6456_v9 = vld [vmem:[#allocation46_spill] sm:$0xff]  ;;  %v6457_v30 = vld [vmem:[#allocation48_spill] sm:$0xff] }
 0x2f9   :  { %v3423_v40 = vpop.eup %3422 }
 0x2fa   :  { %v4818_v17 = vmul.f32 %v3423_v40, %v1003_v36  ;;  %v6458_v40 = vld [vmem:[#allocation47_spill] sm:$0xff]  ;;  %v6459_v36 = vld [vmem:[#allocation49_spill] sm:$0xff] }
 0x2fc   :  { %6435 = vst [vmem:[#allocation51_spill] sm:$0xff] %v4818_v17  ;;  %1035 = vmatmul.f32.vlgmr.msrb.gmra.mxu0 %v4818_v17  ;;  %1055 = vmatmul.f32.vlgmr.msrb.gmra.mxu1 %v4818_v17 }
 0x2fd   :  { %1075 = vmatmul.f32.vlgmr.msrb.gmra.mxu2 %v4818_v17  ;;  %1095 = vmatmul.f32.vlgmr.msrb.gmra.mxu3 %v4818_v17  ;;  %v6460_v17 = vld [vmem:[#allocation50_spill] sm:$0xff] }
 0x2fe   :  { %1331 = vmatpush.msrb.mxu0 %v4532_v7  ;;  %1351 = vmatpush.msrb.mxu1 %v4535_v60 }
 0x2ff   :  { %1371 = vmatpush.msrb.mxu2 %v4538_v8  ;;  %1391 = vmatpush.msrb.mxu3 %v4541_v59 }
 0x300   :  { %1332 = vmatpush.msrb.mxu0 %v4544_v38  ;;  %1352 = vmatpush.msrb.mxu1 %v4547_v39 }
 0x301   :  { %1372 = vmatpush.msrb.mxu2 %v4550_v41  ;;  %1392 = vmatpush.msrb.mxu3 %v4553_v42 }
 0x302   :  { %1333 = vmatpush.msrb.mxu0 %v4556_v43  ;;  %1353 = vmatpush.msrb.mxu1 %v4559_v44 }
 0x303   :  { %1373 = vmatpush.msrb.mxu2 %v4562_v45  ;;  %1393 = vmatpush.msrb.mxu3 %v4565_v46 }
 0x304   :  { %1334 = vmatpush.msrb.mxu0 %v4568_v48  ;;  %1354 = vmatpush.msrb.mxu1 %v4571_v49 }
 0x305   :  { %1374 = vmatpush.msrb.mxu2 %v4574_v51  ;;  %1394 = vmatpush.msrb.mxu3 %v4577_v52 }
 0x306   :  { %1335 = vmatpush.msrb.mxu0 %v4580_v53  ;;  %1355 = vmatpush.msrb.mxu1 %v4583_v55 }
 0x307   :  { %1375 = vmatpush.msrb.mxu2 %v4586_v63  ;;  %1395 = vmatpush.msrb.mxu3 %v4589_v3 }
 0x308   :  { %1336 = vmatpush.msrb.mxu0 %v4592_v47  ;;  %1356 = vmatpush.msrb.mxu1 %v4595_v58 }
 0x309   :  { %1376 = vmatpush.msrb.mxu2 %v4598_v0  ;;  %1396 = vmatpush.msrb.mxu3 %v4601_v6 }
 0x30a   :  { %1337 = vmatpush.msrb.mxu0 %v4604_v61  ;;  %1357 = vmatpush.msrb.mxu1 %v4607_v57 }
 0x30b   :  { %1377 = vmatpush.msrb.mxu2 %v4610_v2  ;;  %1397 = vmatpush.msrb.mxu3 %v6400_v1 }
 0x30c   :  { %1338 = vmatpush.msrb.mxu0 %v6401_v33  ;;  %1358 = vmatpush.msrb.mxu1 %v6402_v19 }
 0x30d   :  { %1378 = vmatpush.msrb.mxu2 %v6403_v21  ;;  %1398 = vmatpush.msrb.mxu3 %v6404_v22 }
 0x30e   :  { %1339 = vmatpush.msrb.mxu0 %v4628_v34  ;;  %1359 = vmatpush.msrb.mxu1 %v4631_v54 }
 0x30f   :  { %1379 = vmatpush.msrb.mxu2 %v4634_v62  ;;  %1399 = vmatpush.msrb.mxu3 %v4637_v56 }
 0x310   :  { %1340 = vmatpush.msrb.mxu0 %v4640_v5  ;;  %1360 = vmatpush.msrb.mxu1 %v4643_v4 }
 0x311   :  { %1380 = vmatpush.msrb.mxu2 %v6436_v20  ;;  %1400 = vmatpush.msrb.mxu3 %v6437_v27 }
 0x312   :  { %1341 = vmatpush.msrb.mxu0 %v6438_v23  ;;  %1361 = vmatpush.msrb.mxu1 %v6439_v24 }
 0x313   :  { %1381 = vmatpush.msrb.mxu2 %v6440_v25  ;;  %1401 = vmatpush.msrb.mxu3 %v6441_v26 }
 0x314   :  { %1342 = vmatpush.msrb.mxu0 %v6442_v10  ;;  %1362 = vmatpush.msrb.mxu1 %v6443_v12 }
 0x315   :  { %1382 = vmatpush.msrb.mxu2 %v6444_v35  ;;  %1402 = vmatpush.msrb.mxu3 %v6445_v13  ;;  %v6467_v35 = vld [vmem:[#allocation59_spill] sm:$0xff] }
 0x316   :  { %1343 = vmatpush.msrb.mxu0 %v6446_v11  ;;  %1363 = vmatpush.msrb.mxu1 %v6447_v15 }
 0x317   :  { %1383 = vmatpush.msrb.mxu2 %v6448_v32  ;;  %1403 = vmatpush.msrb.mxu3 %v6449_v14  ;;  %v6465_v32 = vld [vmem:[#allocation58_spill] sm:$0xff] }
 0x318   :  { %1344 = vmatpush.msrb.mxu0 %v6450_v31  ;;  %1364 = vmatpush.msrb.mxu1 %v6451_v16  ;;  %v6461_v31 = vld [vmem:[#allocation52_spill] sm:$0xff]  ;;  %v6462_v16 = vld [vmem:[#allocation70_spill] sm:$0xff] }
 0x319   :  { %1384 = vmatpush.msrb.mxu2 %v6452_v29  ;;  %1404 = vmatpush.msrb.mxu3 %v6453_v37  ;;  %v6463_v29 = vld [vmem:[#allocation57_spill] sm:$0xff]  ;;  %v6464_v37 = vld [vmem:[#allocation71_spill] sm:$0xff] }
 0x31a   :  { %1345 = vmatpush.msrb.mxu0 %v6454_v50  ;;  %1365 = vmatpush.msrb.mxu1 %v6455_v28  ;;  %v223_v14 = vadd.f32 %v6463_v29, %v6462_v16  ;;  %v264_v50 = vadd.f32 %v6465_v32, %v6464_v37 }
 0x31b   :  { %1385 = vmatpush.msrb.mxu2 %v6456_v9  ;;  %1405 = vmatpush.msrb.mxu3 %v6457_v30 }
 0x31c   :  { %1346 = vmatpush.msrb.mxu0 %v6458_v40  ;;  %1366 = vmatpush.msrb.mxu1 %v6459_v36  ;;  %v6466_v40 = vld [vmem:[#allocation74_spill] sm:$0xff] }
 0x31d   :  { %1386 = vmatpush.msrb.mxu2 %v6460_v17  ;;  %1406 = vmatpush.msrb.mxu3 %v6461_v31  ;;  %v346_v36 = vadd.f32 %v6467_v35, %v6466_v40 }
 0x379   :  { %v1036_v15 = vpop.f32.mrf.mxu0  ;;  %v1056_v28 = vpop.f32.mrf.mxu1 }
 0x37a   :  { %v1099_v11 = vadd.f32 %v1036_v15, %v223_v14  ;;  %v1100_v9 = vadd.f32 %v1056_v28, %v264_v50  ;;  %v6468_v14 = vld [vmem:[#allocation76_spill] sm:$0xff] }
 0x37c   :  { %v3313_v13 = vmul.f32 -1.442695, %v1099_v11  ;;  %v3314_v30 = vmul.f32 -1.442695, %v1100_v9  ;;  %v6469_v11 = vld [vmem:[#allocation62_spill] sm:$0xff] }
 0x37d   :  { %v305_v50 = vadd.f32 %v6469_v11, %v6468_v14 }
 0x37e   :  { %3424 = vpow2.f32 %v3313_v13 }
 0x37f   :  { %3426 = vpow2.f32 %v3314_v30 }
 0x380   :  { %v1096_v17 = vpop.f32.mrf.mxu3  ;;  %v1076_v32 = vpop.f32.mrf.mxu2 }
 0x381   :  { %v1102_v12 = vadd.f32 %v1096_v17, %v346_v36  ;;  %v1101_v9 = vadd.f32 %v1076_v32, %v305_v50 }
 0x383   :  { %v3315_v31 = vmul.f32 -1.442695, %v1102_v12 }
 0x384   :  { %v3425_v10 = vpop.eup %3424 }
 0x385   :  { %v3427_v26 = vpop.eup %3426  ;;  %v1106_v29 = vadd.f32 1.0, %v3425_v10  ;;  %3428 = vpow2.f32 %v3315_v31 }
 0x386   :  { %v1125_v16 = vadd.f32 1.0, %v3427_v26 }
 0x387   :  { %3430 = vrcp.f32 %v1106_v29  ;;  %v1118_v40 = vand.u32 2147483648, %v1106_v29  ;;  %v1116_v31 = vand.u32 2147483647, %v1106_v29  ;;  %vm1112_vm3 = vweird.f32 %v1106_v29 }
 0x388   :  { %3432 = vrcp.f32 %v1125_v16  ;;  %v1137_v10 = vand.u32 2147483648, %v1125_v16  ;;  %v1135_v25 = vand.u32 2147483647, %v1125_v16  ;;  %vm1131_vm4 = vweird.f32 %v1125_v16 }
 0x389   :  { %v1119_v32 = vor.u32 1.1754944e-38, %v1118_v40  ;;  %vm1117_vm7 = vcmp.eq.f32.partialorder %v1116_v31, 8.507059e+37 }
 0x38a   :  { %vm1136_vm8 = vcmp.eq.f32.partialorder %v1135_v25, 8.507059e+37 }
 0x38b   :  { %v3429_v15 = vpop.eup %3428 }
 0x38c   :  { %v1145_v13 = vadd.f32 1.0, %v3429_v15 }
 0x38d   :  { %v3431_v28 = vpop.eup %3430 }
 0x38e   :  { %v3433_v35 = vpop.eup %3432  ;;  %v1108_v30 = vmul.f32 %v3431_v28, %v1106_v29  ;;  %3434 = vrcp.f32 %v1145_v13  ;;  %vm1113_vm1 = vweird.f32 %v3431_v28  ;;  %vm1151_vm10 = vweird.f32 %v1145_v13 }
 0x38f   :  { %v1127_v17 = vmul.f32 %v3433_v35, %v1125_v16  ;;  %3436 = vtanh.f32 %v1101_v9  ;;  %vm1132_vm2 = vweird.f32 %v3433_v35  ;;  %vm1114_vm5 = vmor %vm1112_vm3, %vm1113_vm1  ;;  %v1155_v40 = vand.u32 2147483647, %v1145_v13 }
 0x390   :  { %v1109_v12 = vsub.f32 1.0, %v1108_v30  ;;  %vm1133_vm6 = vmor %vm1131_vm4, %vm1132_vm2  ;;  %v1138_v30 = vor.u32 1.1754944e-38, %v1137_v10 }
 0x391   :  { %v1128_v36 = vsub.f32 1.0, %v1127_v17  ;;  %vm1156_vm12 = vcmp.eq.f32.partialorder %v1155_v40, 8.507059e+37 }
 0x392   :  { %v1110_v26 = vmul.f32 %v3431_v28, %v1109_v12 }
 0x393   :  { %v1129_v37 = vmul.f32 %v3433_v35, %v1128_v36 }
 0x394   :  { %v3435_v24 = vpop.eup %3434  ;;  %v1111_v11 = vadd.f32 %v3431_v28, %v1110_v26 }
 0x395   :  { %v1130_v15 = vadd.f32 %v3433_v35, %v1129_v37  ;;  %v1147_v50 = vmul.f32 %v3435_v24, %v1145_v13  ;;  %v3437_v9 = vpop.eup %3436  ;;  %vm1152_vm9 = vweird.f32 %v3435_v24  ;;  %v1157_v37 = vand.u32 2147483648, %v1145_v13 }
 0x396   :  { %v1115_v17 = vsel %vm1114_vm5, %v3431_v28, %v1111_v11  ;;  %vm1153_vm11 = vmor %vm1151_vm10, %vm1152_vm9 }
 0x397   :  { %v1120_v14 = vsel %vm1117_vm7, %v1119_v32, %v1115_v17  ;;  %v1134_v12 = vsel %vm1133_vm6, %v3433_v35, %v1130_v15  ;;  %v1148_v23 = vsub.f32 1.0, %v1147_v50  ;;  %v1158_v10 = vor.u32 1.1754944e-38, %v1157_v37  ;;  %v6502_v17 = vld [vmem:[#allocation76_spill] sm:$0xff] }
 0x398   :  { %v1139_v36 = vsel %vm1136_vm8, %v1138_v30, %v1134_v12  ;;  %v1162_v27 = vmul.f32 %v3437_v9, %v1120_v14  ;;  %v6503_v9 = vld [vmem:[#allocation66_spill] sm:$0xff] }
 0x399   :  { %v1161_v20 = vmul.f32 %v1139_v36, %v4815_v18  ;;  %v1149_v26 = vmul.f32 %v3435_v24, %v1148_v23  ;;  %v6500_v18 = vld [vmem:[#allocation74_spill] sm:$0xff]  ;;  %v308_v12 = vadd.f32 %v6503_v9, %v6502_v17  ;;  %v6504_v9 = vld [vmem:[#allocation64_spill] sm:$0xff] }
 0x39b   :  { %v4897_v29 = vadd.f32 %v1162_v27, %v1161_v20  ;;  %v1150_v16 = vadd.f32 %v3435_v24, %v1149_v26  ;;  %v6501_v20 = vld [vmem:[#allocation63_spill] sm:$0xff] }
 0x39c   :  { %v349_v27 = vadd.f32 %v6501_v20, %v6500_v18  ;;  %v1690_v20 = vld [vmem:[#allocation8 + $0x1a0] sm:$0xff] }
 0x39d   :  { %3438 = vtanh.f32 %v4897_v29  ;;  %v1154_v28 = vsel %vm1153_vm11, %v3435_v24, %v1150_v16 }
 0x39e   :  { %v1159_v35 = vsel %vm1156_vm12, %v1158_v10, %v1154_v28 }
 0x3a3   :  { %v3439_v25 = vpop.eup %3438 }
 0x3a4   :  { %v4900_v31 = vmul.f32 %v3439_v25, %v1159_v35 }
 0x3a6   :  { %1191 = vmatmul.f32.vlgmr.msra.gmra.mxu0 %v4900_v31  ;;  %1211 = vmatmul.f32.vlgmr.msra.gmra.mxu1 %v4900_v31 }
 0x3a7   :  { %1231 = vmatmul.f32.vlgmr.msra.gmra.mxu2 %v4900_v31  ;;  %1251 = vmatmul.f32.vlgmr.msra.gmra.mxu3 %v4900_v31 }
 0x3a8   :  { %1487 = vmatpush.msra.mxu0 %v4532_v7  ;;  %1507 = vmatpush.msra.mxu1 %v4535_v60  ;;  %v6470_v7 = vld [vmem:[#allocation26_spill] sm:$0xff]  ;;  %v6471_v60 = vld [vmem:[#allocation28_spill] sm:$0xff] }
 0x3a9   :  { %1527 = vmatpush.msra.mxu2 %v4538_v8  ;;  %1547 = vmatpush.msra.mxu3 %v4541_v59  ;;  %v6472_v8 = vld [vmem:[#allocation27_spill] sm:$0xff]  ;;  %v6473_v59 = vld [vmem:[#allocation29_spill] sm:$0xff] }
 0x3aa   :  { %1488 = vmatpush.msra.mxu0 %v4544_v38  ;;  %1508 = vmatpush.msra.mxu1 %v4547_v39  ;;  %v6474_v38 = vld [vmem:[#allocation30_spill] sm:$0xff]  ;;  %v6476_v39 = vld [vmem:[#allocation31_spill] sm:$0xff] }
 0x3ab   :  { %1528 = vmatpush.msra.mxu2 %v4550_v41  ;;  %1548 = vmatpush.msra.mxu3 %v4553_v42  ;;  %v6477_v41 = vld [vmem:[#allocation33_spill] sm:$0xff]  ;;  %v6478_v42 = vld [vmem:[#allocation34_spill] sm:$0xff] }
 0x3ac   :  { %1489 = vmatpush.msra.mxu0 %v4556_v43  ;;  %1509 = vmatpush.msra.mxu1 %v4559_v44  ;;  %v6479_v43 = vld [vmem:[#allocation36_spill] sm:$0xff]  ;;  %v6481_v44 = vld [vmem:[#allocation37_spill] sm:$0xff] }
 0x3ad   :  { %1529 = vmatpush.msra.mxu2 %v4562_v45  ;;  %1549 = vmatpush.msra.mxu3 %v4565_v46  ;;  %v6482_v45 = vld [vmem:[#allocation38_spill] sm:$0xff]  ;;  %v6483_v46 = vld [vmem:[#allocation39_spill] sm:$0xff] }
 0x3ae   :  { %1490 = vmatpush.msra.mxu0 %v4568_v48  ;;  %1510 = vmatpush.msra.mxu1 %v4571_v49  ;;  %v6484_v48 = vld [vmem:[#allocation40_spill] sm:$0xff]  ;;  %v6485_v49 = vld [vmem:[#allocation41_spill] sm:$0xff] }
 0x3af   :  { %1530 = vmatpush.msra.mxu2 %v4574_v51  ;;  %1550 = vmatpush.msra.mxu3 %v4577_v52  ;;  %v6486_v51 = vld [vmem:[#allocation42_spill] sm:$0xff]  ;;  %v6487_v52 = vld [vmem:[#allocation43_spill] sm:$0xff] }
 0x3b0   :  { %1491 = vmatpush.msra.mxu0 %v4580_v53  ;;  %1511 = vmatpush.msra.mxu1 %v4583_v55  ;;  %v6488_v53 = vld [vmem:[#allocation44_spill] sm:$0xff]  ;;  %v6489_v55 = vld [vmem:[#allocation45_spill] sm:$0xff] }
 0x3b1   :  { %1531 = vmatpush.msra.mxu2 %v4586_v63  ;;  %1551 = vmatpush.msra.mxu3 %v4589_v3  ;;  %v6490_v63 = vld [vmem:[#allocation46_spill] sm:$0xff]  ;;  %v6491_v3 = vld [vmem:[#allocation48_spill] sm:$0xff] }
 0x3b2   :  { %1492 = vmatpush.msra.mxu0 %v4592_v47  ;;  %1512 = vmatpush.msra.mxu1 %v4595_v58  ;;  %v6492_v47 = vld [vmem:[#allocation47_spill] sm:$0xff]  ;;  %v6493_v58 = vld [vmem:[#allocation49_spill] sm:$0xff] }
 0x3b3   :  { %1532 = vmatpush.msra.mxu2 %v4598_v0  ;;  %1552 = vmatpush.msra.mxu3 %v4601_v6  ;;  %v6494_v0 = vld [vmem:[#allocation50_spill] sm:$0xff]  ;;  %v6495_v6 = vld [vmem:[#allocation52_spill] sm:$0xff] }
 0x3b4   :  { %1493 = vmatpush.msra.mxu0 %v4604_v61  ;;  %1513 = vmatpush.msra.mxu1 %v4607_v57  ;;  %v6496_v61 = vld [vmem:[#allocation70_spill] sm:$0xff]  ;;  %v6497_v57 = vld [vmem:[#allocation60_spill] sm:$0xff] }
 0x3b5   :  { %1533 = vmatpush.msra.mxu2 %v4610_v2  ;;  %1553 = vmatpush.msra.mxu3 %v6400_v1  ;;  %v226_v2 = vadd.f32 %v6497_v57, %v6496_v61 }
 0x3b6   :  { %1494 = vmatpush.msra.mxu0 %v6401_v33  ;;  %1514 = vmatpush.msra.mxu1 %v6402_v19 }
 0x3b7   :  { %1534 = vmatpush.msra.mxu2 %v6403_v21  ;;  %1554 = vmatpush.msra.mxu3 %v6404_v22 }
 0x3b8   :  { %1495 = vmatpush.msra.mxu0 %v4628_v34  ;;  %1515 = vmatpush.msra.mxu1 %v4631_v54  ;;  %v6475_v34 = vld [vmem:[#allocation32_spill] sm:$0xff]  ;;  %v6498_v54 = vld [vmem:[#allocation71_spill] sm:$0xff] }
 0x3b9   :  { %1535 = vmatpush.msra.mxu2 %v4634_v62  ;;  %1555 = vmatpush.msra.mxu3 %v4637_v56  ;;  %v6499_v62 = vld [vmem:[#allocation61_spill] sm:$0xff] }
 0x3ba   :  { %1496 = vmatpush.msra.mxu0 %v4640_v5  ;;  %1516 = vmatpush.msra.mxu1 %v4643_v4  ;;  %v6480_v4 = vld [vmem:[#allocation35_spill] sm:$0xff]  ;;  %v267_v56 = vadd.f32 %v6499_v62, %v6498_v54 }
 0x3bb   :  { %1536 = vmatpush.msra.mxu2 %v6470_v7  ;;  %1556 = vmatpush.msra.mxu3 %v6471_v60 }
 0x3bc   :  { %1497 = vmatpush.msra.mxu0 %v6472_v8  ;;  %1517 = vmatpush.msra.mxu1 %v6473_v59 }
 0x3bd   :  { %1537 = vmatpush.msra.mxu2 %v6474_v38  ;;  %1557 = vmatpush.msra.mxu3 %v6475_v34 }
 0x3be   :  { %1498 = vmatpush.msra.mxu0 %v6476_v39  ;;  %1518 = vmatpush.msra.mxu1 %v6477_v41 }
 0x3bf   :  { %1538 = vmatpush.msra.mxu2 %v6478_v42  ;;  %1558 = vmatpush.msra.mxu3 %v6479_v43 }
 0x3c0   :  { %1499 = vmatpush.msra.mxu0 %v6480_v4  ;;  %1519 = vmatpush.msra.mxu1 %v6481_v44 }
 0x3c1   :  { %1539 = vmatpush.msra.mxu2 %v6482_v45  ;;  %1559 = vmatpush.msra.mxu3 %v6483_v46 }
 0x3c2   :  { %1500 = vmatpush.msra.mxu0 %v6484_v48  ;;  %1520 = vmatpush.msra.mxu1 %v6485_v49 }
 0x3c3   :  { %1540 = vmatpush.msra.mxu2 %v6486_v51  ;;  %1560 = vmatpush.msra.mxu3 %v6487_v52 }
 0x3c4   :  { %1501 = vmatpush.msra.mxu0 %v6488_v53  ;;  %1521 = vmatpush.msra.mxu1 %v6489_v55 }
 0x3c5   :  { %1541 = vmatpush.msra.mxu2 %v6490_v63  ;;  %1561 = vmatpush.msra.mxu3 %v6491_v3 }
 0x3c6   :  { %1502 = vmatpush.msra.mxu0 %v6492_v47  ;;  %1522 = vmatpush.msra.mxu1 %v6493_v58 }
 0x3c7   :  { %1542 = vmatpush.msra.mxu2 %v6494_v0  ;;  %1562 = vmatpush.msra.mxu3 %v6495_v6 }
 0x423   :  { %v1192_v5 = vpop.f32.mrf.mxu0  ;;  %v1212_v1 = vpop.f32.mrf.mxu1 }
 0x424   :  { %v1255_v33 = vadd.f32 %v1192_v5, %v226_v2  ;;  %v1256_v19 = vadd.f32 %v1212_v1, %v267_v56  ;;  %v1699_v56 = vld [vmem:[#allocation8 + $0x1e8] sm:$0xff]  ;;  %v1700_v5 = vld [vmem:[#allocation8 + $0x1f0] sm:$0xff]  ;;  %v1701_v1 = vld [vmem:[#allocation8 + $0x1f8] sm:$0xff] }
 0x426   :  { %v3316_v21 = vmul.f32 -1.442695, %v1255_v33  ;;  %v3317_v22 = vmul.f32 -1.442695, %v1256_v19  ;;  %v1694_v33 = vld [vmem:[#allocation8 + $0x1c0] sm:$0xff]  ;;  %v1695_v19 = vld [vmem:[#allocation8 + $0x1c8] sm:$0xff] }
 0x428   :  { %3440 = vpow2.f32 %v3316_v21  ;;  %v1696_v21 = vld [vmem:[#allocation8 + $0x1d0] sm:$0xff] }
 0x429   :  { %3442 = vpow2.f32 %v3317_v22  ;;  %v1697_v22 = vld [vmem:[#allocation8 + $0x1d8] sm:$0xff] }
 0x42a   :  { %v1252_v23 = vpop.f32.mrf.mxu3  ;;  %v1232_v50 = vpop.f32.mrf.mxu2 }
 0x42b   :  { %v1258_v24 = vadd.f32 %v1252_v23, %v349_v27  ;;  %v1257_v16 = vadd.f32 %v1232_v50, %v308_v12  ;;  %v1691_v27 = vld [vmem:[#allocation8 + $0x1a8] sm:$0xff]  ;;  %v1692_v23 = vld [vmem:[#allocation8 + $0x1b0] sm:$0xff]  ;;  %v229_v12 = vadd.f32 %v6504_v9, %v6496_v61 }
 0x42c   :  { %v1683_v50 = vld [vmem:[#allocation8 + $0x168] sm:$0xff] }
 0x42d   :  { %v3318_v14 = vmul.f32 -1.442695, %v1258_v24  ;;  %v1693_v24 = vld [vmem:[#allocation8 + $0x1b8] sm:$0xff] }
 0x42e   :  { %v3441_v13 = vpop.eup %3440 }
 0x42f   :  { %v3443_v11 = vpop.eup %3442  ;;  %v1262_v32 = vadd.f32 1.0, %v3441_v13  ;;  %3444 = vpow2.f32 %v3318_v14  ;;  %v1686_v14 = vld [vmem:[#allocation8 + $0x180] sm:$0xff]  ;;  %v1687_v13 = vld [vmem:[#allocation8 + $0x188] sm:$0xff] }
 0x430   :  { %v1281_v15 = vadd.f32 1.0, %v3443_v11  ;;  %v1688_v11 = vld [vmem:[#allocation8 + $0x190] sm:$0xff] }
 0x431   :  { %3446 = vrcp.f32 %v1262_v32  ;;  %v1274_v35 = vand.u32 2147483648, %v1262_v32  ;;  %v1272_v8 = vand.u32 2147483647, %v1262_v32  ;;  %vm1268_vm15 = vweird.f32 %v1262_v32 }
 0x432   :  { %3448 = vrcp.f32 %v1281_v15  ;;  %v1293_v7 = vand.u32 2147483648, %v1281_v15  ;;  %v1291_v38 = vand.u32 2147483647, %v1281_v15  ;;  %vm1287_vm0 = vweird.f32 %v1281_v15 }
 0x433   :  { %v1275_v41 = vor.u32 1.1754944e-38, %v1274_v35  ;;  %vm1273_vm3 = vcmp.eq.f32.partialorder %v1272_v8, 8.507059e+37  ;;  %v1674_v8 = vld [vmem:[#allocation8 + $0x120] sm:$0xff] }
 0x434   :  { %v1294_v4 = vor.u32 1.1754944e-38, %v1293_v7  ;;  %vm1292_vm4 = vcmp.eq.f32.partialorder %v1291_v38, 8.507059e+37  ;;  %v1676_v38 = vld [vmem:[#allocation8 + $0x130] sm:$0xff] }
 0x435   :  { %v3445_v30 = vpop.eup %3444 }
 0x436   :  { %v1301_v36 = vadd.f32 1.0, %v3445_v30  ;;  %v1684_v30 = vld [vmem:[#allocation8 + $0x170] sm:$0xff] }
 0x437   :  { %v3447_v26 = vpop.eup %3446 }
 0x438   :  { %v3449_v37 = vpop.eup %3448  ;;  %v1264_v40 = vmul.f32 %v3447_v26, %v1262_v32  ;;  %3450 = vrcp.f32 %v1301_v36  ;;  %vm1269_vm13 = vweird.f32 %v3447_v26  ;;  %v1313_v47 = vand.u32 2147483648, %v1301_v36  ;;  %v1689_v32 = vld [vmem:[#allocation8 + $0x198] sm:$0xff] }
 0x439   :  { %v1283_v28 = vmul.f32 %v3449_v37, %v1281_v15  ;;  %3452 = vtanh.f32 %v1257_v16  ;;  %vm1288_vm14 = vweird.f32 %v3449_v37  ;;  %vm1270_vm1 = vmor %vm1268_vm15, %vm1269_vm13  ;;  %vm1307_vm6 = vweird.f32 %v1301_v36  ;;  %v1682_v15 = vld [vmem:[#allocation8 + $0x160] sm:$0xff]  ;;  %v1685_v16 = vld [vmem:[#allocation8 + $0x178] sm:$0xff] }
 0x43a   :  { %v1265_v10 = vsub.f32 1.0, %v1264_v40  ;;  %vm1289_vm2 = vmor %vm1287_vm0, %vm1288_vm14  ;;  %v1311_v58 = vand.u32 2147483647, %v1301_v36  ;;  %v1314_v6 = vor.u32 1.1754944e-38, %v1313_v47  ;;  %v1663_v47 = vld [vmem:[#allocation8 + $0xc8] sm:$0xff] }
 0x43b   :  { %v1284_v25 = vsub.f32 1.0, %v1283_v28  ;;  %v1678_v28 = vld [vmem:[#allocation8 + $0x140] sm:$0xff] }
 0x43c   :  { %v1266_v60 = vmul.f32 %v3447_v26, %v1265_v10  ;;  %vm1312_vm8 = vcmp.eq.f32.partialorder %v1311_v58, 8.507059e+37  ;;  %v1679_v10 = vld [vmem:[#allocation8 + $0x148] sm:$0xff]  ;;  %v1664_v58 = vld [vmem:[#allocation8 + $0xd0] sm:$0xff] }
 0x43d   :  { %v1285_v59 = vmul.f32 %v3449_v37, %v1284_v25  ;;  %v1680_v25 = vld [vmem:[#allocation8 + $0x150] sm:$0xff] }
 0x43e   :  { %v3451_v34 = vpop.eup %3450  ;;  %v1267_v39 = vadd.f32 %v3447_v26, %v1266_v60  ;;  %v1681_v60 = vld [vmem:[#allocation8 + $0x158] sm:$0xff] }
 0x43f   :  { %v1286_v42 = vadd.f32 %v3449_v37, %v1285_v59  ;;  %v1303_v43 = vmul.f32 %v3451_v34, %v1301_v36  ;;  %v3453_v45 = vpop.eup %3452  ;;  %vm1308_vm5 = vweird.f32 %v3451_v34  ;;  %v6505_v36 = vld [vmem:[#allocation65_spill] sm:$0xff]  ;;  %v1675_v59 = vld [vmem:[#allocation8 + $0x128] sm:$0xff] }
 0x440   :  { %v1271_v44 = vsel %vm1270_vm1, %v3447_v26, %v1267_v39  ;;  %vm1309_vm7 = vmor %vm1307_vm6, %vm1308_vm5  ;;  %v270_v26 = vadd.f32 %v6505_v36, %v6498_v54  ;;  %v1644_v36 = vld [vmem:[#allocation8 + $0x30] sm:$0xff] }
 0x441   :  { %v1276_v46 = vsel %vm1273_vm3, %v1275_v41, %v1271_v44  ;;  %v1290_v48 = vsel %vm1289_vm2, %v3449_v37, %v1286_v42  ;;  %v1304_v49 = vsub.f32 1.0, %v1303_v43  ;;  %v1677_v41 = vld [vmem:[#allocation8 + $0x138] sm:$0xff]  ;;  %v1670_v42 = vld [vmem:[#allocation8 + $0x100] sm:$0xff]  ;;  %v1671_v43 = vld [vmem:[#allocation8 + $0x108] sm:$0xff] }
 0x442   :  { %v1295_v51 = vsel %vm1292_vm4, %v1294_v4, %v1290_v48  ;;  %v1318_v52 = vmul.f32 %v3453_v45, %v1276_v46  ;;  %v1672_v4 = vld [vmem:[#allocation8 + $0x110] sm:$0xff]  ;;  %v1673_v44 = vld [vmem:[#allocation8 + $0x118] sm:$0xff]  ;;  %v6506_v45 = vld [vmem:[#allocation67_spill] sm:$0xff] }
 0x443   :  { %v1317_v53 = vmul.f32 %v1295_v51, %v4897_v29  ;;  %v1305_v55 = vmul.f32 %v3451_v34, %v1304_v49  ;;  %v1698_v29 = vld [vmem:[#allocation8 + $0x1e0] sm:$0xff]  ;;  %v352_v46 = vadd.f32 %v6506_v45, %v6500_v18  ;;  %v1667_v49 = vld [vmem:[#allocation8 + $0xe8] sm:$0xff]  ;;  %v1668_v51 = vld [vmem:[#allocation8 + $0xf0] sm:$0xff] }
 0x444   :  { %v1666_v48 = vld [vmem:[#allocation8 + $0xe0] sm:$0xff] }
 0x445   :  { %v4979_v63 = vadd.f32 %v1318_v52, %v1317_v53  ;;  %v1306_v3 = vadd.f32 %v3451_v34, %v1305_v55  ;;  %v1669_v53 = vld [vmem:[#allocation8 + $0xf8] sm:$0xff] }
 0x447   :  { %3454 = vtanh.f32 %v4979_v63  ;;  %v1310_v0 = vsel %vm1309_vm7, %v3451_v34, %v1306_v3  ;;  %v1662_v3 = vld [vmem:[#allocation8 + $0xc0] sm:$0xff] }
 0x448   :  { %v1315_v2 = vsel %vm1312_vm8, %v1314_v6, %v1310_v0  ;;  %v1665_v0 = vld [vmem:[#allocation8 + $0xd8] sm:$0xff] }
 0x44d   :  { %v3455_v57 = vpop.eup %3454 }
 0x44e   :  { %v4982_v62 = vmul.f32 %v3455_v57, %v1315_v2  ;;  %v1658_v57 = vld [vmem:[#allocation8 + $0xa0] sm:$0xff]  ;;  %v1659_v2 = vld [vmem:[#allocation8 + $0xa8] sm:$0xff] }
 0x450   :  { %1347 = vmatmul.f32.vlgmr.msrb.gmra.mxu0 %v4982_v62  ;;  %1367 = vmatmul.f32.vlgmr.msrb.gmra.mxu1 %v4982_v62 }
 0x451   :  { %1387 = vmatmul.f32.vlgmr.msrb.gmra.mxu2 %v4982_v62  ;;  %1407 = vmatmul.f32.vlgmr.msrb.gmra.mxu3 %v4982_v62 }
 0x452   :  { %1784 = vmatpush.msrb.mxu0 %v1698_v29  ;;  %1825 = vmatpush.msrb.mxu1 %v1699_v56  ;;  %v1660_v29 = vld [vmem:[#allocation8 + $0xb0] sm:$0xff] }
 0x453   :  { %1866 = vmatpush.msrb.mxu2 %v1700_v5  ;;  %1907 = vmatpush.msrb.mxu3 %v1701_v1  ;;  %v1661_v5 = vld [vmem:[#allocation8 + $0xb8] sm:$0xff]  ;;  %v1654_v1 = vld [vmem:[#allocation8 + $0x80] sm:$0xff] }
 0x454   :  { %1785 = vmatpush.msrb.mxu0 %v1694_v33  ;;  %1826 = vmatpush.msrb.mxu1 %v1695_v19  ;;  %v1655_v33 = vld [vmem:[#allocation8 + $0x88] sm:$0xff] }
 0x455   :  { %1867 = vmatpush.msrb.mxu2 %v1696_v21  ;;  %1908 = vmatpush.msrb.mxu3 %v1697_v22  ;;  %v1656_v22 = vld [vmem:[#allocation8 + $0x90] sm:$0xff] }
 0x456   :  { %1786 = vmatpush.msrb.mxu0 %v1690_v20  ;;  %1827 = vmatpush.msrb.mxu1 %v1691_v27  ;;  %v1657_v20 = vld [vmem:[#allocation8 + $0x98] sm:$0xff] }
 0x457   :  { %1868 = vmatpush.msrb.mxu2 %v1692_v23  ;;  %1909 = vmatpush.msrb.mxu3 %v1693_v24  ;;  %v1650_v23 = vld [vmem:[#allocation8 + $0x60] sm:$0xff]  ;;  %v1651_v24 = vld [vmem:[#allocation8 + $0x68] sm:$0xff] }
 0x458   :  { %1787 = vmatpush.msrb.mxu0 %v1686_v14  ;;  %1828 = vmatpush.msrb.mxu1 %v1687_v13  ;;  %v1652_v14 = vld [vmem:[#allocation8 + $0x70] sm:$0xff]  ;;  %v1653_v13 = vld [vmem:[#allocation8 + $0x78] sm:$0xff] }
 0x459   :  { %1869 = vmatpush.msrb.mxu2 %v1688_v11  ;;  %1910 = vmatpush.msrb.mxu3 %v1689_v32  ;;  %v1646_v11 = vld [vmem:[#allocation8 + $0x40] sm:$0xff]  ;;  %v1647_v32 = vld [vmem:[#allocation8 + $0x48] sm:$0xff] }
 0x45a   :  { %1788 = vmatpush.msrb.mxu0 %v1682_v15  ;;  %1829 = vmatpush.msrb.mxu1 %v1683_v50  ;;  %v1648_v15 = vld [vmem:[#allocation8 + $0x50] sm:$0xff]  ;;  %v1649_v50 = vld [vmem:[#allocation8 + $0x58] sm:$0xff] }
 0x45b   :  { %1870 = vmatpush.msrb.mxu2 %v1684_v30  ;;  %1911 = vmatpush.msrb.mxu3 %v1685_v16  ;;  %v1642_v30 = vld [vmem:[#allocation8 + $0x20] sm:$0xff] }
 0x45c   :  { %1789 = vmatpush.msrb.mxu0 %v1678_v28  ;;  %1830 = vmatpush.msrb.mxu1 %v1679_v10  ;;  %v1638_v28 = vld [vmem:[#allocation8] sm:$0xff]  ;;  %v1639_v10 = vld [vmem:[#allocation8 + $0x8] sm:$0xff] }
 0x45d   :  { %1871 = vmatpush.msrb.mxu2 %v1680_v25  ;;  %1912 = vmatpush.msrb.mxu3 %v1681_v60 }
 0x45e   :  { %1790 = vmatpush.msrb.mxu0 %v1674_v8  ;;  %1831 = vmatpush.msrb.mxu1 %v1675_v59 }
 0x45f   :  { %1872 = vmatpush.msrb.mxu2 %v1676_v38  ;;  %1913 = vmatpush.msrb.mxu3 %v1677_v41 }
 0x460   :  { %1791 = vmatpush.msrb.mxu0 %v1670_v42  ;;  %1832 = vmatpush.msrb.mxu1 %v1671_v43 }
 0x461   :  { %1873 = vmatpush.msrb.mxu2 %v1672_v4  ;;  %1914 = vmatpush.msrb.mxu3 %v1673_v44 }
 0x462   :  { %1792 = vmatpush.msrb.mxu0 %v1666_v48  ;;  %1833 = vmatpush.msrb.mxu1 %v1667_v49 }
 0x463   :  { %1874 = vmatpush.msrb.mxu2 %v1668_v51  ;;  %1915 = vmatpush.msrb.mxu3 %v1669_v53 }
 0x464   :  { %1793 = vmatpush.msrb.mxu0 %v1662_v3  ;;  %1834 = vmatpush.msrb.mxu1 %v1663_v47 }
 0x465   :  { %1875 = vmatpush.msrb.mxu2 %v1664_v58  ;;  %1916 = vmatpush.msrb.mxu3 %v1665_v0 }
 0x466   :  { %1794 = vmatpush.msrb.mxu0 %v1658_v57  ;;  %1835 = vmatpush.msrb.mxu1 %v1659_v2 }
 0x467   :  { %1876 = vmatpush.msrb.mxu2 %v1660_v29  ;;  %1917 = vmatpush.msrb.mxu3 %v1661_v5 }
 0x468   :  { %1795 = vmatpush.msrb.mxu0 %v1654_v1  ;;  %1836 = vmatpush.msrb.mxu1 %v1655_v33 }
 0x469   :  { %1877 = vmatpush.msrb.mxu2 %v1656_v22  ;;  %1918 = vmatpush.msrb.mxu3 %v1657_v20 }
 0x46a   :  { %1796 = vmatpush.msrb.mxu0 %v1650_v23  ;;  %1837 = vmatpush.msrb.mxu1 %v1651_v24  ;;  %v6509_v24 = vld [vmem:[#allocation20_spill] sm:$0xff] }
 0x46b   :  { %1878 = vmatpush.msrb.mxu2 %v1652_v14  ;;  %1919 = vmatpush.msrb.mxu3 %v1653_v13  ;;  %v6510_v14 = vld [vmem:[#allocation25_spill] sm:$0xff]  ;;  %v5026_v13 = vld [vmem:[#allocation10 + $0x1e0] sm:$0xff] }
 0x46c   :  { %1797 = vmatpush.msrb.mxu0 %v1646_v11  ;;  %1838 = vmatpush.msrb.mxu1 %v1647_v32  ;;  %v5028_v11 = vld [vmem:[#allocation10 + $0x1e8] sm:$0xff]  ;;  %v5030_v32 = vld [vmem:[#allocation10 + $0x1c0] sm:$0xff] }
 0x46d   :  { %1879 = vmatpush.msrb.mxu2 %v1648_v15  ;;  %1920 = vmatpush.msrb.mxu3 %v1649_v50  ;;  %v5034_v15 = vld [vmem:[#allocation10 + $0x1c8] sm:$0xff]  ;;  %v5036_v50 = vld [vmem:[#allocation10 + $0x1f8] sm:$0xff] }
 0x46e   :  { %1798 = vmatpush.msrb.mxu0 %v1642_v30  ;;  %6511 = vst [vmem:[#allocation19_spill] sm:$0xff] %v5034_v15  ;;  %v5039_v30 = vld [vmem:[#allocation10 + $0x1a0] sm:$0xff] }
 0x46f   :  { %1880 = vmatpush.msrb.mxu2 %v1644_v36  ;;  %6512 = vst [vmem:[#allocation21_spill] sm:$0xff] %v5036_v50  ;;  %v6515_v36 = vld [vmem:[#allocation51_spill] sm:$0xff] }
 0x470   :  { %1799 = vmatpush.msrb.mxu0 %v1638_v28  ;;  %6513 = vst [vmem:[#allocation22_spill] sm:$0xff] %v5039_v30  ;;  %v5079_v28 = vld [vmem:[#allocation10 + $0x168] sm:$0xff] }
 0x4cd   :  { %v1348_v37 = vpop.f32.mrf.mxu0  ;;  %v1368_v40 = vpop.f32.mrf.mxu1 }
 0x4ce   :  { %v1411_v35 = vadd.f32 %v1348_v37, %v229_v12  ;;  %v1412_v7 = vadd.f32 %v1368_v40, %v270_v26  ;;  %v1643_v12 = vld [vmem:[#allocation8 + $0x28] sm:$0xff]  ;;  %v1645_v26 = vld [vmem:[#allocation8 + $0x38] sm:$0xff] }
 0x4cf   :  { %v6507_v37 = vld [vmem:[#allocation72_spill] sm:$0xff]  ;;  %1839 = vmatpush.msrb.mxu1 %v1643_v12  ;;  %1921 = vmatpush.msrb.mxu3 %v1645_v26  ;;  %v5043_v12 = vld [vmem:[#allocation10 + $0x1d8] sm:$0xff]  ;;  %v5062_v26 = vld [vmem:[#allocation10 + $0x1f0] sm:$0xff] }
 0x4d0   :  { %v3319_v34 = vmul.f32 -1.442695, %v1411_v35  ;;  %v3320_v39 = vmul.f32 -1.442695, %v1412_v7  ;;  %v311_v40 = vadd.f32 %v6507_v37, %v6502_v17  ;;  %v1640_v35 = vld [vmem:[#allocation8 + $0x10] sm:$0xff]  ;;  %v1641_v7 = vld [vmem:[#allocation8 + $0x18] sm:$0xff] }
 0x4d1   :  { %1840 = vmatpush.msrb.mxu1 %v1639_v10  ;;  %1881 = vmatpush.msrb.mxu2 %v1640_v35  ;;  %v5067_v37 = vld [vmem:[#allocation10 + $0x1b8] sm:$0xff]  ;;  %v5087_v35 = vld [vmem:[#allocation10 + $0x190] sm:$0xff] }
 0x4d2   :  { %3456 = vpow2.f32 %v3319_v34  ;;  %1922 = vmatpush.msrb.mxu3 %v1641_v7  ;;  %6516 = vst [vmem:[#allocation23_spill] sm:$0xff] %v5067_v37  ;;  %v5081_v10 = vld [vmem:[#allocation10 + $0x198] sm:$0xff] }
 0x4d3   :  { %3458 = vpow2.f32 %v3320_v39  ;;  %v5091_v7 = vld [vmem:[#allocation10 + $0x178] sm:$0xff] }
 0x4d4   :  { %v1408_v52 = vpop.f32.mrf.mxu3  ;;  %v1388_v9 = vpop.f32.mrf.mxu2 }
 0x4d5   :  { %v1414_v55 = vadd.f32 %v1408_v52, %v352_v46  ;;  %v1413_v8 = vadd.f32 %v1388_v9, %v311_v40  ;;  %v5041_v9 = vld [vmem:[#allocation10 + $0x1a8] sm:$0xff] }
 0x4d6   :  { %6514 = vst [vmem:[#allocation24_spill] sm:$0xff] %v5041_v9  ;;  %v5072_v40 = vld [vmem:[#allocation10 + $0x188] sm:$0xff] }
 0x4d7   :  { %v3321_v6 = vmul.f32 -1.442695, %v1414_v55 }
 0x4d8   :  { %v3457_v56 = vpop.eup %3456 }
 0x4d9   :  { %v3459_v19 = vpop.eup %3458  ;;  %v4994_v21 = vadd.f32 1.0, %v3457_v56  ;;  %3460 = vpow2.f32 %v3321_v6 }
 0x4da   :  { %v4996_v27 = vadd.f32 1.0, %v3459_v19 }
 0x4db   :  { %3462 = vrcp.f32 %v4994_v21  ;;  %v1430_v42 = vand.u32 2147483648, %v4994_v21  ;;  %v1428_v44 = vand.u32 2147483647, %v4994_v21  ;;  %vm1424_vm11 = vweird.f32 %v4994_v21 }
 0x4dc   :  { %3464 = vrcp.f32 %v4996_v27  ;;  %v1449_v43 = vand.u32 2147483648, %v4996_v27  ;;  %v1447_v46 = vand.u32 2147483647, %v4996_v27  ;;  %vm1443_vm12 = vweird.f32 %v4996_v27 }
 0x4dd   :  { %v1431_v51 = vor.u32 1.1754944e-38, %v1430_v42  ;;  %vm1429_vm15 = vcmp.eq.f32.partialorder %v1428_v44, 8.507059e+37  ;;  %v5101_v42 = vld [vmem:[#allocation10 + $0x140] sm:$0xff] }
 0x4de   :  { %v1450_v55 = vor.u32 1.1754944e-38, %v1449_v43  ;;  %vm1448_vm0 = vcmp.eq.f32.partialorder %v1447_v46, 8.507059e+37  ;;  %v5103_v43 = vld [vmem:[#allocation10 + $0x148] sm:$0xff] }
 0x4df   :  { %v3461_v16 = vpop.eup %3460  ;;  %v5114_v46 = vld [vmem:[#allocation10 + $0x128] sm:$0xff] }
 0x4e0   :  { %v1457_v25 = vadd.f32 1.0, %v3461_v16  ;;  %v5065_v16 = vld [vmem:[#allocation10 + $0x1d0] sm:$0xff] }
 0x4e1   :  { %v3463_v60 = vpop.eup %3462 }
 0x4e2   :  { %v3465_v59 = vpop.eup %3464  ;;  %v1420_v38 = vmul.f32 %v3463_v60, %v4994_v21  ;;  %3466 = vrcp.f32 %v1457_v25  ;;  %vm1425_vm9 = vweird.f32 %v3463_v60  ;;  %v1469_v33 = vand.u32 2147483648, %v1457_v25 }
 0x4e3   :  { %v1439_v34 = vmul.f32 %v3465_v59, %v4996_v27  ;;  %3468 = vtanh.f32 %v1413_v8  ;;  %vm1444_vm10 = vweird.f32 %v3465_v59  ;;  %vm1426_vm13 = vmor %vm1424_vm11, %vm1425_vm9  ;;  %vm1463_vm2 = vweird.f32 %v1457_v25  ;;  %v6517_v8 = vld [vmem:[#allocation68_spill] sm:$0xff] }
 0x4e4   :  { %v1421_v39 = vsub.f32 1.0, %v1420_v38  ;;  %vm1445_vm14 = vmor %vm1443_vm12, %vm1444_vm10  ;;  %v1467_v19 = vand.u32 2147483647, %v1457_v25  ;;  %v1470_v22 = vor.u32 1.1754944e-38, %v1469_v33  ;;  %v6518_v38 = vld [vmem:[#allocation69_spill] sm:$0xff] }
 0x4e5   :  { %v1440_v41 = vsub.f32 1.0, %v1439_v34  ;;  %v273_v34 = vadd.f32 %v6518_v38, %v6498_v54  ;;  %v5112_v54 = vld [vmem:[#allocation10 + $0x120] sm:$0xff]  ;;  %v5151_v33 = vld [vmem:[#allocation10 + $0x110] sm:$0xff] }
 0x4e6   :  { %v1422_v4 = vmul.f32 %v3463_v60, %v1421_v39  ;;  %vm1468_vm4 = vcmp.eq.f32.partialorder %v1467_v19, 8.507059e+37 }
 0x4e7   :  { %v1441_v45 = vmul.f32 %v3465_v59, %v1440_v41 }
 0x4e8   :  { %v3467_v48 = vpop.eup %3466  ;;  %v1423_v49 = vadd.f32 %v3463_v60, %v1422_v4  ;;  %v5105_v4 = vld [vmem:[#allocation10 + $0x158] sm:$0xff] }
 0x4e9   :  { %v1442_v52 = vadd.f32 %v3465_v59, %v1441_v45  ;;  %v1459_v53 = vmul.f32 %v3467_v48, %v1457_v25  ;;  %v3469_v47 = vpop.eup %3468  ;;  %vm1464_vm1 = vweird.f32 %v3467_v48  ;;  %v5083_v25 = vld [vmem:[#allocation10 + $0x1b0] sm:$0xff] }
 0x4ea   :  { %v1427_v3 = vsel %vm1426_vm13, %v3463_v60, %v1423_v49  ;;  %vm1465_vm3 = vmor %vm1463_vm2, %vm1464_vm1  ;;  %v5094_v60 = vld [vmem:[#allocation10 + $0x170] sm:$0xff] }
 0x4eb   :  { %v1432_v58 = vsel %vm1429_vm15, %v1431_v51, %v1427_v3  ;;  %v1446_v0 = vsel %vm1445_vm14, %v3465_v59, %v1442_v52  ;;  %v1460_v6 = vsub.f32 1.0, %v1459_v53  ;;  %v232_v59 = vadd.f32 %v6517_v8, %v6496_v61  ;;  %v5110_v61 = vld [vmem:[#allocation10 + $0x150] sm:$0xff]  ;;  %v5124_v53 = vld [vmem:[#allocation10 + $0x100] sm:$0xff] }
 0x4ec   :  { %v1451_v57 = vsel %vm1448_vm0, %v1450_v55, %v1446_v0  ;;  %v1474_v2 = vmul.f32 %v3469_v47, %v1432_v58  ;;  %v5122_v52 = vld [vmem:[#allocation10 + $0x130] sm:$0xff]  ;;  %v5126_v55 = vld [vmem:[#allocation10 + $0x108] sm:$0xff]  ;;  %v5129_v3 = vld [vmem:[#allocation10 + $0xe0] sm:$0xff] }
 0x4ed   :  { %v1473_v29 = vmul.f32 %v1451_v57, %v4979_v63  ;;  %v1461_v56 = vmul.f32 %v3467_v48, %v1460_v6  ;;  %v6508_v63 = vld [vmem:[#allocation77_spill] sm:$0xff]  ;;  %v5134_v47 = vld [vmem:[#allocation10 + $0xe8] sm:$0xff]  ;;  %v5136_v58 = vld [vmem:[#allocation10 + $0x118] sm:$0xff] }
 0x4ee   :  { %v6519_v0 = vld [vmem:[#allocation73_spill] sm:$0xff]  ;;  %v5141_v57 = vld [vmem:[#allocation10 + $0xc0] sm:$0xff] }
 0x4ef   :  { %v5011_v5 = vadd.f32 %v1474_v2, %v1473_v29  ;;  %v1462_v1 = vadd.f32 %v3467_v48, %v1461_v56  ;;  %v355_v6 = vadd.f32 %v6519_v0, %v6500_v18  ;;  %v5143_v2 = vld [vmem:[#allocation10 + $0xc8] sm:$0xff]  ;;  %v5145_v29 = vld [vmem:[#allocation10 + $0xf8] sm:$0xff]  ;;  %v5154_v18 = vld [vmem:[#allocation10 + $0xa0] sm:$0xff] }
 0x4f0   :  { %6521 = vst [vmem:[#allocation54_spill] sm:$0xff] %v5154_v18  ;;  %v5177_v8 = vld [vmem:[#allocation10 + $0xb0] sm:$0xff] }
 0x4f1   :  { %3470 = vtanh.f32 %v5011_v5  ;;  %v1466_v21 = vsel %vm1465_vm3, %v3467_v48, %v1462_v1  ;;  %v5117_v48 = vld [vmem:[#allocation10 + $0x138] sm:$0xff]  ;;  %6528 = vst [vmem:[#allocation26_spill] sm:$0xff] %v5177_v8  ;;  %v5205_v0 = vld [vmem:[#allocation10 + $0x70] sm:$0xff] }
 0x4f2   :  { %v1471_v27 = vsel %vm1468_vm4, %v1470_v22, %v1466_v21  ;;  %v5149_v1 = vld [vmem:[#allocation10 + $0xd8] sm:$0xff]  ;;  %v5156_v21 = vld [vmem:[#allocation10 + $0xa8] sm:$0xff]  ;;  %6535 = vst [vmem:[#allocation33_spill] sm:$0xff] %v5205_v0 }
 0x4f3   :  { %6520 = vst [vmem:[#allocation53_spill] sm:$0xff] %v5149_v1  ;;  %v5161_v22 = vld [vmem:[#allocation10 + $0xb8] sm:$0xff] }
 0x4f4   :  { %6522 = vst [vmem:[#allocation56_spill] sm:$0xff] %v5156_v21 }
 0x4f5   :  { %6523 = vst [vmem:[#allocation55_spill] sm:$0xff] %v5161_v22 }
 0x4f7   :  { %v3471_v20 = vpop.eup %3470 }
 0x4f8   :  { %v1477_v23 = vmul.f32 %v3471_v20, %v1471_v27  ;;  %v5163_v20 = vld [vmem:[#allocation10 + $0xf0] sm:$0xff] }
 0x4fa   :  { %1503 = vmatmul.f32.vlgmr.msra.gmra.mxu0 %v1477_v23  ;;  %1523 = vmatmul.f32.vlgmr.msra.gmra.mxu1 %v1477_v23 }
 0x4fb   :  { %1543 = vmatmul.f32.vlgmr.msra.gmra.mxu2 %v1477_v23  ;;  %1563 = vmatmul.f32.vlgmr.msra.gmra.mxu3 %v1477_v23 }
 0x4fc   :  { %1984 = vmatpush.msra.mxu0 %v5026_v13  ;;  %2004 = vmatpush.msra.mxu1 %v5028_v11 }
 0x4fd   :  { %2044 = vmatpush.msra.mxu3 %v5036_v50  ;;  %2024 = vmatpush.msra.mxu2 %v5062_v26 }
 0x4fe   :  { %1985 = vmatpush.msra.mxu0 %v5030_v32  ;;  %2005 = vmatpush.msra.mxu1 %v5034_v15 }
 0x4ff   :  { %2045 = vmatpush.msra.mxu3 %v5043_v12  ;;  %2025 = vmatpush.msra.mxu2 %v5065_v16 }
 0x500   :  { %1986 = vmatpush.msra.mxu0 %v5039_v30  ;;  %2006 = vmatpush.msra.mxu1 %v5041_v9 }
 0x501   :  { %2046 = vmatpush.msra.mxu3 %v5067_v37  ;;  %2026 = vmatpush.msra.mxu2 %v5083_v25 }
 0x502   :  { %1800 = vmatmul.f32.vlgmr.msrb.gmra.mxu0 %v6508_v63  ;;  %1841 = vmatmul.f32.vlgmr.msrb.gmra.mxu1 %v6508_v63 }
 0x503   :  { %1882 = vmatmul.f32.vlgmr.msrb.gmra.mxu2 %v6508_v63  ;;  %1923 = vmatmul.f32.vlgmr.msrb.gmra.mxu3 %v6508_v63  ;;  %v5168_v63 = vld [vmem:[#allocation10 + $0x88] sm:$0xff] }
 0x504   :  { %2007 = vmatpush.msra.mxu1 %v5072_v40  ;;  %2047 = vmatpush.msra.mxu3 %v5081_v10  ;;  %6525 = vst [vmem:[#allocation58_spill] sm:$0xff] %v5168_v63 }
 0x505   :  { %2027 = vmatpush.msra.mxu2 %v5087_v35 }
 0x506   :  { %2008 = vmatpush.msra.mxu1 %v5079_v28  ;;  %2048 = vmatpush.msra.mxu3 %v5091_v7 }
 0x507   :  { %2028 = vmatpush.msra.mxu2 %v5094_v60 }
 0x508   :  { %2009 = vmatpush.msra.mxu1 %v5103_v43  ;;  %2049 = vmatpush.msra.mxu3 %v5105_v4 }
 0x509   :  { %2029 = vmatpush.msra.mxu2 %v5110_v61 }
 0x50a   :  { %1803 = vmatmul.f32.gmra.mxu0 %v6509_v24  ;;  %1844 = vmatmul.f32.gmra.mxu1 %v6509_v24 }
 0x50b   :  { %1885 = vmatmul.f32.gmra.mxu2 %v6509_v24  ;;  %1926 = vmatmul.f32.gmra.mxu3 %v6509_v24  ;;  %v5171_v24 = vld [vmem:[#allocation10 + $0xd0] sm:$0xff] }
 0x50c   :  { %2010 = vmatpush.msra.mxu1 %v5114_v46  ;;  %2050 = vmatpush.msra.mxu3 %v5117_v48  ;;  %6526 = vst [vmem:[#allocation59_spill] sm:$0xff] %v5171_v24 }
 0x50d   :  { %2030 = vmatpush.msra.mxu2 %v5122_v52 }
 0x50e   :  { %2011 = vmatpush.msra.mxu1 %v5126_v55  ;;  %2051 = vmatpush.msra.mxu3 %v5136_v58 }
 0x50f   :  { %2031 = vmatpush.msra.mxu2 %v5151_v33 }
 0x510   :  { %2012 = vmatpush.msra.mxu1 %v5134_v47  ;;  %2052 = vmatpush.msra.mxu3 %v5145_v29 }
 0x511   :  { %2032 = vmatpush.msra.mxu2 %v5163_v20 }
 0x512   :  { %1806 = vmatmul.f32.gmra.mxu0 %v6510_v14  ;;  %1847 = vmatmul.f32.gmra.mxu1 %v6510_v14 }
 0x513   :  { %1888 = vmatmul.f32.gmra.mxu2 %v6510_v14  ;;  %1929 = vmatmul.f32.gmra.mxu3 %v6510_v14 }
 0x514   :  { %2013 = vmatpush.msra.mxu1 %v5143_v2  ;;  %2053 = vmatpush.msra.mxu3 %v5149_v1 }
 0x515   :  { %2033 = vmatpush.msra.mxu2 %v5171_v24 }
 0x516   :  { %2014 = vmatpush.msra.mxu1 %v5156_v21  ;;  %2054 = vmatpush.msra.mxu3 %v5161_v22 }
 0x517   :  { %2034 = vmatpush.msra.mxu2 %v5177_v8 }
 0x518   :  { %2015 = vmatpush.msra.mxu1 %v5168_v63 }
 0x51a   :  { %1809 = vmatmul.f32.gmra.mxu0 %v6515_v36  ;;  %1850 = vmatmul.f32.gmra.mxu1 %v6515_v36 }
 0x51b   :  { %1891 = vmatmul.f32.gmra.mxu2 %v6515_v36  ;;  %1932 = vmatmul.f32.gmra.mxu3 %v6515_v36  ;;  %v5175_v36 = vld [vmem:[#allocation10 + $0x98] sm:$0xff] }
 0x51c   :  { %6527 = vst [vmem:[#allocation62_spill] sm:$0xff] %v5175_v36  ;;  %2055 = vmatpush.msra.mxu3 %v5175_v36  ;;  %v5225_v36 = vld [vmem:[#allocation10 + $0x8] sm:$0xff] }
 0x51d   :  { %6542 = vst [vmem:[#allocation39_spill] sm:$0xff] %v5225_v36 }
 0x522   :  { %1812 = vmatmul.f32.gmra.mxu0 %v4900_v31  ;;  %1853 = vmatmul.f32.gmra.mxu1 %v4900_v31 }
 0x523   :  { %1894 = vmatmul.f32.gmra.mxu2 %v4900_v31  ;;  %1935 = vmatmul.f32.gmra.mxu3 %v4900_v31  ;;  %v5070_v31 = vld [vmem:[#allocation10 + $0x180] sm:$0xff] }
 0x524   :  { %1987 = vmatpush.msra.mxu0 %v5070_v31 }
 0x52a   :  { %1815 = vmatmul.f32.gmra.mxu0 %v4982_v62  ;;  %1856 = vmatmul.f32.gmra.mxu1 %v4982_v62 }
 0x52b   :  { %1897 = vmatmul.f32.gmra.mxu2 %v4982_v62  ;;  %1938 = vmatmul.f32.gmra.mxu3 %v4982_v62  ;;  %v5075_v62 = vld [vmem:[#allocation10 + $0x160] sm:$0xff] }
 0x52c   :  { %1988 = vmatpush.msra.mxu0 %v5075_v62 }
 0x52e   :  { %1989 = vmatpush.msra.mxu0 %v5101_v42 }
 0x530   :  { %1990 = vmatpush.msra.mxu0 %v5112_v54 }
 0x532   :  { %1818 = vmatmul.f32.gmra.mxu0 %v1477_v23  ;;  %1859 = vmatmul.f32.gmra.mxu1 %v1477_v23 }
 0x533   :  { %1900 = vmatmul.f32.gmra.mxu2 %v1477_v23  ;;  %1941 = vmatmul.f32.gmra.mxu3 %v1477_v23  ;;  %v5166_v23 = vld [vmem:[#allocation10 + $0x80] sm:$0xff] }
 0x534   :  { %1991 = vmatpush.msra.mxu0 %v5124_v53  ;;  %6524 = vst [vmem:[#allocation57_spill] sm:$0xff] %v5166_v23 }
 0x536   :  { %1992 = vmatpush.msra.mxu0 %v5129_v3 }
 0x538   :  { %1993 = vmatpush.msra.mxu0 %v5141_v57 }
 0x53a   :  { %1994 = vmatpush.msra.mxu0 %v5154_v18 }
 0x53c   :  { %1995 = vmatpush.msra.mxu0 %v5166_v23 }
 0x577   :  { %v1504_v39 = vpop.f32.mrf.mxu0  ;;  %v1524_v41 = vpop.f32.mrf.mxu1 }
 0x578   :  { %v1567_v44 = vadd.f32 %v1504_v39, %v232_v59  ;;  %v1568_v45 = vadd.f32 %v1524_v41, %v273_v34  ;;  %v5182_v34 = vld [vmem:[#allocation10 + $0x60] sm:$0xff]  ;;  %v5184_v39 = vld [vmem:[#allocation10 + $0x68] sm:$0xff] }
 0x579   :  { %6529 = vst [vmem:[#allocation28_spill] sm:$0xff] %v5182_v34  ;;  %1996 = vmatpush.msra.mxu0 %v5182_v34  ;;  %2016 = vmatpush.msra.mxu1 %v5184_v39 }
 0x57a   :  { %v3322_v49 = vmul.f32 -1.442695, %v1567_v44  ;;  %v3323_v51 = vmul.f32 -1.442695, %v1568_v45  ;;  %6530 = vst [vmem:[#allocation27_spill] sm:$0xff] %v5184_v39  ;;  %v5191_v44 = vld [vmem:[#allocation10 + $0x78] sm:$0xff] }
 0x57b   :  { %6531 = vst [vmem:[#allocation29_spill] sm:$0xff] %v5191_v44  ;;  %v5193_v45 = vld [vmem:[#allocation10 + $0x90] sm:$0xff]  ;;  %2056 = vmatpush.msra.mxu3 %v5191_v44  ;;  %v6540_v39 = vld [vmem:[#allocation75_spill] sm:$0xff] }
 0x57c   :  { %3472 = vpow2.f32 %v3322_v49  ;;  %6532 = vst [vmem:[#allocation30_spill] sm:$0xff] %v5193_v45  ;;  %v5197_v49 = vld [vmem:[#allocation10 + $0x40] sm:$0xff]  ;;  %2035 = vmatpush.msra.mxu2 %v5193_v45  ;;  %v314_v34 = vadd.f32 %v6540_v39, %v6502_v17  ;;  %v5227_v45 = vld [vmem:[#allocation10 + $0x38] sm:$0xff] }
 0x57d   :  { %3474 = vpow2.f32 %v3323_v51  ;;  %6533 = vst [vmem:[#allocation32_spill] sm:$0xff] %v5197_v49  ;;  %v5199_v51 = vld [vmem:[#allocation10 + $0x48] sm:$0xff]  ;;  %1997 = vmatpush.msra.mxu0 %v5197_v49  ;;  %v5223_v44 = vld [vmem:[#allocation10] sm:$0xff]  ;;  %v5235_v49 = vld [vmem:[#allocation10 + $0x18] sm:$0xff] }
 0x57e   :  { %v1564_v56 = vpop.f32.mrf.mxu3  ;;  %6534 = vst [vmem:[#allocation31_spill] sm:$0xff] %v5199_v51  ;;  %2017 = vmatpush.msra.mxu1 %v5199_v51  ;;  %2036 = vmatpush.msra.mxu2 %v5205_v0  ;;  %v5233_v51 = vld [vmem:[#allocation10 + $0x30] sm:$0xff] }
 0x57f   :  { %v1570_v19 = vadd.f32 %v1564_v56, %v355_v6  ;;  %v5207_v6 = vld [vmem:[#allocation10 + $0x58] sm:$0xff]  ;;  %v5211_v56 = vld [vmem:[#allocation10 + $0x20] sm:$0xff]  ;;  %6541 = vst [vmem:[#allocation38_spill] sm:$0xff] %v5223_v44 }
 0x580   :  { %6536 = vst [vmem:[#allocation34_spill] sm:$0xff] %v5207_v6  ;;  %2057 = vmatpush.msra.mxu3 %v5207_v6  ;;  %1998 = vmatpush.msra.mxu0 %v5211_v56 }
 0x581   :  { %v3324_v27 = vmul.f32 -1.442695, %v1570_v19  ;;  %6537 = vst [vmem:[#allocation36_spill] sm:$0xff] %v5211_v56  ;;  %v5213_v19 = vld [vmem:[#allocation10 + $0x28] sm:$0xff] }
 0x582   :  { %v3473_v14 = vpop.eup %3472  ;;  %6538 = vst [vmem:[#allocation35_spill] sm:$0xff] %v5213_v19  ;;  %2018 = vmatpush.msra.mxu1 %v5213_v19  ;;  %2058 = vmatpush.msra.mxu3 %v5227_v45 }
 0x583   :  { %v3475_v59 = vpop.eup %3474  ;;  %v5179_v38 = vadd.f32 1.0, %v3473_v14  ;;  %3476 = vpow2.f32 %v3324_v27  ;;  %v1544_v27 = vpop.f32.mrf.mxu2  ;;  %v5217_v14 = vld [vmem:[#allocation10 + $0x50] sm:$0xff]  ;;  %6543 = vst [vmem:[#allocation40_spill] sm:$0xff] %v5227_v45  ;;  %1999 = vmatpush.msra.mxu0 %v5223_v44 }
 0x584   :  { %v5187_v41 = vadd.f32 1.0, %v3475_v59  ;;  %6539 = vst [vmem:[#allocation37_spill] sm:$0xff] %v5217_v14  ;;  %v1569_v39 = vadd.f32 %v1544_v27, %v314_v34  ;;  %2037 = vmatpush.msra.mxu2 %v5217_v14  ;;  %2019 = vmatpush.msra.mxu1 %v5225_v36 }
 0x585   :  { %3478 = vrcp.f32 %v5179_v38  ;;  %6544 = vst [vmem:[#allocation41_spill] sm:$0xff] %v5233_v51  ;;  %2059 = vmatpush.msra.mxu3 %v5235_v49  ;;  %2136 = vmatpush.msrb.mxu0 %v5026_v13  ;;  %v1586_v45 = vand.u32 2147483648, %v5179_v38  ;;  %vm1580_vm7 = vweird.f32 %v5179_v38 }
 0x586   :  { %3480 = vrcp.f32 %v5187_v41  ;;  %6545 = vst [vmem:[#allocation42_spill] sm:$0xff] %v5235_v49  ;;  %2038 = vmatpush.msra.mxu2 %v5233_v51  ;;  %2156 = vmatpush.msrb.mxu1 %v5028_v11  ;;  %v1605_v36 = vand.u32 2147483648, %v5187_v41  ;;  %v1584_v51 = vand.u32 2147483647, %v5179_v38  ;;  %vm1599_vm8 = vweird.f32 %v5187_v41 }
 0x587   :  { %2196 = vmatpush.msrb.mxu3 %v5036_v50  ;;  %2137 = vmatpush.msrb.mxu0 %v5030_v32 }
 0x588   :  { %2157 = vmatpush.msrb.mxu1 %v5034_v15  ;;  %vm1585_vm11 = vcmp.eq.f32.partialorder %v1584_v51, 8.507059e+37 }
 0x589   :  { %v3477_v59 = vpop.eup %3476  ;;  %2197 = vmatpush.msrb.mxu3 %v5043_v12  ;;  %2138 = vmatpush.msrb.mxu0 %v5039_v30 }
 0x58a   :  { %v5229_v63 = vadd.f32 1.0, %v3477_v59  ;;  %v5243_v59 = vld [vmem:[#allocation10 + $0x10] sm:$0xff]  ;;  %2158 = vmatpush.msrb.mxu1 %v5041_v9 }
 0x58b   :  { %v3479_v17 = vpop.eup %3478  ;;  %6546 = vst [vmem:[#allocation43_spill] sm:$0xff] %v5243_v59  ;;  %2039 = vmatpush.msra.mxu2 %v5243_v59  ;;  %2198 = vmatpush.msrb.mxu3 %v5067_v37 }
 0x58c   :  { %v3481_v6 = vpop.eup %3480  ;;  %v1576_v0 = vmul.f32 %v3479_v17, %v5179_v38  ;;  %3482 = vrcp.f32 %v5229_v63  ;;  %vm1581_vm5 = vweird.f32 %v3479_v17  ;;  %v1606_v38 = vor.u32 1.1754944e-38, %v1605_v36  ;;  %2139 = vmatpush.msrb.mxu0 %v5070_v31  ;;  %2159 = vmatpush.msrb.mxu1 %v5072_v40 }
 0x58d   :  { %v1595_v19 = vmul.f32 %v3481_v6, %v5187_v41  ;;  %3484 = vtanh.f32 %v1569_v39  ;;  %2176 = vmatpush.msrb.mxu2 %v5062_v26  ;;  %vm1600_vm6 = vweird.f32 %v3481_v6  ;;  %vm1582_vm9 = vmor %vm1580_vm7, %vm1581_vm5  ;;  %2199 = vmatpush.msrb.mxu3 %v5081_v10  ;;  %vm1619_vm14 = vweird.f32 %v5229_v63 }
 0x58e   :  { %v1577_v34 = vsub.f32 1.0, %v1576_v0  ;;  %vm1601_vm10 = vmor %vm1599_vm8, %vm1600_vm6  ;;  %2140 = vmatpush.msrb.mxu0 %v5075_v62  ;;  %2160 = vmatpush.msrb.mxu1 %v5079_v28 }
 0x58f   :  { %v1596_v27 = vsub.f32 1.0, %v1595_v19  ;;  %v1603_v19 = vand.u32 2147483647, %v5187_v41  ;;  %2177 = vmatpush.msrb.mxu2 %v5065_v16  ;;  %2200 = vmatpush.msrb.mxu3 %v5091_v7 }
 0x590   :  { %v1578_v44 = vmul.f32 %v3479_v17, %v1577_v34  ;;  %v1587_v34 = vor.u32 1.1754944e-38, %v1586_v45  ;;  %2141 = vmatpush.msrb.mxu0 %v5101_v42  ;;  %2161 = vmatpush.msrb.mxu1 %v5103_v43 }
 0x591   :  { %v1597_v0 = vmul.f32 %v3481_v6, %v1596_v27  ;;  %2178 = vmatpush.msrb.mxu2 %v5083_v25  ;;  %vm1604_vm12 = vcmp.eq.f32.partialorder %v1603_v19, 8.507059e+37  ;;  %2201 = vmatpush.msrb.mxu3 %v5105_v4  ;;  %v6547_v19 = vld [vmem:[#allocation58_spill] sm:$0xff] }
 0x592   :  { %v5260_v39 = vpop.eup %3482  ;;  %v1579_v50 = vadd.f32 %v3479_v17, %v1578_v44  ;;  %2142 = vmatpush.msrb.mxu0 %v5112_v54  ;;  %2162 = vmatpush.msrb.mxu1 %v5114_v46 }
 0x593   :  { %v1598_v27 = vadd.f32 %v3481_v6, %v1597_v0  ;;  %v1615_v15 = vmul.f32 %v5260_v39, %v5229_v63  ;;  %v3485_v41 = vpop.eup %3484  ;;  %2179 = vmatpush.msrb.mxu2 %v5087_v35  ;;  %vm1620_vm13 = vweird.f32 %v5260_v39  ;;  %2202 = vmatpush.msrb.mxu3 %v5117_v48 }
 0x594   :  { %v1583_v44 = vsel %vm1582_vm9, %v3479_v17, %v1579_v50  ;;  %vm1621_vm15 = vmor %vm1619_vm14, %vm1620_vm13  ;;  %2143 = vmatpush.msrb.mxu0 %v5124_v53  ;;  %2163 = vmatpush.msrb.mxu1 %v5126_v55 }
 0x595   :  { %v1588_v30 = vsel %vm1585_vm11, %v1587_v34, %v1583_v44  ;;  %v1602_v45 = vsel %vm1601_vm10, %v3481_v6, %v1598_v27  ;;  %v1616_v0 = vsub.f32 1.0, %v1615_v15  ;;  %2180 = vmatpush.msrb.mxu2 %v5094_v60  ;;  %2203 = vmatpush.msrb.mxu3 %v5136_v58  ;;  %v6549_v34 = vld [vmem:[#allocation62_spill] sm:$0xff]  ;;  %v6550_v27 = vld [vmem:[#allocation28_spill] sm:$0xff]  ;;  %v6552_v44 = vld [vmem:[#allocation33_spill] sm:$0xff] }
 0x596   :  { %v1607_v9 = vsel %vm1604_vm12, %v1606_v38, %v1602_v45  ;;  %v1630_v37 = vmul.f32 %v3485_v41, %v1588_v30  ;;  %2144 = vmatpush.msrb.mxu0 %v5129_v3  ;;  %2164 = vmatpush.msrb.mxu1 %v5134_v47  ;;  %v6551_v38 = vld [vmem:[#allocation27_spill] sm:$0xff]  ;;  %v6553_v41 = vld [vmem:[#allocation29_spill] sm:$0xff]  ;;  %v6554_v45 = vld [vmem:[#allocation32_spill] sm:$0xff] }
 0x597   :  { %v1629_v50 = vmul.f32 %v1607_v9, %v5011_v5  ;;  %v1617_v36 = vmul.f32 %v5260_v39, %v1616_v0  ;;  %2181 = vmatpush.msrb.mxu2 %v5110_v61  ;;  %v1625_v5 = vand.u32 2147483648, %v5229_v63  ;;  %v1623_v9 = vand.u32 2147483647, %v5229_v63  ;;  %2204 = vmatpush.msrb.mxu3 %v5145_v29  ;;  %v6555_v0 = vld [vmem:[#allocation31_spill] sm:$0xff] }
 0x598   :  { %2145 = vmatpush.msrb.mxu0 %v5141_v57  ;;  %2165 = vmatpush.msrb.mxu1 %v5143_v2 }
 0x599   :  { %v1631_v15 = vadd.f32 %v1630_v37, %v1629_v50  ;;  %v1618_v30 = vadd.f32 %v5260_v39, %v1617_v36  ;;  %2182 = vmatpush.msrb.mxu2 %v5122_v52  ;;  %v1626_v51 = vor.u32 1.1754944e-38, %v1625_v5  ;;  %vm1624_vm0 = vcmp.eq.f32.partialorder %v1623_v9, 8.507059e+37  ;;  %2205 = vmatpush.msrb.mxu3 %v5149_v1  ;;  %v6557_v36 = vld [vmem:[#allocation34_spill] sm:$0xff]  ;;  %v6560_v5 = vld [vmem:[#allocation40_spill] sm:$0xff] }
 0x59a   :  { %2146 = vmatpush.msrb.mxu0 %v5154_v18  ;;  %2166 = vmatpush.msrb.mxu1 %v5156_v21  ;;  %v6556_v50 = vmov 0.0   ;;  %v6561_v9 = vld [vmem:[#allocation38_spill] sm:$0xff] }
 0x59b   :  { %3486 = vtanh.f32 %v1631_v15  ;;  %1637 = vst [vmem:[#allocation14] sm:$0xff] %v1631_v15  ;;  %v1622_v37 = vsel %vm1621_vm15, %v5260_v39, %v1618_v30  ;;  %2183 = vmatpush.msrb.mxu2 %v5151_v33  ;;  %2206 = vmatpush.msrb.mxu3 %v5161_v22  ;;  %v6548_v39 = vld [vmem:[#allocation30_spill] sm:$0xff]  ;;  %v6558_v15 = vld [vmem:[#allocation35_spill] sm:$0xff]  ;;  %v6559_v30 = vld [vmem:[#allocation41_spill] sm:$0xff] }
 0x59c   :  { %v1627_v6 = vsel %vm1624_vm0, %v1626_v51, %v1622_v37  ;;  %2147 = vmatpush.msrb.mxu0 %v5166_v23  ;;  %2167 = vmatpush.msrb.mxu1 %v6547_v19  ;;  %v6562_v37 = vld [vmem:[#allocation39_spill] sm:$0xff]  ;;  %v6563_v51 = vld [vmem:[#allocation21_spill] sm:$0xff] }
 0x59d   :  { %2184 = vmatpush.msrb.mxu2 %v5163_v20  ;;  %2207 = vmatpush.msrb.mxu3 %v6549_v34 }
 0x59e   :  { %2148 = vmatpush.msrb.mxu0 %v6550_v27  ;;  %2168 = vmatpush.msrb.mxu1 %v6551_v38 }
 0x59f   :  { %2185 = vmatpush.msrb.mxu2 %v5171_v24  ;;  %2208 = vmatpush.msrb.mxu3 %v6553_v41 }
 0x5a0   :  { %2149 = vmatpush.msrb.mxu0 %v6554_v45  ;;  %2169 = vmatpush.msrb.mxu1 %v6555_v0 }
 0x5a1   :  { %v3487_v63 = vpop.eup %3486  ;;  %2186 = vmatpush.msrb.mxu2 %v5177_v8  ;;  %2209 = vmatpush.msrb.mxu3 %v6557_v36 }
 0x5a2   :  { %v1633_v17 = vmul.f32 %v3487_v63, %v1627_v6  ;;  %2150 = vmatpush.msrb.mxu0 %v5211_v56  ;;  %2170 = vmatpush.msrb.mxu1 %v6558_v15  ;;  %v6564_v63 = vld [vmem:[#allocation19_spill] sm:$0xff]  ;;  %v6565_v6 = vld [vmem:[#allocation22_spill] sm:$0xff] }
 0x5a3   :  { %2187 = vmatpush.msrb.mxu2 %v6548_v39  ;;  %2210 = vmatpush.msrb.mxu3 %v6560_v5 }
 0x5a4   :  { %1821 = vmatmul.f32.gmra.mxu0 %v1633_v17  ;;  %1636 = vst [vmem:[#allocation12] sm:$0xff] %v1633_v17  ;;  %1862 = vmatmul.f32.gmra.mxu1 %v1633_v17 }
 0x5a5   :  { %1903 = vmatmul.f32.gmra.mxu2 %v1633_v17  ;;  %1944 = vmatmul.f32.gmra.mxu3 %v1633_v17  ;;  %v6566_v17 = vld [vmem:[#allocation24_spill] sm:$0xff] }
 0x5a6   :  { %2188 = vmatpush.msrb.mxu2 %v6552_v44  ;;  %2151 = vmatpush.msrb.mxu0 %v6561_v9 }
 0x5a7   :  { %2171 = vmatpush.msrb.mxu1 %v6562_v37  ;;  %2211 = vmatpush.msrb.mxu3 %v5235_v49 }
 0x5a8   :  { %2189 = vmatpush.msrb.mxu2 %v5217_v14 }
 0x5aa   :  { %2190 = vmatpush.msrb.mxu2 %v6559_v30 }
 0x5ac   :  { %2000 = vmatmul.f32.vlgmr.msra.gmra.mxu0 %v6556_v50  ;;  %2020 = vmatmul.f32.vlgmr.msra.gmra.mxu1 %v6556_v50 }
 0x5ad   :  { %2040 = vmatmul.f32.vlgmr.msra.gmra.mxu2 %v6556_v50  ;;  %2060 = vmatmul.f32.vlgmr.msra.gmra.mxu3 %v6556_v50  ;;  %v6567_v50 = vld [vmem:[#allocation23_spill] sm:$0xff] }
 0x5ae   :  { %2191 = vmatpush.msrb.mxu2 %v5243_v59  ;;  %2289 = vmatpush.msra.mxu0 %v5026_v13 }
 0x5af   :  { %2309 = vmatpush.msra.mxu1 %v5028_v11  ;;  %2349 = vmatpush.msra.mxu3 %v6563_v51 }
 0x5b0   :  { %2329 = vmatpush.msra.mxu2 %v5062_v26  ;;  %2290 = vmatpush.msra.mxu0 %v5030_v32 }
 0x5b1   :  { %2310 = vmatpush.msra.mxu1 %v6564_v63  ;;  %2350 = vmatpush.msra.mxu3 %v5043_v12 }
 0x5b2   :  { %2330 = vmatpush.msra.mxu2 %v5065_v16  ;;  %2291 = vmatpush.msra.mxu0 %v6565_v6 }
 0x5b3   :  { %2311 = vmatpush.msra.mxu1 %v6566_v17  ;;  %2351 = vmatpush.msra.mxu3 %v6567_v50 }
 0x5b4   :  { %2331 = vmatpush.msra.mxu2 %v5083_v25  ;;  %2292 = vmatpush.msra.mxu0 %v5070_v31 }
 0x5b5   :  { %2312 = vmatpush.msra.mxu1 %v5072_v40  ;;  %2352 = vmatpush.msra.mxu3 %v5081_v10 }
 0x5b6   :  { %2332 = vmatpush.msra.mxu2 %v5087_v35  ;;  %2293 = vmatpush.msra.mxu0 %v5075_v62 }
 0x5b7   :  { %2313 = vmatpush.msra.mxu1 %v5079_v28  ;;  %2353 = vmatpush.msra.mxu3 %v5091_v7 }
 0x5b8   :  { %2333 = vmatpush.msra.mxu2 %v5094_v60  ;;  %2294 = vmatpush.msra.mxu0 %v5101_v42 }
 0x5b9   :  { %2314 = vmatpush.msra.mxu1 %v5103_v43  ;;  %2354 = vmatpush.msra.mxu3 %v5105_v4 }
 0x5ba   :  { %2334 = vmatpush.msra.mxu2 %v5110_v61  ;;  %2295 = vmatpush.msra.mxu0 %v5112_v54 }
 0x5bb   :  { %2315 = vmatpush.msra.mxu1 %v5114_v46  ;;  %2355 = vmatpush.msra.mxu3 %v5117_v48 }
 0x5bc   :  { %2335 = vmatpush.msra.mxu2 %v5122_v52  ;;  %2296 = vmatpush.msra.mxu0 %v5124_v53 }
 0x5bd   :  { %2316 = vmatpush.msra.mxu1 %v5126_v55  ;;  %2356 = vmatpush.msra.mxu3 %v5136_v58 }
 0x5be   :  { %2336 = vmatpush.msra.mxu2 %v5151_v33  ;;  %2297 = vmatpush.msra.mxu0 %v5129_v3 }
 0x5bf   :  { %2317 = vmatpush.msra.mxu1 %v5134_v47  ;;  %2357 = vmatpush.msra.mxu3 %v5145_v29 }
 0x5c0   :  { %2337 = vmatpush.msra.mxu2 %v5163_v20  ;;  %2298 = vmatpush.msra.mxu0 %v5141_v57 }
 0x5c1   :  { %2318 = vmatpush.msra.mxu1 %v5143_v2  ;;  %2358 = vmatpush.msra.mxu3 %v5149_v1 }
 0x5c2   :  { %2338 = vmatpush.msra.mxu2 %v5171_v24  ;;  %2299 = vmatpush.msra.mxu0 %v5154_v18 }
 0x5c3   :  { %2319 = vmatpush.msra.mxu1 %v5156_v21  ;;  %2359 = vmatpush.msra.mxu3 %v5161_v22 }
 0x5c4   :  { %2339 = vmatpush.msra.mxu2 %v5177_v8  ;;  %2300 = vmatpush.msra.mxu0 %v5166_v23 }
 0x5c5   :  { %2320 = vmatpush.msra.mxu1 %v6547_v19  ;;  %2360 = vmatpush.msra.mxu3 %v6549_v34 }
 0x5c6   :  { %2340 = vmatpush.msra.mxu2 %v6548_v39  ;;  %2301 = vmatpush.msra.mxu0 %v6550_v27 }
 0x5c7   :  { %2321 = vmatpush.msra.mxu1 %v6551_v38  ;;  %2361 = vmatpush.msra.mxu3 %v6553_v41 }
 0x5c8   :  { %2341 = vmatpush.msra.mxu2 %v6552_v44  ;;  %2302 = vmatpush.msra.mxu0 %v6554_v45  ;;  %v1924_v45 = vpop.f32.mrf.mxu3 }
 0x5c9   :  { %2322 = vmatpush.msra.mxu1 %v6555_v0  ;;  %2362 = vmatpush.msra.mxu3 %v6557_v36  ;;  %v1801_v0 = vpop.f32.mrf.mxu0 }
 0x5ca   :  { %2342 = vmatpush.msra.mxu2 %v5217_v14  ;;  %2303 = vmatpush.msra.mxu0 %v5211_v56  ;;  %v1842_v14 = vpop.f32.mrf.mxu1 }
 0x5cb   :  { %2323 = vmatpush.msra.mxu1 %v6558_v15  ;;  %2363 = vmatpush.msra.mxu3 %v6560_v5  ;;  %v1883_v15 = vpop.f32.mrf.mxu2 }
 0x5cc   :  { %2343 = vmatpush.msra.mxu2 %v6559_v30  ;;  %2304 = vmatpush.msra.mxu0 %v6561_v9 }
 0x5cd   :  { %2324 = vmatpush.msra.mxu1 %v6562_v37  ;;  %2364 = vmatpush.msra.mxu3 %v5235_v49 }
 0x5ce   :  { %2344 = vmatpush.msra.mxu2 %v5243_v59 }
 0x5d0   :  { %v5405_v41 = vpop.f32.mrf.mxu3 }
 0x5d1   :  { %v5401_v36 = vpop.f32.mrf.mxu0  ;;  %6570 = vst [vmem:[#allocation46_spill] sm:$0xff] %v5405_v41 }
 0x5d2   :  { %6568 = vst [vmem:[#allocation44_spill] sm:$0xff] %v5401_v36  ;;  %v5403_v56 = vpop.f32.mrf.mxu1 }
 0x5d3   :  { %6569 = vst [vmem:[#allocation45_spill] sm:$0xff] %v5403_v56  ;;  %v5411_v9 = vpop.f32.mrf.mxu2 }
 0x5d4   :  { %6573 = vst [vmem:[#allocation49_spill] sm:$0xff] %v5411_v9 }
 0x5d8   :  { %v5413_v37 = vpop.f32.mrf.mxu3 }
 0x5d9   :  { %v5407_v30 = vpop.f32.mrf.mxu0  ;;  %6574 = vst [vmem:[#allocation50_spill] sm:$0xff] %v5413_v37 }
 0x5da   :  { %6571 = vst [vmem:[#allocation48_spill] sm:$0xff] %v5407_v30  ;;  %v5409_v5 = vpop.f32.mrf.mxu1 }
 0x5db   :  { %6572 = vst [vmem:[#allocation47_spill] sm:$0xff] %v5409_v5  ;;  %v5419_v44 = vpop.f32.mrf.mxu2 }
 0x5dc   :  { %6577 = vst [vmem:[#allocation60_spill] sm:$0xff] %v5419_v44 }
 0x5e0   :  { %v5421_v36 = vpop.f32.mrf.mxu3 }
 0x5e1   :  { %v5415_v59 = vpop.f32.mrf.mxu0  ;;  %6578 = vst [vmem:[#allocation71_spill] sm:$0xff] %v5421_v36 }
 0x5e2   :  { %6575 = vst [vmem:[#allocation52_spill] sm:$0xff] %v5415_v59  ;;  %v5417_v49 = vpop.f32.mrf.mxu1 }
 0x5e3   :  { %6576 = vst [vmem:[#allocation70_spill] sm:$0xff] %v5417_v49  ;;  %v5427_v41 = vpop.f32.mrf.mxu2 }
 0x5e4   :  { %6581 = vst [vmem:[#allocation63_spill] sm:$0xff] %v5427_v41 }
 0x5e8   :  { %v5429_v30 = vpop.f32.mrf.mxu3 }
 0x5e9   :  { %v5423_v56 = vpop.f32.mrf.mxu0  ;;  %6582 = vst [vmem:[#allocation76_spill] sm:$0xff] %v5429_v30  ;;  %v1766_v30 = vld [vmem:[%s6022_s6] sm:$0xf]  ;;  %s3902_s6 = smov [#allocation12]  }
 0x5ea   :  { %6579 = vst [vmem:[#allocation61_spill] sm:$0xff] %v5423_v56  ;;  %v5425_v38 = vpop.f32.mrf.mxu1  ;;  %v5464_v39 = vperm.slane %v1766_v30, 3  ;;  %s6004_s11 = sshll.u32 %s3902_s6, 4  ;;  %s3225_s11 = int_to_ptr.vmem [resolvable:$true] %s6004_s11 }
 0x5eb   :  { %6580 = vst [vmem:[#allocation74_spill] sm:$0xff] %v5425_v38  ;;  %v5435_v37 = vpop.f32.mrf.mxu2 }
 0x5ec   :  { %6585 = vst [vmem:[#allocation65_spill] sm:$0xff] %v5435_v37  ;;  %v5456_v37 = vperm.slane %v1766_v30, 1  ;;  %v1925_v19 = vadd.f32 %v1924_v45, %v5464_v39 }
 0x5ed   :  { %6597 = vst [vmem:[#allocation19_spill] sm:$0xff] %v5464_v39 }
 0x5ee   :  { %6594 = vst [vmem:[#allocation73_spill] sm:$0xff] %v5456_v37 }
 0x5f0   :  { %v5437_v59 = vpop.f32.mrf.mxu3 }
 0x5f1   :  { %v5431_v5 = vpop.f32.mrf.mxu0  ;;  %6586 = vst [vmem:[#allocation67_spill] sm:$0xff] %v5437_v59 }
 0x5f2   :  { %6583 = vst [vmem:[#allocation66_spill] sm:$0xff] %v5431_v5  ;;  %v5433_v9 = vpop.f32.mrf.mxu1 }
 0x5f3   :  { %6584 = vst [vmem:[#allocation64_spill] sm:$0xff] %v5433_v9  ;;  %v5443_v36 = vpop.f32.mrf.mxu2  ;;  %v5454_v9 = vperm.slane %v1766_v30, 0 }
 0x5f4   :  { %6589 = vst [vmem:[#allocation20_spill] sm:$0xff] %v5443_v36 }
 0x5f5   :  { %6593 = vst [vmem:[#allocation69_spill] sm:$0xff] %v5454_v9 }
 0x5f8   :  { %v5445_v56 = vpop.f32.mrf.mxu3 }
 0x5f9   :  { %v5439_v49 = vpop.f32.mrf.mxu0  ;;  %6590 = vst [vmem:[#allocation25_spill] sm:$0xff] %v5445_v56 }
 0x5fa   :  { %6587 = vst [vmem:[#allocation72_spill] sm:$0xff] %v5439_v49  ;;  %v5441_v44 = vpop.f32.mrf.mxu1  ;;  %v1802_v49 = vadd.f32 %v1801_v0, %v5454_v9 }
 0x5fb   :  { %6588 = vst [vmem:[#allocation77_spill] sm:$0xff] %v5441_v44  ;;  %v1843_v44 = vadd.f32 %v1842_v14, %v5456_v37  ;;  %v5460_v59 = vpop.f32.mrf.mxu2 }
 0x5fc   :  { %6595 = vst [vmem:[#allocation75_spill] sm:$0xff] %v5460_v59 }
 0x621   :  { %v5450_v38 = vpop.f32.mrf.mxu0  ;;  %v5452_v5 = vpop.f32.mrf.mxu1 }
 0x622   :  { %6591 = vst [vmem:[#allocation51_spill] sm:$0xff] %v5450_v38 }
 0x623   :  { %6592 = vst [vmem:[#allocation68_spill] sm:$0xff] %v5452_v5 }
 0x628   :  { %v5462_v36 = vpop.f32.mrf.mxu3  ;;  %v5467_v23 = vpop.f32.mrf.mxu2 }
 0x629   :  { %6596 = vst [vmem:[#allocation21_spill] sm:$0xff] %v5462_v36  ;;  %v2001_v56 = vpop.f32.mrf.mxu0  ;;  %v2021_v41 = vpop.f32.mrf.mxu1 }
 0x62a   :  { %v2064_v27 = vadd.f32 %v2001_v56, %v1802_v49  ;;  %v2065_v34 = vadd.f32 %v2021_v41, %v1843_v44  ;;  %6598 = vst [vmem:[#allocation22_spill] sm:$0xff] %v5467_v23  ;;  %v5469_v49 = vperm.slane %v1766_v30, 2 }
 0x62c   :  { %v3325_v38 = vmul.f32 -1.442695, %v2064_v27  ;;  %v3326_v5 = vmul.f32 -1.442695, %v2065_v34  ;;  %6599 = vst [vmem:[#allocation24_spill] sm:$0xff] %v5469_v49  ;;  %v1884_v27 = vadd.f32 %v1883_v15, %v5469_v49 }
 0x62e   :  { %3488 = vpow2.f32 %v3325_v38 }
 0x62f   :  { %3490 = vpow2.f32 %v3326_v5 }
 0x630   :  { %v2061_v0 = vpop.f32.mrf.mxu3  ;;  %v2041_v56 = vpop.f32.mrf.mxu2 }
 0x631   :  { %v2067_v14 = vadd.f32 %v2061_v0, %v1925_v19  ;;  %v2066_v41 = vadd.f32 %v2041_v56, %v1884_v27 }
 0x633   :  { %v3327_v37 = vmul.f32 -1.442695, %v2067_v14 }
 0x634   :  { %v3489_v59 = vpop.eup %3488 }
 0x635   :  { %v3491_v9 = vpop.eup %3490  ;;  %v2071_v36 = vadd.f32 1.0, %v3489_v59  ;;  %3492 = vpow2.f32 %v3327_v37 }
 0x636   :  { %v2090_v22 = vadd.f32 1.0, %v3491_v9 }
 0x637   :  { %3494 = vrcp.f32 %v2071_v36  ;;  %v2083_v59 = vand.u32 2147483648, %v2071_v36  ;;  %v2081_v37 = vand.u32 2147483647, %v2071_v36  ;;  %vm2077_vm3 = vweird.f32 %v2071_v36 }
 0x638   :  { %3496 = vrcp.f32 %v2090_v22  ;;  %v2102_v9 = vand.u32 2147483648, %v2090_v22  ;;  %v2100_v39 = vand.u32 2147483647, %v2090_v22  ;;  %vm2096_vm4 = vweird.f32 %v2090_v22 }
 0x639   :  { %v2084_v56 = vor.u32 1.1754944e-38, %v2083_v59  ;;  %vm2082_vm6 = vcmp.eq.f32.partialorder %v2081_v37, 8.507059e+37 }
 0x63a   :  { %v2103_v49 = vor.u32 1.1754944e-38, %v2102_v9  ;;  %vm2101_vm8 = vcmp.eq.f32.partialorder %v2100_v39, 8.507059e+37 }
 0x63b   :  { %v3493_v34 = vpop.eup %3492 }
 0x63c   :  { %v2110_v38 = vadd.f32 1.0, %v3493_v34 }
 0x63d   :  { %v3495_v44 = vpop.eup %3494 }
 0x63e   :  { %v3497_v45 = vpop.eup %3496  ;;  %v2073_v5 = vmul.f32 %v3495_v44, %v2071_v36  ;;  %3498 = vrcp.f32 %v2110_v38  ;;  %vm2078_vm1 = vweird.f32 %v3495_v44  ;;  %vm2116_vm10 = vweird.f32 %v2110_v38 }
 0x63f   :  { %v2092_v19 = vmul.f32 %v3497_v45, %v2090_v22  ;;  %3500 = vtanh.f32 %v2066_v41  ;;  %vm2097_vm2 = vweird.f32 %v3497_v45  ;;  %vm2079_vm5 = vmor %vm2077_vm3, %vm2078_vm1  ;;  %v2120_v36 = vand.u32 2147483647, %v2110_v38 }
 0x640   :  { %v2074_v0 = vsub.f32 1.0, %v2073_v5  ;;  %vm2098_vm7 = vmor %vm2096_vm4, %vm2097_vm2 }
 0x641   :  { %v2093_v14 = vsub.f32 1.0, %v2092_v19  ;;  %vm2121_vm12 = vcmp.eq.f32.partialorder %v2120_v36, 8.507059e+37 }
 0x642   :  { %v2075_v30 = vmul.f32 %v3495_v44, %v2074_v0 }
 0x643   :  { %v2094_v23 = vmul.f32 %v3497_v45, %v2093_v14 }
 0x644   :  { %v3499_v8 = vpop.eup %3498  ;;  %v2076_v15 = vadd.f32 %v3495_v44, %v2075_v30 }
 0x645   :  { %v2095_v34 = vadd.f32 %v3497_v45, %v2094_v23  ;;  %v2112_v27 = vmul.f32 %v3499_v8, %v2110_v38  ;;  %v3501_v41 = vpop.eup %3500  ;;  %vm2117_vm9 = vweird.f32 %v3499_v8  ;;  %v2122_v23 = vand.u32 2147483648, %v2110_v38 }
 0x646   :  { %v2080_v5 = vsel %vm2079_vm5, %v3495_v44, %v2076_v15  ;;  %vm2118_vm11 = vmor %vm2116_vm10, %vm2117_vm9 }
 0x647   :  { %v2085_v19 = vsel %vm2082_vm6, %v2084_v56, %v2080_v5  ;;  %v2099_v0 = vsel %vm2098_vm7, %v3497_v45, %v2095_v34  ;;  %v2113_v21 = vsub.f32 1.0, %v2112_v27  ;;  %v2123_v59 = vor.u32 1.1754944e-38, %v2122_v23  ;;  %v6632_v5 = vld [vmem:[#allocation24_spill] sm:$0xff] }
 0x648   :  { %v2104_v14 = vsel %vm2101_vm8, %v2103_v49, %v2099_v0  ;;  %v2127_v18 = vmul.f32 %v3501_v41, %v2085_v19  ;;  %v6633_v41 = vld [vmem:[#allocation49_spill] sm:$0xff] }
 0x649   :  { %v2126_v1 = vmul.f32 0.0, %v2104_v14  ;;  %v2114_v24 = vmul.f32 %v3499_v8, %v2113_v21  ;;  %v1887_v19 = vadd.f32 %v6633_v41, %v6632_v5  ;;  %v5611_v41 = vld [vmem:[#allocation10 + $0x140] sm:$0xff] }
 0x64b   :  { %v5472_v30 = vadd.f32 %v2127_v18, %v2126_v1  ;;  %v2115_v22 = vadd.f32 %v3499_v8, %v2114_v24 }
 0x64d   :  { %3502 = vtanh.f32 %v5472_v30  ;;  %v2119_v44 = vsel %vm2118_vm11, %v3499_v8, %v2115_v22 }
 0x64e   :  { %v2124_v39 = vsel %vm2121_vm12, %v2123_v59, %v2119_v44 }
 0x653   :  { %v3503_v45 = vpop.eup %3502 }
 0x654   :  { %v2130_v9 = vmul.f32 %v3503_v45, %v2124_v39 }
 0x656   :  { %2131 = vst [vmem:[#allocation11] sm:$0xff] %v2130_v9  ;;  %2152 = vmatmul.f32.vlgmr.msrb.gmra.mxu0 %v2130_v9  ;;  %2172 = vmatmul.f32.vlgmr.msrb.gmra.mxu1 %v2130_v9 }
 0x657   :  { %2192 = vmatmul.f32.vlgmr.msrb.gmra.mxu2 %v2130_v9  ;;  %2212 = vmatmul.f32.vlgmr.msrb.gmra.mxu3 %v2130_v9 }
 0x658   :  { %2442 = vmatpush.msrb.mxu0 %v5026_v13  ;;  %2462 = vmatpush.msrb.mxu1 %v5028_v11  ;;  %v6600_v13 = vld [vmem:[#allocation59_spill] sm:$0xff]  ;;  %v6601_v11 = vld [vmem:[#allocation53_spill] sm:$0xff] }
 0x659   :  { %2482 = vmatpush.msrb.mxu2 %v5062_v26  ;;  %2502 = vmatpush.msrb.mxu3 %v6563_v51  ;;  %v6604_v26 = vld [vmem:[#allocation26_spill] sm:$0xff]  ;;  %v6630_v51 = vld [vmem:[#allocation19_spill] sm:$0xff] }
 0x65a   :  { %2443 = vmatpush.msrb.mxu0 %v5030_v32  ;;  %2463 = vmatpush.msrb.mxu1 %v6564_v63  ;;  %v6602_v32 = vld [vmem:[#allocation54_spill] sm:$0xff] }
 0x65b   :  { %2483 = vmatpush.msrb.mxu2 %v5065_v16  ;;  %2503 = vmatpush.msrb.mxu3 %v5043_v12  ;;  %v6603_v12 = vld [vmem:[#allocation56_spill] sm:$0xff]  ;;  %v6605_v16 = vld [vmem:[#allocation55_spill] sm:$0xff]  ;;  %v6631_v63 = vld [vmem:[#allocation46_spill] sm:$0xff] }
 0x65c   :  { %2444 = vmatpush.msrb.mxu0 %v6565_v6  ;;  %2464 = vmatpush.msrb.mxu1 %v6566_v17  ;;  %v1928_v6 = vadd.f32 %v6631_v63, %v6630_v51  ;;  %v5578_v63 = vld [vmem:[#allocation10 + $0x1a8] sm:$0xff] }
 0x65d   :  { %2484 = vmatpush.msrb.mxu2 %v5083_v25  ;;  %2504 = vmatpush.msrb.mxu3 %v6567_v50  ;;  %v6611_v25 = vld [vmem:[#allocation27_spill] sm:$0xff] }
 0x65e   :  { %2445 = vmatpush.msrb.mxu0 %v5070_v31  ;;  %2465 = vmatpush.msrb.mxu1 %v5072_v40  ;;  %v6606_v31 = vld [vmem:[#allocation57_spill] sm:$0xff]  ;;  %v6607_v40 = vld [vmem:[#allocation58_spill] sm:$0xff] }
 0x65f   :  { %2485 = vmatpush.msrb.mxu2 %v5087_v35  ;;  %2505 = vmatpush.msrb.mxu3 %v5081_v10  ;;  %v6610_v10 = vld [vmem:[#allocation28_spill] sm:$0xff]  ;;  %v6612_v35 = vld [vmem:[#allocation33_spill] sm:$0xff] }
 0x660   :  { %2446 = vmatpush.msrb.mxu0 %v5075_v62  ;;  %2466 = vmatpush.msrb.mxu1 %v5079_v28  ;;  %v6608_v62 = vld [vmem:[#allocation30_spill] sm:$0xff] }
 0x661   :  { %2486 = vmatpush.msrb.mxu2 %v5094_v60  ;;  %2506 = vmatpush.msrb.mxu3 %v5091_v7  ;;  %v6609_v28 = vld [vmem:[#allocation62_spill] sm:$0xff]  ;;  %v6613_v7 = vld [vmem:[#allocation29_spill] sm:$0xff]  ;;  %v6614_v60 = vld [vmem:[#allocation32_spill] sm:$0xff] }
 0x662   :  { %2447 = vmatpush.msrb.mxu0 %v5101_v42  ;;  %2467 = vmatpush.msrb.mxu1 %v5103_v43  ;;  %v6615_v42 = vld [vmem:[#allocation31_spill] sm:$0xff]  ;;  %v6616_v43 = vld [vmem:[#allocation37_spill] sm:$0xff] }
 0x663   :  { %2487 = vmatpush.msrb.mxu2 %v5110_v61  ;;  %2507 = vmatpush.msrb.mxu3 %v5105_v4  ;;  %v6617_v4 = vld [vmem:[#allocation34_spill] sm:$0xff]  ;;  %v6618_v61 = vld [vmem:[#allocation36_spill] sm:$0xff] }
 0x664   :  { %2448 = vmatpush.msrb.mxu0 %v5112_v54  ;;  %2468 = vmatpush.msrb.mxu1 %v5114_v46  ;;  %v6619_v54 = vld [vmem:[#allocation35_spill] sm:$0xff]  ;;  %v6620_v46 = vld [vmem:[#allocation41_spill] sm:$0xff] }
 0x665   :  { %2488 = vmatpush.msrb.mxu2 %v5122_v52  ;;  %2508 = vmatpush.msrb.mxu3 %v5117_v48  ;;  %v6621_v48 = vld [vmem:[#allocation40_spill] sm:$0xff]  ;;  %v6622_v52 = vld [vmem:[#allocation38_spill] sm:$0xff] }
 0x666   :  { %2449 = vmatpush.msrb.mxu0 %v5124_v53  ;;  %2469 = vmatpush.msrb.mxu1 %v5126_v55  ;;  %v6623_v53 = vld [vmem:[#allocation39_spill] sm:$0xff] }
 0x667   :  { %2489 = vmatpush.msrb.mxu2 %v5151_v33  ;;  %2509 = vmatpush.msrb.mxu3 %v5136_v58  ;;  %v6624_v55 = vld [vmem:[#allocation43_spill] sm:$0xff]  ;;  %v6627_v58 = vld [vmem:[#allocation44_spill] sm:$0xff] }
 0x668   :  { %2450 = vmatpush.msrb.mxu0 %v5129_v3  ;;  %2470 = vmatpush.msrb.mxu1 %v5134_v47  ;;  %v6625_v3 = vld [vmem:[#allocation42_spill] sm:$0xff]  ;;  %v6626_v47 = vld [vmem:[#allocation69_spill] sm:$0xff] }
 0x669   :  { %2490 = vmatpush.msrb.mxu2 %v5163_v20  ;;  %2510 = vmatpush.msrb.mxu3 %v5145_v29  ;;  %v6629_v29 = vld [vmem:[#allocation45_spill] sm:$0xff] }
 0x66a   :  { %2451 = vmatpush.msrb.mxu0 %v5141_v57  ;;  %2471 = vmatpush.msrb.mxu1 %v5143_v2  ;;  %v1805_v57 = vadd.f32 %v6627_v58, %v6626_v47  ;;  %v6628_v2 = vld [vmem:[#allocation73_spill] sm:$0xff] }
 0x66b   :  { %2491 = vmatpush.msrb.mxu2 %v6600_v13  ;;  %2511 = vmatpush.msrb.mxu3 %v6601_v11  ;;  %v1846_v1 = vadd.f32 %v6629_v29, %v6628_v2  ;;  %v5554_v29 = vld [vmem:[#allocation10 + $0x1e8] sm:$0xff] }
 0x66c   :  { %2452 = vmatpush.msrb.mxu0 %v6602_v32  ;;  %2472 = vmatpush.msrb.mxu1 %v6603_v12 }
 0x66d   :  { %2492 = vmatpush.msrb.mxu2 %v6604_v26  ;;  %2512 = vmatpush.msrb.mxu3 %v6605_v16 }
 0x66e   :  { %2453 = vmatpush.msrb.mxu0 %v6606_v31  ;;  %2473 = vmatpush.msrb.mxu1 %v6607_v40 }
 0x66f   :  { %2493 = vmatpush.msrb.mxu2 %v6608_v62  ;;  %2513 = vmatpush.msrb.mxu3 %v6609_v28 }
 0x670   :  { %2454 = vmatpush.msrb.mxu0 %v6610_v10  ;;  %2474 = vmatpush.msrb.mxu1 %v6611_v25 }
 0x671   :  { %2494 = vmatpush.msrb.mxu2 %v6612_v35  ;;  %2514 = vmatpush.msrb.mxu3 %v6613_v7 }
 0x672   :  { %2455 = vmatpush.msrb.mxu0 %v6614_v60  ;;  %2475 = vmatpush.msrb.mxu1 %v6615_v42 }
 0x673   :  { %2495 = vmatpush.msrb.mxu2 %v6616_v43  ;;  %2515 = vmatpush.msrb.mxu3 %v6617_v4 }
 0x674   :  { %2456 = vmatpush.msrb.mxu0 %v6618_v61  ;;  %2476 = vmatpush.msrb.mxu1 %v6619_v54 }
 0x675   :  { %2496 = vmatpush.msrb.mxu2 %v6620_v46  ;;  %2516 = vmatpush.msrb.mxu3 %v6621_v48 }
 0x676   :  { %2457 = vmatpush.msrb.mxu0 %v6622_v52  ;;  %2477 = vmatpush.msrb.mxu1 %v6623_v53 }
 0x677   :  { %2497 = vmatpush.msrb.mxu2 %v6624_v55  ;;  %2517 = vmatpush.msrb.mxu3 %v6625_v3 }
 0x6d3   :  { %v2153_v33 = vpop.f32.mrf.mxu0  ;;  %v2173_v18 = vpop.f32.mrf.mxu1 }
 0x6d4   :  { %v2216_v21 = vadd.f32 %v2153_v33, %v1805_v57  ;;  %v2217_v20 = vadd.f32 %v2173_v18, %v1846_v1  ;;  %v5557_v1 = vld [vmem:[#allocation10 + $0x1f0] sm:$0xff]  ;;  %v5560_v33 = vld [vmem:[#allocation10 + $0x1f8] sm:$0xff]  ;;  %v5563_v18 = vld [vmem:[#allocation10 + $0x1c0] sm:$0xff] }
 0x6d6   :  { %v3328_v24 = vmul.f32 -1.442695, %v2216_v21  ;;  %v3329_v8 = vmul.f32 -1.442695, %v2217_v20  ;;  %v5566_v21 = vld [vmem:[#allocation10 + $0x1c8] sm:$0xff]  ;;  %v5569_v20 = vld [vmem:[#allocation10 + $0x1d0] sm:$0xff] }
 0x6d8   :  { %3504 = vpow2.f32 %v3328_v24  ;;  %v5572_v24 = vld [vmem:[#allocation10 + $0x1d8] sm:$0xff] }
 0x6d9   :  { %3506 = vpow2.f32 %v3329_v8  ;;  %v5575_v8 = vld [vmem:[#allocation10 + $0x1a0] sm:$0xff] }
 0x6da   :  { %v2213_v17 = vpop.f32.mrf.mxu3  ;;  %v2193_v34 = vpop.f32.mrf.mxu2 }
 0x6db   :  { %v2219_v50 = vadd.f32 %v2213_v17, %v1928_v6  ;;  %v2218_v22 = vadd.f32 %v2193_v34, %v1887_v19  ;;  %v5581_v6 = vld [vmem:[#allocation10 + $0x1b0] sm:$0xff]  ;;  %v5584_v17 = vld [vmem:[#allocation10 + $0x1b8] sm:$0xff]  ;;  %v5614_v19 = vld [vmem:[#allocation10 + $0x148] sm:$0xff] }
 0x6dc   :  { %v5605_v34 = vld [vmem:[#allocation10 + $0x170] sm:$0xff] }
 0x6dd   :  { %v3330_v49 = vmul.f32 -1.442695, %v2219_v50  ;;  %v5587_v50 = vld [vmem:[#allocation10 + $0x180] sm:$0xff] }
 0x6de   :  { %v3505_v38 = vpop.eup %3504 }
 0x6df   :  { %v3507_v37 = vpop.eup %3506  ;;  %v2223_v15 = vadd.f32 1.0, %v3505_v38  ;;  %3508 = vpow2.f32 %v3330_v49  ;;  %v5590_v49 = vld [vmem:[#allocation10 + $0x188] sm:$0xff]  ;;  %v5593_v38 = vld [vmem:[#allocation10 + $0x190] sm:$0xff] }
 0x6e0   :  { %v2242_v56 = vadd.f32 1.0, %v3507_v37  ;;  %v5596_v37 = vld [vmem:[#allocation10 + $0x198] sm:$0xff] }
 0x6e1   :  { %3510 = vrcp.f32 %v2223_v15  ;;  %v2235_v39 = vand.u32 2147483648, %v2223_v15  ;;  %v2233_v11 = vand.u32 2147483647, %v2223_v15  ;;  %vm2229_vm15 = vweird.f32 %v2223_v15 }
 0x6e2   :  { %3512 = vrcp.f32 %v2242_v56  ;;  %v2254_v9 = vand.u32 2147483648, %v2242_v56  ;;  %v2252_v12 = vand.u32 2147483647, %v2242_v56  ;;  %vm2248_vm0 = vweird.f32 %v2242_v56 }
 0x6e3   :  { %v2236_v31 = vor.u32 1.1754944e-38, %v2235_v39  ;;  %vm2234_vm3 = vcmp.eq.f32.partialorder %v2233_v11, 8.507059e+37  ;;  %v5641_v39 = vld [vmem:[#allocation10 + $0x110] sm:$0xff]  ;;  %v5650_v11 = vld [vmem:[#allocation10 + $0xe8] sm:$0xff] }
 0x6e4   :  { %v2255_v28 = vor.u32 1.1754944e-38, %v2254_v9  ;;  %vm2253_vm4 = vcmp.eq.f32.partialorder %v2252_v12, 8.507059e+37  ;;  %v5644_v9 = vld [vmem:[#allocation10 + $0x118] sm:$0xff] }
 0x6e5   :  { %v3509_v27 = vpop.eup %3508  ;;  %v5656_v12 = vld [vmem:[#allocation10 + $0xf8] sm:$0xff] }
 0x6e6   :  { %v2262_v0 = vadd.f32 1.0, %v3509_v27  ;;  %v5608_v27 = vld [vmem:[#allocation10 + $0x178] sm:$0xff] }
 0x6e7   :  { %v3511_v14 = vpop.eup %3510 }
 0x6e8   :  { %v3513_v23 = vpop.eup %3512  ;;  %v2225_v36 = vmul.f32 %v3511_v14, %v2223_v15  ;;  %3514 = vrcp.f32 %v2262_v0  ;;  %vm2230_vm13 = vweird.f32 %v3511_v14  ;;  %v2274_v48 = vand.u32 2147483648, %v2262_v0  ;;  %v5599_v15 = vld [vmem:[#allocation10 + $0x160] sm:$0xff] }
 0x6e9   :  { %v2244_v44 = vmul.f32 %v3513_v23, %v2242_v56  ;;  %3516 = vtanh.f32 %v2218_v22  ;;  %vm2249_vm14 = vweird.f32 %v3513_v23  ;;  %vm2231_vm1 = vmor %vm2229_vm15, %vm2230_vm13  ;;  %vm2268_vm6 = vweird.f32 %v2262_v0  ;;  %v5602_v56 = vld [vmem:[#allocation10 + $0x168] sm:$0xff]  ;;  %v5623_v22 = vld [vmem:[#allocation10 + $0x120] sm:$0xff] }
 0x6ea   :  { %v2226_v59 = vsub.f32 1.0, %v2225_v36  ;;  %vm2250_vm2 = vmor %vm2248_vm0, %vm2249_vm14  ;;  %v2272_v52 = vand.u32 2147483647, %v2262_v0  ;;  %v2275_v55 = vor.u32 1.1754944e-38, %v2274_v48  ;;  %v5629_v36 = vld [vmem:[#allocation10 + $0x130] sm:$0xff]  ;;  %v5707_v48 = vld [vmem:[#allocation10 + $0x40] sm:$0xff] }
 0x6eb   :  { %v2245_v45 = vsub.f32 1.0, %v2244_v44  ;;  %v5632_v44 = vld [vmem:[#allocation10 + $0x138] sm:$0xff]  ;;  %6648 = vst [vmem:[#allocation29_spill] sm:$0xff] %v5707_v48 }
 0x6ec   :  { %v2227_v13 = vmul.f32 %v3511_v14, %v2226_v59  ;;  %vm2273_vm8 = vcmp.eq.f32.partialorder %v2272_v52, 8.507059e+37  ;;  %v5635_v59 = vld [vmem:[#allocation10 + $0x100] sm:$0xff]  ;;  %v5710_v52 = vld [vmem:[#allocation10 + $0x48] sm:$0xff] }
 0x6ed   :  { %v2246_v32 = vmul.f32 %v3513_v23, %v2245_v45  ;;  %v5638_v45 = vld [vmem:[#allocation10 + $0x108] sm:$0xff]  ;;  %6649 = vst [vmem:[#allocation32_spill] sm:$0xff] %v5710_v52 }
 0x6ee   :  { %v3515_v26 = vpop.eup %3514  ;;  %v2228_v16 = vadd.f32 %v3511_v14, %v2227_v13  ;;  %v5647_v13 = vld [vmem:[#allocation10 + $0xe0] sm:$0xff] }
 0x6ef   :  { %v2247_v40 = vadd.f32 %v3513_v23, %v2246_v32  ;;  %v2264_v62 = vmul.f32 %v3515_v26, %v2262_v0  ;;  %v3517_v25 = vpop.eup %3516  ;;  %vm2269_vm5 = vweird.f32 %v3515_v26  ;;  %v5617_v0 = vld [vmem:[#allocation10 + $0x150] sm:$0xff] }
 0x6f0   :  { %v2232_v10 = vsel %vm2231_vm1, %v3511_v14, %v2228_v16  ;;  %vm2270_vm7 = vmor %vm2268_vm6, %vm2269_vm5  ;;  %v5620_v14 = vld [vmem:[#allocation10 + $0x158] sm:$0xff]  ;;  %v5653_v32 = vld [vmem:[#allocation10 + $0xf0] sm:$0xff] }
 0x6f1   :  { %v2237_v35 = vsel %vm2234_vm3, %v2236_v31, %v2232_v10  ;;  %v2251_v7 = vsel %vm2250_vm2, %v3513_v23, %v2247_v40  ;;  %v2265_v60 = vsub.f32 1.0, %v2264_v62  ;;  %v5626_v23 = vld [vmem:[#allocation10 + $0x128] sm:$0xff]  ;;  %v5665_v31 = vld [vmem:[#allocation10 + $0xd0] sm:$0xff]  ;;  %v5668_v40 = vld [vmem:[#allocation10 + $0xd8] sm:$0xff] }
 0x6f2   :  { %v2256_v42 = vsel %vm2253_vm4, %v2255_v28, %v2251_v7  ;;  %v2279_v43 = vmul.f32 %v3517_v25, %v2237_v35  ;;  %v5662_v16 = vld [vmem:[#allocation10 + $0xc8] sm:$0xff]  ;;  %6634 = vst [vmem:[#allocation23_spill] sm:$0xff] %v5665_v31  ;;  %v5671_v62 = vld [vmem:[#allocation10 + $0xa0] sm:$0xff]  ;;  %v5677_v10 = vld [vmem:[#allocation10 + $0xb0] sm:$0xff] }
 0x6f3   :  { %v2278_v4 = vmul.f32 %v2256_v42, %v5472_v30  ;;  %v2266_v61 = vmul.f32 %v3515_v26, %v2265_v60  ;;  %v5551_v30 = vld [vmem:[#allocation10 + $0x1e0] sm:$0xff]  ;;  %6635 = vst [vmem:[#allocation59_spill] sm:$0xff] %v5668_v40  ;;  %v5674_v28 = vld [vmem:[#allocation10 + $0xa8] sm:$0xff]  ;;  %v5680_v25 = vld [vmem:[#allocation10 + $0xb8] sm:$0xff] }
 0x6f4   :  { %6636 = vst [vmem:[#allocation53_spill] sm:$0xff] %v5671_v62  ;;  %v5683_v35 = vld [vmem:[#allocation10 + $0x80] sm:$0xff]  ;;  %v5686_v7 = vld [vmem:[#allocation10 + $0x88] sm:$0xff]  ;;  %v5689_v60 = vld [vmem:[#allocation10 + $0x90] sm:$0xff] }
 0x6f5   :  { %v5548_v54 = vadd.f32 %v2279_v43, %v2278_v4  ;;  %v2267_v46 = vadd.f32 %v3515_v26, %v2266_v61  ;;  %6637 = vst [vmem:[#allocation54_spill] sm:$0xff] %v5674_v28  ;;  %v5692_v42 = vld [vmem:[#allocation10 + $0x98] sm:$0xff]  ;;  %v5695_v43 = vld [vmem:[#allocation10 + $0x60] sm:$0xff]  ;;  %v5698_v4 = vld [vmem:[#allocation10 + $0x68] sm:$0xff] }
 0x6f6   :  { %6638 = vst [vmem:[#allocation56_spill] sm:$0xff] %v5677_v10  ;;  %v5701_v61 = vld [vmem:[#allocation10 + $0x70] sm:$0xff] }
 0x6f7   :  { %3518 = vtanh.f32 %v5548_v54  ;;  %v2271_v53 = vsel %vm2270_vm7, %v3515_v26, %v2267_v46  ;;  %v5659_v26 = vld [vmem:[#allocation10 + $0xc0] sm:$0xff]  ;;  %6639 = vst [vmem:[#allocation26_spill] sm:$0xff] %v5680_v25  ;;  %v5704_v46 = vld [vmem:[#allocation10 + $0x78] sm:$0xff] }
 0x6f8   :  { %v2276_v58 = vsel %vm2273_vm8, %v2275_v55, %v2271_v53  ;;  %6640 = vst [vmem:[#allocation55_spill] sm:$0xff] %v5683_v35  ;;  %v5713_v53 = vld [vmem:[#allocation10 + $0x50] sm:$0xff]  ;;  %v5716_v55 = vld [vmem:[#allocation10 + $0x58] sm:$0xff] }
 0x6f9   :  { %6641 = vst [vmem:[#allocation57_spill] sm:$0xff] %v5686_v7 }
 0x6fa   :  { %6642 = vst [vmem:[#allocation58_spill] sm:$0xff] %v5689_v60 }
 0x6fb   :  { %6643 = vst [vmem:[#allocation30_spill] sm:$0xff] %v5692_v42 }
 0x6fc   :  { %6644 = vst [vmem:[#allocation62_spill] sm:$0xff] %v5695_v43 }
 0x6fd   :  { %v3519_v3 = vpop.eup %3518  ;;  %6645 = vst [vmem:[#allocation28_spill] sm:$0xff] %v5698_v4 }
 0x6fe   :  { %v2282_v57 = vmul.f32 %v3519_v3, %v2276_v58  ;;  %6646 = vst [vmem:[#allocation27_spill] sm:$0xff] %v5701_v61  ;;  %v5719_v3 = vld [vmem:[#allocation10 + $0x20] sm:$0xff]  ;;  %v5722_v58 = vld [vmem:[#allocation10 + $0x28] sm:$0xff] }
 0x6ff   :  { %6647 = vst [vmem:[#allocation33_spill] sm:$0xff] %v5704_v46 }
 0x700   :  { %2284 = vst [vmem:[#allocation11 + $0x8] sm:$0xff] %v2282_v57  ;;  %2305 = vmatmul.f32.vlgmr.msra.gmra.mxu0 %v2282_v57  ;;  %2325 = vmatmul.f32.vlgmr.msra.gmra.mxu1 %v2282_v57 }
 0x701   :  { %2345 = vmatmul.f32.vlgmr.msra.gmra.mxu2 %v2282_v57  ;;  %2365 = vmatmul.f32.vlgmr.msra.gmra.mxu3 %v2282_v57  ;;  %6650 = vst [vmem:[#allocation31_spill] sm:$0xff] %v5713_v53  ;;  %v5725_v57 = vld [vmem:[#allocation10 + $0x30] sm:$0xff] }
 0x702   :  { %2595 = vmatpush.msra.mxu0 %v5551_v30  ;;  %2615 = vmatpush.msra.mxu1 %v5554_v29  ;;  %6651 = vst [vmem:[#allocation37_spill] sm:$0xff] %v5716_v55 }
 0x703   :  { %2635 = vmatpush.msra.mxu2 %v5557_v1  ;;  %2655 = vmatpush.msra.mxu3 %v5560_v33  ;;  %6652 = vst [vmem:[#allocation34_spill] sm:$0xff] %v5719_v3 }
 0x704   :  { %2596 = vmatpush.msra.mxu0 %v5563_v18  ;;  %2616 = vmatpush.msra.mxu1 %v5566_v21  ;;  %6653 = vst [vmem:[#allocation36_spill] sm:$0xff] %v5722_v58 }
 0x705   :  { %2636 = vmatpush.msra.mxu2 %v5569_v20  ;;  %2656 = vmatpush.msra.mxu3 %v5572_v24  ;;  %6654 = vst [vmem:[#allocation35_spill] sm:$0xff] %v5725_v57 }
 0x706   :  { %2597 = vmatpush.msra.mxu0 %v5575_v8  ;;  %2617 = vmatpush.msra.mxu1 %v5578_v63 }
 0x707   :  { %2637 = vmatpush.msra.mxu2 %v5581_v6  ;;  %2657 = vmatpush.msra.mxu3 %v5584_v17 }
 0x708   :  { %2598 = vmatpush.msra.mxu0 %v5587_v50  ;;  %2618 = vmatpush.msra.mxu1 %v5590_v49 }
 0x709   :  { %2638 = vmatpush.msra.mxu2 %v5593_v38  ;;  %2658 = vmatpush.msra.mxu3 %v5596_v37 }
 0x70a   :  { %2599 = vmatpush.msra.mxu0 %v5599_v15  ;;  %2619 = vmatpush.msra.mxu1 %v5602_v56 }
 0x70b   :  { %2639 = vmatpush.msra.mxu2 %v5605_v34  ;;  %2659 = vmatpush.msra.mxu3 %v5608_v27 }
 0x70c   :  { %2600 = vmatpush.msra.mxu0 %v5611_v41  ;;  %2620 = vmatpush.msra.mxu1 %v5614_v19 }
 0x70d   :  { %2640 = vmatpush.msra.mxu2 %v5617_v0  ;;  %2660 = vmatpush.msra.mxu3 %v5620_v14 }
 0x70e   :  { %2601 = vmatpush.msra.mxu0 %v5623_v22  ;;  %2621 = vmatpush.msra.mxu1 %v5626_v23 }
 0x70f   :  { %2641 = vmatpush.msra.mxu2 %v5629_v36  ;;  %2661 = vmatpush.msra.mxu3 %v5632_v44 }
 0x710   :  { %2602 = vmatpush.msra.mxu0 %v5635_v59  ;;  %2622 = vmatpush.msra.mxu1 %v5638_v45 }
 0x711   :  { %2642 = vmatpush.msra.mxu2 %v5641_v39  ;;  %2662 = vmatpush.msra.mxu3 %v5644_v9 }
 0x712   :  { %2603 = vmatpush.msra.mxu0 %v5647_v13  ;;  %2623 = vmatpush.msra.mxu1 %v5650_v11 }
 0x713   :  { %2643 = vmatpush.msra.mxu2 %v5653_v32  ;;  %2663 = vmatpush.msra.mxu3 %v5656_v12 }
 0x714   :  { %2604 = vmatpush.msra.mxu0 %v5659_v26  ;;  %2624 = vmatpush.msra.mxu1 %v5662_v16 }
 0x715   :  { %2644 = vmatpush.msra.mxu2 %v5665_v31  ;;  %2664 = vmatpush.msra.mxu3 %v5668_v40 }
 0x716   :  { %2605 = vmatpush.msra.mxu0 %v5671_v62  ;;  %2625 = vmatpush.msra.mxu1 %v5674_v28 }
 0x717   :  { %2645 = vmatpush.msra.mxu2 %v5677_v10  ;;  %2665 = vmatpush.msra.mxu3 %v5680_v25 }
 0x718   :  { %2606 = vmatpush.msra.mxu0 %v5683_v35  ;;  %2626 = vmatpush.msra.mxu1 %v5686_v7 }
 0x719   :  { %2646 = vmatpush.msra.mxu2 %v5689_v60  ;;  %2666 = vmatpush.msra.mxu3 %v5692_v42  ;;  %v6662_v60 = vld [vmem:[#allocation50_spill] sm:$0xff] }
 0x71a   :  { %2607 = vmatpush.msra.mxu0 %v5695_v43  ;;  %2627 = vmatpush.msra.mxu1 %v5698_v4 }
 0x71b   :  { %2647 = vmatpush.msra.mxu2 %v5701_v61  ;;  %2667 = vmatpush.msra.mxu3 %v5704_v46 }
 0x71c   :  { %2608 = vmatpush.msra.mxu0 %v5707_v48  ;;  %2628 = vmatpush.msra.mxu1 %v5710_v52  ;;  %v5728_v52 = vld [vmem:[#allocation10 + $0x38] sm:$0xff] }
 0x71d   :  { %2648 = vmatpush.msra.mxu2 %v5713_v53  ;;  %2668 = vmatpush.msra.mxu3 %v5716_v55  ;;  %6655 = vst [vmem:[#allocation41_spill] sm:$0xff] %v5728_v52  ;;  %v5731_v53 = vld [vmem:[#allocation10] sm:$0xff]  ;;  %v5734_v55 = vld [vmem:[#allocation10 + $0x8] sm:$0xff] }
 0x71e   :  { %2609 = vmatpush.msra.mxu0 %v5719_v3  ;;  %2629 = vmatpush.msra.mxu1 %v5722_v58  ;;  %6656 = vst [vmem:[#allocation40_spill] sm:$0xff] %v5731_v53  ;;  %v5737_v3 = vld [vmem:[#allocation10 + $0x10] sm:$0xff]  ;;  %v5740_v58 = vld [vmem:[#allocation10 + $0x18] sm:$0xff] }
 0x71f   :  { %2649 = vmatpush.msra.mxu2 %v5725_v57  ;;  %2669 = vmatpush.msra.mxu3 %v5728_v52  ;;  %6657 = vst [vmem:[#allocation38_spill] sm:$0xff] %v5734_v55  ;;  %v6660_v57 = vld [vmem:[#allocation48_spill] sm:$0xff]  ;;  %v6661_v52 = vld [vmem:[#allocation47_spill] sm:$0xff] }
 0x720   :  { %2610 = vmatpush.msra.mxu0 %v5731_v53  ;;  %2630 = vmatpush.msra.mxu1 %v5734_v55  ;;  %6658 = vst [vmem:[#allocation39_spill] sm:$0xff] %v5737_v3  ;;  %v1808_v48 = vadd.f32 %v6660_v57, %v6626_v47  ;;  %v1849_v46 = vadd.f32 %v6661_v52, %v6628_v2 }
 0x721   :  { %2650 = vmatpush.msra.mxu2 %v5737_v3  ;;  %6659 = vst [vmem:[#allocation43_spill] sm:$0xff] %v5740_v58  ;;  %2670 = vmatpush.msra.mxu3 %v5740_v58  ;;  %v1931_v3 = vadd.f32 %v6662_v60, %v6630_v51 }
 0x77d   :  { %v2306_v61 = vpop.f32.mrf.mxu0  ;;  %v2326_v53 = vpop.f32.mrf.mxu1 }
 0x77e   :  { %v2369_v4 = vadd.f32 %v2306_v61, %v1808_v48  ;;  %v2370_v43 = vadd.f32 %v2326_v53, %v1849_v46 }
 0x780   :  { %v3331_v42 = vmul.f32 -1.442695, %v2369_v4  ;;  %v3332_v55 = vmul.f32 -1.442695, %v2370_v43  ;;  %v6663_v4 = vld [vmem:[#allocation60_spill] sm:$0xff] }
 0x781   :  { %v1890_v43 = vadd.f32 %v6663_v4, %v6632_v5 }
 0x782   :  { %3520 = vpow2.f32 %v3331_v42 }
 0x783   :  { %3522 = vpow2.f32 %v3332_v55 }
 0x784   :  { %v2366_v7 = vpop.f32.mrf.mxu3  ;;  %v2346_v52 = vpop.f32.mrf.mxu2 }
 0x785   :  { %v2372_v35 = vadd.f32 %v2366_v7, %v1931_v3  ;;  %v2371_v48 = vadd.f32 %v2346_v52, %v1890_v43 }
 0x787   :  { %v3333_v58 = vmul.f32 -1.442695, %v2372_v35 }
 0x788   :  { %v3521_v25 = vpop.eup %3520 }
 0x789   :  { %v3523_v10 = vpop.eup %3522  ;;  %v2376_v57 = vadd.f32 1.0, %v3521_v25  ;;  %3524 = vpow2.f32 %v3333_v58 }
 0x78a   :  { %v2395_v47 = vadd.f32 1.0, %v3523_v10 }
 0x78b   :  { %3526 = vrcp.f32 %v2376_v57  ;;  %v2388_v3 = vand.u32 2147483648, %v2376_v57  ;;  %v2386_v58 = vand.u32 2147483647, %v2376_v57  ;;  %vm2382_vm11 = vweird.f32 %v2376_v57 }
 0x78c   :  { %3528 = vrcp.f32 %v2395_v47  ;;  %v2407_v25 = vand.u32 2147483648, %v2395_v47  ;;  %v2405_v2 = vand.u32 2147483647, %v2395_v47  ;;  %vm2401_vm12 = vweird.f32 %v2395_v47 }
 0x78d   :  { %v2389_v52 = vor.u32 1.1754944e-38, %v2388_v3  ;;  %vm2387_vm15 = vcmp.eq.f32.partialorder %v2386_v58, 8.507059e+37 }
 0x78e   :  { %vm2406_vm0 = vcmp.eq.f32.partialorder %v2405_v2, 8.507059e+37 }
 0x78f   :  { %v3525_v61 = vpop.eup %3524 }
 0x790   :  { %v2415_v42 = vadd.f32 1.0, %v3525_v61 }
 0x791   :  { %v3527_v46 = vpop.eup %3526 }
 0x792   :  { %v3529_v60 = vpop.eup %3528  ;;  %v2378_v53 = vmul.f32 %v3527_v46, %v2376_v57  ;;  %3530 = vrcp.f32 %v2415_v42  ;;  %vm2383_vm9 = vweird.f32 %v3527_v46  ;;  %vm2421_vm2 = vweird.f32 %v2415_v42 }
 0x793   :  { %v2397_v7 = vmul.f32 %v3529_v60, %v2395_v47  ;;  %3532 = vtanh.f32 %v2371_v48  ;;  %vm2402_vm10 = vweird.f32 %v3529_v60  ;;  %vm2384_vm13 = vmor %vm2382_vm11, %vm2383_vm9 }
 0x794   :  { %v2379_v35 = vsub.f32 1.0, %v2378_v53  ;;  %vm2403_vm14 = vmor %vm2401_vm12, %vm2402_vm10  ;;  %v2408_v53 = vor.u32 1.1754944e-38, %v2407_v25 }
 0x795   :  { %v2398_v55 = vsub.f32 1.0, %v2397_v7 }
 0x796   :  { %v2380_v10 = vmul.f32 %v3527_v46, %v2379_v35 }
 0x797   :  { %v2399_v51 = vmul.f32 %v3529_v60, %v2398_v55 }
 0x798   :  { %v3531_v28 = vpop.eup %3530  ;;  %v2381_v4 = vadd.f32 %v3527_v46, %v2380_v10 }
 0x799   :  { %v2400_v61 = vadd.f32 %v3529_v60, %v2399_v51  ;;  %v2417_v43 = vmul.f32 %v3531_v28, %v2415_v42  ;;  %v3533_v48 = vpop.eup %3532  ;;  %vm2422_vm1 = vweird.f32 %v3531_v28  ;;  %v2427_v51 = vand.u32 2147483648, %v2415_v42 }
 0x79a   :  { %v2385_v7 = vsel %vm2384_vm13, %v3527_v46, %v2381_v4  ;;  %v2425_v46 = vand.u32 2147483647, %v2415_v42  ;;  %vm2423_vm3 = vmor %vm2421_vm2, %vm2422_vm1  ;;  %v6670_v42 = vld [vmem:[#allocation55_spill] sm:$0xff]  ;;  %v6671_v4 = vld [vmem:[#allocation57_spill] sm:$0xff] }
 0x79b   :  { %v2390_v5 = vsel %vm2387_vm15, %v2389_v52, %v2385_v7  ;;  %v2404_v35 = vsel %vm2403_vm14, %v3529_v60, %v2400_v61  ;;  %v2418_v62 = vsub.f32 1.0, %v2417_v43  ;;  %v2428_v25 = vor.u32 1.1754944e-38, %v2427_v51  ;;  %v6672_v52 = vld [vmem:[#allocation58_spill] sm:$0xff]  ;;  %v6676_v7 = vld [vmem:[#allocation27_spill] sm:$0xff] }
 0x79c   :  { %v2409_v55 = vsel %vm2406_vm0, %v2408_v53, %v2404_v35  ;;  %v2432_v40 = vmul.f32 %v3533_v48, %v2390_v5  ;;  %vm2426_vm4 = vcmp.eq.f32.partialorder %v2425_v46, 8.507059e+37  ;;  %v6664_v5 = vld [vmem:[#allocation23_spill] sm:$0xff]  ;;  %v6673_v61 = vld [vmem:[#allocation30_spill] sm:$0xff]  ;;  %v6675_v53 = vld [vmem:[#allocation28_spill] sm:$0xff] }
 0x79d   :  { %v2431_v31 = vmul.f32 %v2409_v55, %v5548_v54  ;;  %v2419_v10 = vmul.f32 %v3531_v28, %v2418_v62  ;;  %v6665_v54 = vld [vmem:[#allocation59_spill] sm:$0xff]  ;;  %v6668_v62 = vld [vmem:[#allocation56_spill] sm:$0xff]  ;;  %v6674_v43 = vld [vmem:[#allocation62_spill] sm:$0xff] }
 0x79e   :  { %v6677_v48 = vld [vmem:[#allocation33_spill] sm:$0xff]  ;;  %v6679_v55 = vld [vmem:[#allocation32_spill] sm:$0xff]  ;;  %v6682_v51 = vld [vmem:[#allocation34_spill] sm:$0xff] }
 0x79f   :  { %v5752_v57 = vadd.f32 %v2432_v40, %v2431_v31  ;;  %v2420_v47 = vadd.f32 %v3531_v28, %v2419_v10  ;;  %v6666_v31 = vld [vmem:[#allocation53_spill] sm:$0xff]  ;;  %v6667_v40 = vld [vmem:[#allocation54_spill] sm:$0xff]  ;;  %v6680_v10 = vld [vmem:[#allocation31_spill] sm:$0xff] }
 0x7a0   :  { %v6678_v35 = vld [vmem:[#allocation29_spill] sm:$0xff]  ;;  %v6683_v46 = vld [vmem:[#allocation36_spill] sm:$0xff] }
 0x7a1   :  { %3534 = vtanh.f32 %v5752_v57  ;;  %v2424_v3 = vsel %vm2423_vm3, %v3531_v28, %v2420_v47  ;;  %v6669_v28 = vld [vmem:[#allocation26_spill] sm:$0xff]  ;;  %v6681_v47 = vld [vmem:[#allocation37_spill] sm:$0xff] }
 0x7a2   :  { %v2429_v60 = vsel %vm2426_vm4, %v2428_v25, %v2424_v3  ;;  %v6684_v3 = vld [vmem:[#allocation35_spill] sm:$0xff]  ;;  %v6685_v25 = vld [vmem:[#allocation41_spill] sm:$0xff] }
 0x7a7   :  { %v3535_v2 = vpop.eup %3534 }
 0x7a8   :  { %v2435_v58 = vmul.f32 %v3535_v2, %v2429_v60  ;;  %v6686_v2 = vld [vmem:[#allocation40_spill] sm:$0xff]  ;;  %v6687_v60 = vld [vmem:[#allocation38_spill] sm:$0xff] }
 0x7aa   :  { %2437 = vst [vmem:[#allocation11 + $0x10] sm:$0xff] %v2435_v58  ;;  %2458 = vmatmul.f32.vlgmr.msrb.gmra.mxu0 %v2435_v58  ;;  %2478 = vmatmul.f32.vlgmr.msrb.gmra.mxu1 %v2435_v58 }
 0x7ab   :  { %2498 = vmatmul.f32.vlgmr.msrb.gmra.mxu2 %v2435_v58  ;;  %2518 = vmatmul.f32.vlgmr.msrb.gmra.mxu3 %v2435_v58  ;;  %v6688_v58 = vld [vmem:[#allocation39_spill] sm:$0xff] }
 0x7ac   :  { %2748 = vmatpush.msrb.mxu0 %v5551_v30  ;;  %2768 = vmatpush.msrb.mxu1 %v5554_v29 }
 0x7ad   :  { %2788 = vmatpush.msrb.mxu2 %v5557_v1  ;;  %2808 = vmatpush.msrb.mxu3 %v5560_v33 }
 0x7ae   :  { %2749 = vmatpush.msrb.mxu0 %v5563_v18  ;;  %2769 = vmatpush.msrb.mxu1 %v5566_v21 }
 0x7af   :  { %2789 = vmatpush.msrb.mxu2 %v5569_v20  ;;  %2809 = vmatpush.msrb.mxu3 %v5572_v24 }
 0x7b0   :  { %2750 = vmatpush.msrb.mxu0 %v5575_v8  ;;  %2770 = vmatpush.msrb.mxu1 %v5578_v63 }
 0x7b1   :  { %2790 = vmatpush.msrb.mxu2 %v5581_v6  ;;  %2810 = vmatpush.msrb.mxu3 %v5584_v17 }
 0x7b2   :  { %2751 = vmatpush.msrb.mxu0 %v5587_v50  ;;  %2771 = vmatpush.msrb.mxu1 %v5590_v49 }
 0x7b3   :  { %2791 = vmatpush.msrb.mxu2 %v5593_v38  ;;  %2811 = vmatpush.msrb.mxu3 %v5596_v37 }
 0x7b4   :  { %2752 = vmatpush.msrb.mxu0 %v5599_v15  ;;  %2772 = vmatpush.msrb.mxu1 %v5602_v56 }
 0x7b5   :  { %2792 = vmatpush.msrb.mxu2 %v5605_v34  ;;  %2812 = vmatpush.msrb.mxu3 %v5608_v27 }
 0x7b6   :  { %2753 = vmatpush.msrb.mxu0 %v5611_v41  ;;  %2773 = vmatpush.msrb.mxu1 %v5614_v19 }
 0x7b7   :  { %2793 = vmatpush.msrb.mxu2 %v5617_v0  ;;  %2813 = vmatpush.msrb.mxu3 %v5620_v14 }
 0x7b8   :  { %2754 = vmatpush.msrb.mxu0 %v5623_v22  ;;  %2774 = vmatpush.msrb.mxu1 %v5626_v23 }
 0x7b9   :  { %2794 = vmatpush.msrb.mxu2 %v5629_v36  ;;  %2814 = vmatpush.msrb.mxu3 %v5632_v44 }
 0x7ba   :  { %2755 = vmatpush.msrb.mxu0 %v5635_v59  ;;  %2775 = vmatpush.msrb.mxu1 %v5638_v45 }
 0x7bb   :  { %2795 = vmatpush.msrb.mxu2 %v5641_v39  ;;  %2815 = vmatpush.msrb.mxu3 %v5644_v9 }
 0x7bc   :  { %2756 = vmatpush.msrb.mxu0 %v5647_v13  ;;  %2776 = vmatpush.msrb.mxu1 %v5650_v11 }
 0x7bd   :  { %2796 = vmatpush.msrb.mxu2 %v5653_v32  ;;  %2816 = vmatpush.msrb.mxu3 %v5656_v12 }
 0x7be   :  { %2757 = vmatpush.msrb.mxu0 %v5659_v26  ;;  %2777 = vmatpush.msrb.mxu1 %v5662_v16 }
 0x7bf   :  { %2797 = vmatpush.msrb.mxu2 %v6664_v5  ;;  %2817 = vmatpush.msrb.mxu3 %v6665_v54 }
 0x7c0   :  { %2758 = vmatpush.msrb.mxu0 %v6666_v31  ;;  %2778 = vmatpush.msrb.mxu1 %v6667_v40 }
 0x7c1   :  { %2798 = vmatpush.msrb.mxu2 %v6668_v62  ;;  %2818 = vmatpush.msrb.mxu3 %v6669_v28 }
 0x7c2   :  { %2759 = vmatpush.msrb.mxu0 %v6670_v42  ;;  %2779 = vmatpush.msrb.mxu1 %v6671_v4 }
 0x7c3   :  { %2799 = vmatpush.msrb.mxu2 %v6672_v52  ;;  %2819 = vmatpush.msrb.mxu3 %v6673_v61  ;;  %v6695_v52 = vld [vmem:[#allocation71_spill] sm:$0xff] }
 0x7c4   :  { %2760 = vmatpush.msrb.mxu0 %v6674_v43  ;;  %2780 = vmatpush.msrb.mxu1 %v6675_v53 }
 0x7c5   :  { %2800 = vmatpush.msrb.mxu2 %v6676_v7  ;;  %2820 = vmatpush.msrb.mxu3 %v6677_v48  ;;  %v6693_v7 = vld [vmem:[#allocation70_spill] sm:$0xff] }
 0x7c6   :  { %2761 = vmatpush.msrb.mxu0 %v6678_v35  ;;  %2781 = vmatpush.msrb.mxu1 %v6679_v55  ;;  %v6689_v35 = vld [vmem:[#allocation43_spill] sm:$0xff]  ;;  %v6690_v55 = vld [vmem:[#allocation69_spill] sm:$0xff] }
 0x7c7   :  { %2801 = vmatpush.msrb.mxu2 %v6680_v10  ;;  %2821 = vmatpush.msrb.mxu3 %v6681_v47  ;;  %v6691_v10 = vld [vmem:[#allocation52_spill] sm:$0xff]  ;;  %v6692_v47 = vld [vmem:[#allocation73_spill] sm:$0xff] }
 0x7c8   :  { %2762 = vmatpush.msrb.mxu0 %v6682_v51  ;;  %2782 = vmatpush.msrb.mxu1 %v6683_v46  ;;  %v1811_v48 = vadd.f32 %v6691_v10, %v6690_v55  ;;  %v1852_v51 = vadd.f32 %v6693_v7, %v6692_v47 }
 0x7c9   :  { %2802 = vmatpush.msrb.mxu2 %v6684_v3  ;;  %2822 = vmatpush.msrb.mxu3 %v6685_v25 }
 0x7ca   :  { %2763 = vmatpush.msrb.mxu0 %v6686_v2  ;;  %2783 = vmatpush.msrb.mxu1 %v6687_v60  ;;  %v6694_v2 = vld [vmem:[#allocation19_spill] sm:$0xff] }
 0x7cb   :  { %2803 = vmatpush.msrb.mxu2 %v6688_v58  ;;  %2823 = vmatpush.msrb.mxu3 %v6689_v35  ;;  %v1934_v60 = vadd.f32 %v6695_v52, %v6694_v2 }
 0x827   :  { %v2459_v53 = vpop.f32.mrf.mxu0  ;;  %v2479_v46 = vpop.f32.mrf.mxu1 }
 0x828   :  { %v2522_v43 = vadd.f32 %v2459_v53, %v1811_v48  ;;  %v2523_v3 = vadd.f32 %v2479_v46, %v1852_v51  ;;  %v6696_v48 = vld [vmem:[#allocation24_spill] sm:$0xff] }
 0x82a   :  { %v3334_v61 = vmul.f32 -1.442695, %v2522_v43  ;;  %v3335_v25 = vmul.f32 -1.442695, %v2523_v3  ;;  %v6697_v43 = vld [vmem:[#allocation63_spill] sm:$0xff] }
 0x82b   :  { %v1893_v51 = vadd.f32 %v6697_v43, %v6696_v48 }
 0x82c   :  { %3536 = vpow2.f32 %v3334_v61 }
 0x82d   :  { %3538 = vpow2.f32 %v3335_v25 }
 0x82e   :  { %v2519_v58 = vpop.f32.mrf.mxu3  ;;  %v2499_v7 = vpop.f32.mrf.mxu2 }
 0x82f   :  { %v2525_v4 = vadd.f32 %v2519_v58, %v1934_v60  ;;  %v2524_v3 = vadd.f32 %v2499_v7, %v1893_v51 }
 0x831   :  { %v3336_v35 = vmul.f32 -1.442695, %v2525_v4 }
 0x832   :  { %v3537_v42 = vpop.eup %3536 }
 0x833   :  { %v3539_v28 = vpop.eup %3538  ;;  %v2529_v10 = vadd.f32 1.0, %v3537_v42  ;;  %3540 = vpow2.f32 %v3336_v35 }
 0x834   :  { %v2548_v55 = vadd.f32 1.0, %v3539_v28 }
 0x835   :  { %3542 = vrcp.f32 %v2529_v10  ;;  %v2541_v2 = vand.u32 2147483648, %v2529_v10  ;;  %v2539_v35 = vand.u32 2147483647, %v2529_v10  ;;  %vm2535_vm7 = vweird.f32 %v2529_v10 }
 0x836   :  { %3544 = vrcp.f32 %v2548_v55  ;;  %v2560_v42 = vand.u32 2147483648, %v2548_v55  ;;  %v2558_v62 = vand.u32 2147483647, %v2548_v55  ;;  %vm2554_vm8 = vweird.f32 %v2548_v55 }
 0x837   :  { %v2542_v7 = vor.u32 1.1754944e-38, %v2541_v2  ;;  %vm2540_vm11 = vcmp.eq.f32.partialorder %v2539_v35, 8.507059e+37 }
 0x838   :  { %vm2559_vm12 = vcmp.eq.f32.partialorder %v2558_v62, 8.507059e+37 }
 0x839   :  { %v3541_v53 = vpop.eup %3540 }
 0x83a   :  { %v2568_v61 = vadd.f32 1.0, %v3541_v53 }
 0x83b   :  { %v3543_v46 = vpop.eup %3542 }
 0x83c   :  { %v3545_v52 = vpop.eup %3544  ;;  %v2531_v25 = vmul.f32 %v3543_v46, %v2529_v10  ;;  %3546 = vrcp.f32 %v2568_v61  ;;  %vm2536_vm5 = vweird.f32 %v3543_v46  ;;  %vm2574_vm14 = vweird.f32 %v2568_v61 }
 0x83d   :  { %v2550_v60 = vmul.f32 %v3545_v52, %v2548_v55  ;;  %3548 = vtanh.f32 %v2524_v3  ;;  %vm2555_vm6 = vweird.f32 %v3545_v52  ;;  %vm2537_vm9 = vmor %vm2535_vm7, %vm2536_vm5  ;;  %v2578_v2 = vand.u32 2147483647, %v2568_v61 }
 0x83e   :  { %v2532_v4 = vsub.f32 1.0, %v2531_v25  ;;  %vm2556_vm10 = vmor %vm2554_vm8, %vm2555_vm6  ;;  %v2561_v25 = vor.u32 1.1754944e-38, %v2560_v42 }
 0x83f   :  { %v2551_v58 = vsub.f32 1.0, %v2550_v60  ;;  %vm2579_vm0 = vcmp.eq.f32.partialorder %v2578_v2, 8.507059e+37  ;;  %v6717_v2 = vld [vmem:[#allocation36_spill] sm:$0xff] }
 0x840   :  { %v2533_v28 = vmul.f32 %v3543_v46, %v2532_v4 }
 0x841   :  { %v2552_v47 = vmul.f32 %v3545_v52, %v2551_v58 }
 0x842   :  { %v3547_v40 = vpop.eup %3546  ;;  %v2534_v43 = vadd.f32 %v3543_v46, %v2533_v28 }
 0x843   :  { %v2553_v53 = vadd.f32 %v3545_v52, %v2552_v47  ;;  %v2570_v51 = vmul.f32 %v3547_v40, %v2568_v61  ;;  %v3549_v3 = vpop.eup %3548  ;;  %vm2575_vm13 = vweird.f32 %v3547_v40  ;;  %v2580_v47 = vand.u32 2147483648, %v2568_v61  ;;  %v6704_v61 = vld [vmem:[#allocation55_spill] sm:$0xff] }
 0x844   :  { %v2538_v60 = vsel %vm2537_vm9, %v3543_v46, %v2534_v43  ;;  %vm2576_vm15 = vmor %vm2574_vm14, %vm2575_vm13  ;;  %v6705_v43 = vld [vmem:[#allocation57_spill] sm:$0xff] }
 0x845   :  { %v2543_v48 = vsel %vm2540_vm11, %v2542_v7, %v2538_v60  ;;  %v2557_v4 = vsel %vm2556_vm10, %v3545_v52, %v2553_v53  ;;  %v2571_v31 = vsub.f32 1.0, %v2570_v51  ;;  %v2581_v42 = vor.u32 1.1754944e-38, %v2580_v47  ;;  %v6706_v7 = vld [vmem:[#allocation58_spill] sm:$0xff]  ;;  %v6710_v60 = vld [vmem:[#allocation27_spill] sm:$0xff] }
 0x846   :  { %v2562_v58 = vsel %vm2559_vm12, %v2561_v25, %v2557_v4  ;;  %v2585_v54 = vmul.f32 %v3549_v3, %v2543_v48  ;;  %v6703_v48 = vld [vmem:[#allocation26_spill] sm:$0xff]  ;;  %v6709_v25 = vld [vmem:[#allocation28_spill] sm:$0xff]  ;;  %v6711_v3 = vld [vmem:[#allocation33_spill] sm:$0xff] }
 0x847   :  { %v2584_v5 = vmul.f32 %v2562_v58, %v5752_v57  ;;  %v2572_v28 = vmul.f32 %v3547_v40, %v2571_v31  ;;  %v6698_v57 = vld [vmem:[#allocation23_spill] sm:$0xff]  ;;  %v6701_v31 = vld [vmem:[#allocation54_spill] sm:$0xff]  ;;  %v6712_v4 = vld [vmem:[#allocation29_spill] sm:$0xff] }
 0x848   :  { %v6707_v53 = vld [vmem:[#allocation30_spill] sm:$0xff]  ;;  %v6713_v58 = vld [vmem:[#allocation32_spill] sm:$0xff] }
 0x849   :  { %v5828_v10 = vadd.f32 %v2585_v54, %v2584_v5  ;;  %v2573_v55 = vadd.f32 %v3547_v40, %v2572_v28  ;;  %v6699_v5 = vld [vmem:[#allocation59_spill] sm:$0xff]  ;;  %v6700_v54 = vld [vmem:[#allocation53_spill] sm:$0xff]  ;;  %v6708_v51 = vld [vmem:[#allocation62_spill] sm:$0xff] }
 0x84a   :  { %v6714_v28 = vld [vmem:[#allocation31_spill] sm:$0xff]  ;;  %v6716_v47 = vld [vmem:[#allocation34_spill] sm:$0xff] }
 0x84b   :  { %3550 = vtanh.f32 %v5828_v10  ;;  %v2577_v46 = vsel %vm2576_vm15, %v3547_v40, %v2573_v55  ;;  %v6702_v40 = vld [vmem:[#allocation56_spill] sm:$0xff]  ;;  %v6715_v55 = vld [vmem:[#allocation37_spill] sm:$0xff] }
 0x84c   :  { %v2582_v52 = vsel %vm2579_vm0, %v2581_v42, %v2577_v46  ;;  %v6718_v46 = vld [vmem:[#allocation35_spill] sm:$0xff]  ;;  %v6719_v42 = vld [vmem:[#allocation41_spill] sm:$0xff] }
 0x851   :  { %v3551_v62 = vpop.eup %3550 }
 0x852   :  { %v2588_v35 = vmul.f32 %v3551_v62, %v2582_v52  ;;  %v6720_v62 = vld [vmem:[#allocation40_spill] sm:$0xff]  ;;  %v6721_v52 = vld [vmem:[#allocation38_spill] sm:$0xff] }
 0x854   :  { %2590 = vst [vmem:[#allocation11 + $0x18] sm:$0xff] %v2588_v35  ;;  %2611 = vmatmul.f32.vlgmr.msra.gmra.mxu0 %v2588_v35  ;;  %2631 = vmatmul.f32.vlgmr.msra.gmra.mxu1 %v2588_v35 }
 0x855   :  { %2651 = vmatmul.f32.vlgmr.msra.gmra.mxu2 %v2588_v35  ;;  %2671 = vmatmul.f32.vlgmr.msra.gmra.mxu3 %v2588_v35  ;;  %v6722_v35 = vld [vmem:[#allocation39_spill] sm:$0xff] }
 0x856   :  { %2901 = vmatpush.msra.mxu0 %v5551_v30  ;;  %2921 = vmatpush.msra.mxu1 %v5554_v29 }
 0x857   :  { %2941 = vmatpush.msra.mxu2 %v5557_v1  ;;  %2961 = vmatpush.msra.mxu3 %v5560_v33 }
 0x858   :  { %2902 = vmatpush.msra.mxu0 %v5563_v18  ;;  %2922 = vmatpush.msra.mxu1 %v5566_v21 }
 0x859   :  { %2942 = vmatpush.msra.mxu2 %v5569_v20  ;;  %2962 = vmatpush.msra.mxu3 %v5572_v24 }
 0x85a   :  { %2903 = vmatpush.msra.mxu0 %v5575_v8  ;;  %2923 = vmatpush.msra.mxu1 %v5578_v63 }
 0x85b   :  { %2943 = vmatpush.msra.mxu2 %v5581_v6  ;;  %2963 = vmatpush.msra.mxu3 %v5584_v17 }
 0x85c   :  { %2904 = vmatpush.msra.mxu0 %v5587_v50  ;;  %2924 = vmatpush.msra.mxu1 %v5590_v49 }
 0x85d   :  { %2944 = vmatpush.msra.mxu2 %v5593_v38  ;;  %2964 = vmatpush.msra.mxu3 %v5596_v37 }
 0x85e   :  { %2905 = vmatpush.msra.mxu0 %v5599_v15  ;;  %2925 = vmatpush.msra.mxu1 %v5602_v56 }
 0x85f   :  { %2945 = vmatpush.msra.mxu2 %v5605_v34  ;;  %2965 = vmatpush.msra.mxu3 %v5608_v27 }
 0x860   :  { %2906 = vmatpush.msra.mxu0 %v5611_v41  ;;  %2926 = vmatpush.msra.mxu1 %v5614_v19 }
 0x861   :  { %2946 = vmatpush.msra.mxu2 %v5617_v0  ;;  %2966 = vmatpush.msra.mxu3 %v5620_v14 }
 0x862   :  { %2907 = vmatpush.msra.mxu0 %v5623_v22  ;;  %2927 = vmatpush.msra.mxu1 %v5626_v23 }
 0x863   :  { %2947 = vmatpush.msra.mxu2 %v5629_v36  ;;  %2967 = vmatpush.msra.mxu3 %v5632_v44 }
 0x864   :  { %2908 = vmatpush.msra.mxu0 %v5635_v59  ;;  %2928 = vmatpush.msra.mxu1 %v5638_v45 }
 0x865   :  { %2948 = vmatpush.msra.mxu2 %v5641_v39  ;;  %2968 = vmatpush.msra.mxu3 %v5644_v9 }
 0x866   :  { %2909 = vmatpush.msra.mxu0 %v5647_v13  ;;  %2929 = vmatpush.msra.mxu1 %v5650_v11 }
 0x867   :  { %2949 = vmatpush.msra.mxu2 %v5653_v32  ;;  %2969 = vmatpush.msra.mxu3 %v5656_v12 }
 0x868   :  { %2910 = vmatpush.msra.mxu0 %v5659_v26  ;;  %2930 = vmatpush.msra.mxu1 %v5662_v16 }
 0x869   :  { %2950 = vmatpush.msra.mxu2 %v6698_v57  ;;  %2970 = vmatpush.msra.mxu3 %v6699_v5 }
 0x86a   :  { %2911 = vmatpush.msra.mxu0 %v6700_v54  ;;  %2931 = vmatpush.msra.mxu1 %v6701_v31 }
 0x86b   :  { %2951 = vmatpush.msra.mxu2 %v6702_v40  ;;  %2971 = vmatpush.msra.mxu3 %v6703_v48 }
 0x86c   :  { %2912 = vmatpush.msra.mxu0 %v6704_v61  ;;  %2932 = vmatpush.msra.mxu1 %v6705_v43 }
 0x86d   :  { %2952 = vmatpush.msra.mxu2 %v6706_v7  ;;  %2972 = vmatpush.msra.mxu3 %v6707_v53  ;;  %v6729_v7 = vld [vmem:[#allocation76_spill] sm:$0xff] }
 0x86e   :  { %2913 = vmatpush.msra.mxu0 %v6708_v51  ;;  %2933 = vmatpush.msra.mxu1 %v6709_v25 }
 0x86f   :  { %2953 = vmatpush.msra.mxu2 %v6710_v60  ;;  %2973 = vmatpush.msra.mxu3 %v6711_v3  ;;  %v6727_v60 = vld [vmem:[#allocation74_spill] sm:$0xff] }
 0x870   :  { %2914 = vmatpush.msra.mxu0 %v6712_v4  ;;  %2934 = vmatpush.msra.mxu1 %v6713_v58  ;;  %v6723_v4 = vld [vmem:[#allocation43_spill] sm:$0xff]  ;;  %v6724_v58 = vld [vmem:[#allocation69_spill] sm:$0xff] }
 0x871   :  { %2954 = vmatpush.msra.mxu2 %v6714_v28  ;;  %2974 = vmatpush.msra.mxu3 %v6715_v55  ;;  %v6725_v28 = vld [vmem:[#allocation61_spill] sm:$0xff] }
 0x872   :  { %2915 = vmatpush.msra.mxu0 %v6716_v47  ;;  %2935 = vmatpush.msra.mxu1 %v6717_v2  ;;  %v1814_v3 = vadd.f32 %v6725_v28, %v6724_v58  ;;  %v6726_v55 = vld [vmem:[#allocation73_spill] sm:$0xff] }
 0x873   :  { %2955 = vmatpush.msra.mxu2 %v6718_v46  ;;  %2975 = vmatpush.msra.mxu3 %v6719_v42  ;;  %v1855_v47 = vadd.f32 %v6727_v60, %v6726_v55 }
 0x874   :  { %2916 = vmatpush.msra.mxu0 %v6720_v62  ;;  %2936 = vmatpush.msra.mxu1 %v6721_v52  ;;  %v6728_v62 = vld [vmem:[#allocation19_spill] sm:$0xff] }
 0x875   :  { %2956 = vmatpush.msra.mxu2 %v6722_v35  ;;  %2976 = vmatpush.msra.mxu3 %v6723_v4  ;;  %v1937_v52 = vadd.f32 %v6729_v7, %v6728_v62 }
 0x8d1   :  { %v2612_v25 = vpop.f32.mrf.mxu0  ;;  %v2632_v2 = vpop.f32.mrf.mxu1 }
 0x8d2   :  { %v2675_v51 = vadd.f32 %v2612_v25, %v1814_v3  ;;  %v2676_v46 = vadd.f32 %v2632_v2, %v1855_v47  ;;  %v6730_v3 = vld [vmem:[#allocation24_spill] sm:$0xff] }
 0x8d4   :  { %v3337_v53 = vmul.f32 -1.442695, %v2675_v51  ;;  %v3338_v42 = vmul.f32 -1.442695, %v2676_v46  ;;  %v6731_v51 = vld [vmem:[#allocation65_spill] sm:$0xff] }
 0x8d5   :  { %v1896_v47 = vadd.f32 %v6731_v51, %v6730_v3 }
 0x8d6   :  { %3552 = vpow2.f32 %v3337_v53 }
 0x8d7   :  { %3554 = vpow2.f32 %v3338_v42 }
 0x8d8   :  { %v2672_v35 = vpop.f32.mrf.mxu3  ;;  %v2652_v60 = vpop.f32.mrf.mxu2 }
 0x8d9   :  { %v2678_v43 = vadd.f32 %v2672_v35, %v1937_v52  ;;  %v2677_v46 = vadd.f32 %v2652_v60, %v1896_v47 }
 0x8db   :  { %v3339_v4 = vmul.f32 -1.442695, %v2678_v43 }
 0x8dc   :  { %v3553_v61 = vpop.eup %3552 }
 0x8dd   :  { %v3555_v48 = vpop.eup %3554  ;;  %v2682_v28 = vadd.f32 1.0, %v3553_v61  ;;  %3556 = vpow2.f32 %v3339_v4 }
 0x8de   :  { %v2701_v58 = vadd.f32 1.0, %v3555_v48 }
 0x8df   :  { %3558 = vrcp.f32 %v2682_v28  ;;  %v2694_v62 = vand.u32 2147483648, %v2682_v28  ;;  %v2692_v4 = vand.u32 2147483647, %v2682_v28  ;;  %vm2688_vm3 = vweird.f32 %v2682_v28 }
 0x8e0   :  { %3560 = vrcp.f32 %v2701_v58  ;;  %v2713_v61 = vand.u32 2147483648, %v2701_v58  ;;  %v2711_v40 = vand.u32 2147483647, %v2701_v58  ;;  %vm2707_vm4 = vweird.f32 %v2701_v58 }
 0x8e1   :  { %v2695_v60 = vor.u32 1.1754944e-38, %v2694_v62  ;;  %vm2693_vm7 = vcmp.eq.f32.partialorder %v2692_v4, 8.507059e+37 }
 0x8e2   :  { %vm2712_vm8 = vcmp.eq.f32.partialorder %v2711_v40, 8.507059e+37 }
 0x8e3   :  { %v3557_v25 = vpop.eup %3556 }
 0x8e4   :  { %v2721_v53 = vadd.f32 1.0, %v3557_v25 }
 0x8e5   :  { %v3559_v2 = vpop.eup %3558 }
 0x8e6   :  { %v3561_v7 = vpop.eup %3560  ;;  %v2684_v42 = vmul.f32 %v3559_v2, %v2682_v28  ;;  %3562 = vrcp.f32 %v2721_v53  ;;  %vm2689_vm1 = vweird.f32 %v3559_v2  ;;  %vm2727_vm10 = vweird.f32 %v2721_v53 }
 0x8e7   :  { %v2703_v52 = vmul.f32 %v3561_v7, %v2701_v58  ;;  %3564 = vtanh.f32 %v2677_v46  ;;  %vm2708_vm2 = vweird.f32 %v3561_v7  ;;  %vm2690_vm5 = vmor %vm2688_vm3, %vm2689_vm1  ;;  %v2731_v62 = vand.u32 2147483647, %v2721_v53 }
 0x8e8   :  { %v2685_v43 = vsub.f32 1.0, %v2684_v42  ;;  %vm2709_vm6 = vmor %vm2707_vm4, %vm2708_vm2  ;;  %v2714_v42 = vor.u32 1.1754944e-38, %v2713_v61 }
 0x8e9   :  { %v2704_v35 = vsub.f32 1.0, %v2703_v52  ;;  %vm2732_vm12 = vcmp.eq.f32.partialorder %v2731_v62, 8.507059e+37 }
 0x8ea   :  { %v2686_v48 = vmul.f32 %v3559_v2, %v2685_v43 }
 0x8eb   :  { %v2705_v55 = vmul.f32 %v3561_v7, %v2704_v35 }
 0x8ec   :  { %v3563_v31 = vpop.eup %3562  ;;  %v2687_v51 = vadd.f32 %v3559_v2, %v2686_v48 }
 0x8ed   :  { %v2706_v25 = vadd.f32 %v3561_v7, %v2705_v55  ;;  %v2723_v47 = vmul.f32 %v3563_v31, %v2721_v53  ;;  %v3565_v46 = vpop.eup %3564  ;;  %vm2728_vm9 = vweird.f32 %v3563_v31  ;;  %v2733_v55 = vand.u32 2147483648, %v2721_v53 }
 0x8ee   :  { %v2691_v52 = vsel %vm2690_vm5, %v3559_v2, %v2687_v51  ;;  %vm2729_vm11 = vmor %vm2727_vm10, %vm2728_vm9 }
 0x8ef   :  { %v2696_v3 = vsel %vm2693_vm7, %v2695_v60, %v2691_v52  ;;  %v2710_v43 = vsel %vm2709_vm6, %v3561_v7, %v2706_v25  ;;  %v2724_v54 = vsub.f32 1.0, %v2723_v47  ;;  %v2734_v61 = vor.u32 1.1754944e-38, %v2733_v55  ;;  %v6764_v52 = vld [vmem:[#allocation24_spill] sm:$0xff] }
 0x8f0   :  { %v2715_v35 = vsel %vm2712_vm8, %v2714_v42, %v2710_v43  ;;  %v2738_v5 = vmul.f32 %v3565_v46, %v2696_v3  ;;  %v6765_v46 = vld [vmem:[#allocation20_spill] sm:$0xff] }
 0x8f1   :  { %v2737_v57 = vmul.f32 %v2715_v35, %v5828_v10  ;;  %v2725_v48 = vmul.f32 %v3563_v31, %v2724_v54  ;;  %v6762_v10 = vld [vmem:[#allocation19_spill] sm:$0xff]  ;;  %v1899_v43 = vadd.f32 %v6765_v46, %v6764_v52 }
 0x8f3   :  { %v5904_v28 = vadd.f32 %v2738_v5, %v2737_v57  ;;  %v2726_v58 = vadd.f32 %v3563_v31, %v2725_v48  ;;  %v6763_v57 = vld [vmem:[#allocation67_spill] sm:$0xff] }
 0x8f4   :  { %v1940_v5 = vadd.f32 %v6763_v57, %v6762_v10 }
 0x8f5   :  { %3566 = vtanh.f32 %v5904_v28  ;;  %v2730_v2 = vsel %vm2729_vm11, %v3563_v31, %v2726_v58 }
 0x8f6   :  { %v2735_v7 = vsel %vm2732_vm12, %v2734_v61, %v2730_v2 }
 0x8fb   :  { %v3567_v40 = vpop.eup %3566 }
 0x8fc   :  { %v2741_v4 = vmul.f32 %v3567_v40, %v2735_v7 }
 0x8fe   :  { %2743 = vst [vmem:[#allocation11 + $0x20] sm:$0xff] %v2741_v4  ;;  %2764 = vmatmul.f32.vlgmr.msrb.gmra.mxu0 %v2741_v4  ;;  %2784 = vmatmul.f32.vlgmr.msrb.gmra.mxu1 %v2741_v4 }
 0x8ff   :  { %2804 = vmatmul.f32.vlgmr.msrb.gmra.mxu2 %v2741_v4  ;;  %2824 = vmatmul.f32.vlgmr.msrb.gmra.mxu3 %v2741_v4 }
 0x900   :  { %3054 = vmatpush.msrb.mxu0 %v5551_v30  ;;  %3074 = vmatpush.msrb.mxu1 %v5554_v29  ;;  %v6732_v30 = vld [vmem:[#allocation23_spill] sm:$0xff] }
 0x901   :  { %3094 = vmatpush.msrb.mxu2 %v5557_v1  ;;  %3114 = vmatpush.msrb.mxu3 %v5560_v33  ;;  %v6733_v29 = vld [vmem:[#allocation59_spill] sm:$0xff]  ;;  %v6734_v1 = vld [vmem:[#allocation53_spill] sm:$0xff]  ;;  %v6735_v33 = vld [vmem:[#allocation54_spill] sm:$0xff] }
 0x902   :  { %3055 = vmatpush.msrb.mxu0 %v5563_v18  ;;  %3075 = vmatpush.msrb.mxu1 %v5566_v21  ;;  %v6736_v18 = vld [vmem:[#allocation56_spill] sm:$0xff]  ;;  %v6737_v21 = vld [vmem:[#allocation26_spill] sm:$0xff] }
 0x903   :  { %3095 = vmatpush.msrb.mxu2 %v5569_v20  ;;  %3115 = vmatpush.msrb.mxu3 %v5572_v24  ;;  %v6738_v20 = vld [vmem:[#allocation55_spill] sm:$0xff]  ;;  %v6739_v24 = vld [vmem:[#allocation57_spill] sm:$0xff] }
 0x904   :  { %3056 = vmatpush.msrb.mxu0 %v5575_v8  ;;  %3076 = vmatpush.msrb.mxu1 %v5578_v63  ;;  %v6740_v8 = vld [vmem:[#allocation58_spill] sm:$0xff] }
 0x905   :  { %3096 = vmatpush.msrb.mxu2 %v5581_v6  ;;  %3116 = vmatpush.msrb.mxu3 %v5584_v17  ;;  %v6741_v63 = vld [vmem:[#allocation30_spill] sm:$0xff]  ;;  %v6743_v17 = vld [vmem:[#allocation28_spill] sm:$0xff] }
 0x906   :  { %3057 = vmatpush.msrb.mxu0 %v5587_v50  ;;  %3077 = vmatpush.msrb.mxu1 %v5590_v49  ;;  %v6742_v6 = vld [vmem:[#allocation62_spill] sm:$0xff]  ;;  %v6744_v50 = vld [vmem:[#allocation27_spill] sm:$0xff]  ;;  %v6745_v49 = vld [vmem:[#allocation33_spill] sm:$0xff] }
 0x907   :  { %3097 = vmatpush.msrb.mxu2 %v5593_v38  ;;  %3117 = vmatpush.msrb.mxu3 %v5596_v37  ;;  %v6746_v38 = vld [vmem:[#allocation29_spill] sm:$0xff]  ;;  %v6747_v37 = vld [vmem:[#allocation32_spill] sm:$0xff] }
 0x908   :  { %3058 = vmatpush.msrb.mxu0 %v5599_v15  ;;  %3078 = vmatpush.msrb.mxu1 %v5602_v56  ;;  %v6748_v15 = vld [vmem:[#allocation31_spill] sm:$0xff]  ;;  %v6749_v56 = vld [vmem:[#allocation37_spill] sm:$0xff] }
 0x909   :  { %3098 = vmatpush.msrb.mxu2 %v5605_v34  ;;  %3118 = vmatpush.msrb.mxu3 %v5608_v27  ;;  %v6750_v34 = vld [vmem:[#allocation34_spill] sm:$0xff]  ;;  %v6751_v27 = vld [vmem:[#allocation36_spill] sm:$0xff] }
 0x90a   :  { %3059 = vmatpush.msrb.mxu0 %v5611_v41  ;;  %3079 = vmatpush.msrb.mxu1 %v5614_v19  ;;  %v6752_v41 = vld [vmem:[#allocation35_spill] sm:$0xff]  ;;  %v6753_v19 = vld [vmem:[#allocation41_spill] sm:$0xff] }
 0x90b   :  { %3099 = vmatpush.msrb.mxu2 %v5617_v0  ;;  %3119 = vmatpush.msrb.mxu3 %v5620_v14  ;;  %v6754_v0 = vld [vmem:[#allocation40_spill] sm:$0xff]  ;;  %v6755_v14 = vld [vmem:[#allocation38_spill] sm:$0xff] }
 0x90c   :  { %3060 = vmatpush.msrb.mxu0 %v5623_v22  ;;  %3080 = vmatpush.msrb.mxu1 %v5626_v23  ;;  %v6756_v22 = vld [vmem:[#allocation39_spill] sm:$0xff] }
 0x90d   :  { %3100 = vmatpush.msrb.mxu2 %v5629_v36  ;;  %3120 = vmatpush.msrb.mxu3 %v5632_v44  ;;  %v6757_v23 = vld [vmem:[#allocation43_spill] sm:$0xff]  ;;  %v6758_v36 = vld [vmem:[#allocation69_spill] sm:$0xff]  ;;  %v6759_v44 = vld [vmem:[#allocation66_spill] sm:$0xff] }
 0x90e   :  { %3061 = vmatpush.msrb.mxu0 %v5635_v59  ;;  %3081 = vmatpush.msrb.mxu1 %v5638_v45  ;;  %v1817_v59 = vadd.f32 %v6759_v44, %v6758_v36  ;;  %v6760_v45 = vld [vmem:[#allocation73_spill] sm:$0xff] }
 0x90f   :  { %3101 = vmatpush.msrb.mxu2 %v5641_v39  ;;  %3121 = vmatpush.msrb.mxu3 %v5644_v9  ;;  %v6761_v39 = vld [vmem:[#allocation64_spill] sm:$0xff] }
 0x910   :  { %3062 = vmatpush.msrb.mxu0 %v5647_v13  ;;  %3082 = vmatpush.msrb.mxu1 %v5650_v11  ;;  %v1858_v9 = vadd.f32 %v6761_v39, %v6760_v45 }
 0x911   :  { %3102 = vmatpush.msrb.mxu2 %v5653_v32  ;;  %3122 = vmatpush.msrb.mxu3 %v5656_v12 }
 0x912   :  { %3063 = vmatpush.msrb.mxu0 %v5659_v26  ;;  %3083 = vmatpush.msrb.mxu1 %v5662_v16 }
 0x913   :  { %3103 = vmatpush.msrb.mxu2 %v6732_v30  ;;  %3123 = vmatpush.msrb.mxu3 %v6733_v29 }
 0x914   :  { %3064 = vmatpush.msrb.mxu0 %v6734_v1  ;;  %3084 = vmatpush.msrb.mxu1 %v6735_v33 }
 0x915   :  { %3104 = vmatpush.msrb.mxu2 %v6736_v18  ;;  %3124 = vmatpush.msrb.mxu3 %v6737_v21 }
 0x916   :  { %3065 = vmatpush.msrb.mxu0 %v6738_v20  ;;  %3085 = vmatpush.msrb.mxu1 %v6739_v24 }
 0x917   :  { %3105 = vmatpush.msrb.mxu2 %v6740_v8  ;;  %3125 = vmatpush.msrb.mxu3 %v6741_v63 }
 0x918   :  { %3066 = vmatpush.msrb.mxu0 %v6742_v6  ;;  %3086 = vmatpush.msrb.mxu1 %v6743_v17 }
 0x919   :  { %3106 = vmatpush.msrb.mxu2 %v6744_v50  ;;  %3126 = vmatpush.msrb.mxu3 %v6745_v49 }
 0x91a   :  { %3067 = vmatpush.msrb.mxu0 %v6746_v38  ;;  %3087 = vmatpush.msrb.mxu1 %v6747_v37 }
 0x91b   :  { %3107 = vmatpush.msrb.mxu2 %v6748_v15  ;;  %3127 = vmatpush.msrb.mxu3 %v6749_v56 }
 0x91c   :  { %3068 = vmatpush.msrb.mxu0 %v6750_v34  ;;  %3088 = vmatpush.msrb.mxu1 %v6751_v27 }
 0x91d   :  { %3108 = vmatpush.msrb.mxu2 %v6752_v41  ;;  %3128 = vmatpush.msrb.mxu3 %v6753_v19 }
 0x91e   :  { %3069 = vmatpush.msrb.mxu0 %v6754_v0  ;;  %3089 = vmatpush.msrb.mxu1 %v6755_v14 }
 0x91f   :  { %3109 = vmatpush.msrb.mxu2 %v6756_v22  ;;  %3129 = vmatpush.msrb.mxu3 %v6757_v23 }
 0x97b   :  { %v2765_v13 = vpop.f32.mrf.mxu0  ;;  %v2785_v11 = vpop.f32.mrf.mxu1 }
 0x97c   :  { %v2828_v32 = vadd.f32 %v2765_v13, %v1817_v59  ;;  %v2829_v12 = vadd.f32 %v2785_v11, %v1858_v9  ;;  %v6767_v9 = vld [vmem:[#allocation77_spill] sm:$0xff] }
 0x97d   :  { %v1861_v13 = vadd.f32 %v6767_v9, %v6760_v45 }
 0x97e   :  { %v3340_v26 = vmul.f32 -1.442695, %v2828_v32  ;;  %v3341_v16 = vmul.f32 -1.442695, %v2829_v12 }
 0x980   :  { %3568 = vpow2.f32 %v3340_v26 }
 0x981   :  { %3570 = vpow2.f32 %v3341_v16 }
 0x982   :  { %v2825_v54 = vpop.f32.mrf.mxu3  ;;  %v2805_v47 = vpop.f32.mrf.mxu2 }
 0x983   :  { %v2831_v31 = vadd.f32 %v2825_v54, %v1940_v5  ;;  %v2830_v58 = vadd.f32 %v2805_v47, %v1899_v43  ;;  %v6768_v5 = vld [vmem:[#allocation25_spill] sm:$0xff]  ;;  %v6769_v43 = vld [vmem:[#allocation75_spill] sm:$0xff] }
 0x984   :  { %v1943_v54 = vadd.f32 %v6768_v5, %v6762_v10 }
 0x985   :  { %v3342_v3 = vmul.f32 -1.442695, %v2831_v31 }
 0x986   :  { %v3569_v53 = vpop.eup %3568 }
 0x987   :  { %v3571_v51 = vpop.eup %3570  ;;  %v2835_v60 = vadd.f32 1.0, %v3569_v53  ;;  %3572 = vpow2.f32 %v3342_v3 }
 0x988   :  { %v2854_v25 = vadd.f32 1.0, %v3571_v51 }
 0x989   :  { %3574 = vrcp.f32 %v2835_v60  ;;  %v2847_v7 = vand.u32 2147483648, %v2835_v60  ;;  %v2845_v29 = vand.u32 2147483647, %v2835_v60  ;;  %vm2841_vm15 = vweird.f32 %v2835_v60 }
 0x98a   :  { %3576 = vrcp.f32 %v2854_v25  ;;  %v2866_v4 = vand.u32 2147483648, %v2854_v25  ;;  %v2864_v33 = vand.u32 2147483647, %v2854_v25  ;;  %vm2860_vm0 = vweird.f32 %v2854_v25 }
 0x98b   :  { %v2848_v20 = vor.u32 1.1754944e-38, %v2847_v7  ;;  %vm2846_vm3 = vcmp.eq.f32.partialorder %v2845_v29, 8.507059e+37 }
 0x98c   :  { %v2867_v63 = vor.u32 1.1754944e-38, %v2866_v4  ;;  %vm2865_vm4 = vcmp.eq.f32.partialorder %v2864_v33, 8.507059e+37 }
 0x98d   :  { %v3573_v42 = vpop.eup %3572 }
 0x98e   :  { %v2874_v35 = vadd.f32 1.0, %v3573_v42 }
 0x98f   :  { %v3575_v48 = vpop.eup %3574 }
 0x990   :  { %v3577_v55 = vpop.eup %3576  ;;  %v2837_v62 = vmul.f32 %v3575_v48, %v2835_v60  ;;  %3578 = vrcp.f32 %v2874_v35  ;;  %vm2842_vm13 = vweird.f32 %v3575_v48  ;;  %v2886_v19 = vand.u32 2147483648, %v2874_v35 }
 0x991   :  { %v2856_v2 = vmul.f32 %v3577_v55, %v2854_v25  ;;  %3580 = vtanh.f32 %v2830_v58  ;;  %vm2861_vm14 = vweird.f32 %v3577_v55  ;;  %vm2843_vm1 = vmor %vm2841_vm15, %vm2842_vm13  ;;  %vm2880_vm6 = vweird.f32 %v2874_v35 }
 0x992   :  { %v2838_v61 = vsub.f32 1.0, %v2837_v62  ;;  %vm2862_vm2 = vmor %vm2860_vm0, %vm2861_vm14  ;;  %v2884_v0 = vand.u32 2147483647, %v2874_v35  ;;  %v2887_v22 = vor.u32 1.1754944e-38, %v2886_v19 }
 0x993   :  { %v2857_v40 = vsub.f32 1.0, %v2856_v2 }
 0x994   :  { %v2839_v30 = vmul.f32 %v3575_v48, %v2838_v61  ;;  %vm2885_vm8 = vcmp.eq.f32.partialorder %v2884_v0, 8.507059e+37 }
 0x995   :  { %v2858_v1 = vmul.f32 %v3577_v55, %v2857_v40 }
 0x996   :  { %v3579_v18 = vpop.eup %3578  ;;  %v2840_v21 = vadd.f32 %v3575_v48, %v2839_v30 }
 0x997   :  { %v2859_v24 = vadd.f32 %v3577_v55, %v2858_v1  ;;  %v2876_v8 = vmul.f32 %v3579_v18, %v2874_v35  ;;  %v3581_v17 = vpop.eup %3580  ;;  %vm2881_vm5 = vweird.f32 %v3579_v18  ;;  %v1902_v35 = vadd.f32 %v6769_v43, %v6764_v52 }
 0x998   :  { %v2844_v6 = vsel %vm2843_vm1, %v3575_v48, %v2840_v21  ;;  %vm2882_vm7 = vmor %vm2880_vm6, %vm2881_vm5 }
 0x999   :  { %v2849_v50 = vsel %vm2846_vm3, %v2848_v20, %v2844_v6  ;;  %v2863_v49 = vsel %vm2862_vm2, %v3577_v55, %v2859_v24  ;;  %v2877_v38 = vsub.f32 1.0, %v2876_v8 }
 0x99a   :  { %v2868_v37 = vsel %vm2865_vm4, %v2867_v63, %v2863_v49  ;;  %v2891_v15 = vmul.f32 %v3581_v17, %v2849_v50 }
 0x99b   :  { %v2890_v56 = vmul.f32 %v2868_v37, %v5904_v28  ;;  %v2878_v34 = vmul.f32 %v3579_v18, %v2877_v38  ;;  %v6766_v28 = vld [vmem:[#allocation72_spill] sm:$0xff] }
 0x99c   :  { %v1820_v39 = vadd.f32 %v6766_v28, %v6758_v36 }
 0x99d   :  { %v5980_v27 = vadd.f32 %v2891_v15, %v2890_v56  ;;  %v2879_v41 = vadd.f32 %v3579_v18, %v2878_v34 }
 0x99f   :  { %3582 = vtanh.f32 %v5980_v27  ;;  %v2883_v14 = vsel %vm2882_vm7, %v3579_v18, %v2879_v41 }
 0x9a0   :  { %v2888_v44 = vsel %vm2885_vm8, %v2887_v22, %v2883_v14 }
 0x9a5   :  { %v3583_v23 = vpop.eup %3582 }
 0x9a6   :  { %v2894_v59 = vmul.f32 %v3583_v23, %v2888_v44 }
 0x9a8   :  { %2896 = vst [vmem:[#allocation11 + $0x28] sm:$0xff] %v2894_v59  ;;  %2917 = vmatmul.f32.vlgmr.msra.gmra.mxu0 %v2894_v59  ;;  %2937 = vmatmul.f32.vlgmr.msra.gmra.mxu1 %v2894_v59 }
 0x9a9   :  { %2957 = vmatmul.f32.vlgmr.msra.gmra.mxu2 %v2894_v59  ;;  %2977 = vmatmul.f32.vlgmr.msra.gmra.mxu3 %v2894_v59 }
 0xa25   :  { %v2918_v11 = vpop.f32.mrf.mxu0  ;;  %v2938_v32 = vpop.f32.mrf.mxu1 }
 0xa26   :  { %v2981_v12 = vadd.f32 %v2918_v11, %v1820_v39  ;;  %v2982_v26 = vadd.f32 %v2938_v32, %v1861_v13  ;;  %v6771_v13 = vld [vmem:[#allocation68_spill] sm:$0xff] }
 0xa27   :  { %v1864_v11 = vadd.f32 %v6771_v13, %v6760_v45 }
 0xa28   :  { %v3343_v16 = vmul.f32 -1.442695, %v2981_v12  ;;  %v3344_v57 = vmul.f32 -1.442695, %v2982_v26 }
 0xa2a   :  { %3584 = vpow2.f32 %v3343_v16 }
 0xa2b   :  { %3586 = vpow2.f32 %v3344_v57 }
 0xa2c   :  { %v2978_v31 = vpop.f32.mrf.mxu3  ;;  %v2958_v42 = vpop.f32.mrf.mxu2 }
 0xa2d   :  { %v2984_v3 = vadd.f32 %v2978_v31, %v1943_v54  ;;  %v2983_v55 = vadd.f32 %v2958_v42, %v1902_v35  ;;  %v6772_v54 = vld [vmem:[#allocation21_spill] sm:$0xff] }
 0xa2e   :  { %v1946_v31 = vadd.f32 %v6772_v54, %v6762_v10 }
 0xa2f   :  { %v3345_v53 = vmul.f32 -1.442695, %v2984_v3 }
 0xa30   :  { %v3585_v51 = vpop.eup %3584 }
 0xa31   :  { %v3587_v60 = vpop.eup %3586  ;;  %v2988_v25 = vadd.f32 1.0, %v3585_v51  ;;  %3588 = vpow2.f32 %v3345_v53 }
 0xa32   :  { %v3007_v47 = vadd.f32 1.0, %v3587_v60 }
 0xa33   :  { %3590 = vrcp.f32 %v2988_v25  ;;  %v3000_v4 = vand.u32 2147483648, %v2988_v25  ;;  %v2998_v1 = vand.u32 2147483647, %v2988_v25  ;;  %vm2994_vm11 = vweird.f32 %v2988_v25 }
 0xa34   :  { %3592 = vrcp.f32 %v3007_v47  ;;  %v3019_v30 = vand.u32 2147483648, %v3007_v47  ;;  %v3017_v18 = vand.u32 2147483647, %v3007_v47  ;;  %vm3013_vm12 = vweird.f32 %v3007_v47 }
 0xa35   :  { %v3001_v24 = vor.u32 1.1754944e-38, %v3000_v4  ;;  %vm2999_vm15 = vcmp.eq.f32.partialorder %v2998_v1, 8.507059e+37 }
 0xa36   :  { %v3020_v6 = vor.u32 1.1754944e-38, %v3019_v30  ;;  %vm3018_vm0 = vcmp.eq.f32.partialorder %v3017_v18, 8.507059e+37 }
 0xa37   :  { %v3589_v46 = vpop.eup %3588 }
 0xa38   :  { %v3027_v48 = vadd.f32 1.0, %v3589_v46  ;;  %v6773_v46 = vld [vmem:[#allocation22_spill] sm:$0xff] }
 0xa39   :  { %v3591_v58 = vpop.eup %3590  ;;  %v1905_v43 = vadd.f32 %v6773_v46, %v6764_v52 }
 0xa3a   :  { %v3593_v62 = vpop.eup %3592  ;;  %v2990_v2 = vmul.f32 %v3591_v58, %v2988_v25  ;;  %3594 = vrcp.f32 %v3027_v48  ;;  %vm2995_vm9 = vweird.f32 %v3591_v58  ;;  %v3039_v14 = vand.u32 2147483648, %v3027_v48 }
 0xa3b   :  { %v3009_v61 = vmul.f32 %v3593_v62, %v3007_v47  ;;  %3596 = vtanh.f32 %v2983_v55  ;;  %vm3014_vm10 = vweird.f32 %v3593_v62  ;;  %vm2996_vm13 = vmor %vm2994_vm11, %vm2995_vm9  ;;  %vm3033_vm2 = vweird.f32 %v3027_v48 }
 0xa3c   :  { %v2991_v40 = vsub.f32 1.0, %v2990_v2  ;;  %vm3015_vm14 = vmor %vm3013_vm12, %vm3014_vm10  ;;  %v3037_v22 = vand.u32 2147483647, %v3027_v48  ;;  %v3040_v44 = vor.u32 1.1754944e-38, %v3039_v14 }
 0xa3d   :  { %v3010_v7 = vsub.f32 1.0, %v3009_v61 }
 0xa3e   :  { %v2992_v29 = vmul.f32 %v3591_v58, %v2991_v40  ;;  %vm3038_vm4 = vcmp.eq.f32.partialorder %v3037_v22, 8.507059e+37 }
 0xa3f   :  { %v3011_v33 = vmul.f32 %v3593_v62, %v3010_v7 }
 0xa40   :  { %v3595_v21 = vpop.eup %3594  ;;  %v2993_v20 = vadd.f32 %v3591_v58, %v2992_v29 }
 0xa41   :  { %v3012_v8 = vadd.f32 %v3593_v62, %v3011_v33  ;;  %v3029_v63 = vmul.f32 %v3595_v21, %v3027_v48  ;;  %v3597_v50 = vpop.eup %3596  ;;  %vm3034_vm1 = vweird.f32 %v3595_v21 }
 0xa42   :  { %v2997_v17 = vsel %vm2996_vm13, %v3591_v58, %v2993_v20  ;;  %vm3035_vm3 = vmor %vm3033_vm2, %vm3034_vm1 }
 0xa43   :  { %v3002_v49 = vsel %vm2999_vm15, %v3001_v24, %v2997_v17  ;;  %v3016_v38 = vsel %vm3015_vm14, %v3593_v62, %v3012_v8  ;;  %v3030_v37 = vsub.f32 1.0, %v3029_v63 }
 0xa44   :  { %v3021_v15 = vsel %vm3018_vm0, %v3020_v6, %v3016_v38  ;;  %v3044_v56 = vmul.f32 %v3597_v50, %v3002_v49 }
 0xa45   :  { %v3043_v34 = vmul.f32 %v3021_v15, %v5980_v27  ;;  %v3031_v41 = vmul.f32 %v3595_v21, %v3030_v37  ;;  %v6770_v27 = vld [vmem:[#allocation51_spill] sm:$0xff] }
 0xa46   :  { %v1823_v9 = vadd.f32 %v6770_v27, %v6758_v36 }
 0xa47   :  { %v5992_v19 = vadd.f32 %v3044_v56, %v3043_v34  ;;  %v3032_v0 = vadd.f32 %v3595_v21, %v3031_v41 }
 0xa49   :  { %3598 = vtanh.f32 %v5992_v19  ;;  %v3036_v23 = vsel %vm3035_vm3, %v3595_v21, %v3032_v0 }
 0xa4a   :  { %v3041_v28 = vsel %vm3038_vm4, %v3040_v44, %v3036_v23 }
 0xa4f   :  { %v3599_v59 = vpop.eup %3598 }
 0xa50   :  { %v3047_v39 = vmul.f32 %v3599_v59, %v3041_v28 }
 0xa52   :  { %3049 = vst [vmem:[#allocation11 + $0x30] sm:$0xff] %v3047_v39  ;;  %3070 = vmatmul.f32.vlgmr.msrb.gmra.mxu0 %v3047_v39  ;;  %3090 = vmatmul.f32.vlgmr.msrb.gmra.mxu1 %v3047_v39 }
 0xa53   :  { %3110 = vmatmul.f32.vlgmr.msrb.gmra.mxu2 %v3047_v39  ;;  %3130 = vmatmul.f32.vlgmr.msrb.gmra.mxu3 %v3047_v39 }
 0xacf   :  { %v3071_v32 = vpop.f32.mrf.mxu0  ;;  %v3091_v12 = vpop.f32.mrf.mxu1 }
 0xad0   :  { %v3134_v26 = vadd.f32 %v3071_v32, %v1823_v9  ;;  %v3135_v16 = vadd.f32 %v3091_v12, %v1864_v11 }
 0xad2   :  { %v3346_v57 = vmul.f32 -1.442695, %v3134_v26  ;;  %v3347_v5 = vmul.f32 -1.442695, %v3135_v16 }
 0xad4   :  { %3600 = vpow2.f32 %v3346_v57 }
 0xad5   :  { %3602 = vpow2.f32 %v3347_v5 }
 0xad6   :  { %v3131_v3 = vpop.f32.mrf.mxu3  ;;  %v3111_v45 = vpop.f32.mrf.mxu2 }
 0xad7   :  { %v3137_v53 = vadd.f32 %v3131_v3, %v1946_v31  ;;  %v3136_v58 = vadd.f32 %v3111_v45, %v1905_v43 }
 0xad9   :  { %v3348_v51 = vmul.f32 -1.442695, %v3137_v53 }
 0xada   :  { %v3601_v60 = vpop.eup %3600 }
 0xadb   :  { %v3603_v25 = vpop.eup %3602  ;;  %v3141_v36 = vadd.f32 1.0, %v3601_v60  ;;  %3604 = vpow2.f32 %v3348_v51 }
 0xadc   :  { %v3160_v47 = vadd.f32 1.0, %v3603_v25 }
 0xadd   :  { %3606 = vrcp.f32 %v3141_v36  ;;  %v3153_v40 = vand.u32 2147483648, %v3141_v36  ;;  %v3151_v30 = vand.u32 2147483647, %v3141_v36  ;;  %vm3147_vm7 = vweird.f32 %v3141_v36 }
 0xade   :  { %3608 = vrcp.f32 %v3160_v47  ;;  %v3172_v7 = vand.u32 2147483648, %v3160_v47  ;;  %v3170_v1 = vand.u32 2147483647, %v3160_v47  ;;  %vm3166_vm8 = vweird.f32 %v3160_v47 }
 0xadf   :  { %v3154_v18 = vor.u32 1.1754944e-38, %v3153_v40  ;;  %vm3152_vm11 = vcmp.eq.f32.partialorder %v3151_v30, 8.507059e+37 }
 0xae0   :  { %v3173_v24 = vor.u32 1.1754944e-38, %v3172_v7  ;;  %vm3171_vm12 = vcmp.eq.f32.partialorder %v3170_v1, 8.507059e+37 }
 0xae1   :  { %v3605_v42 = vpop.eup %3604 }
 0xae2   :  { %v3180_v35 = vadd.f32 1.0, %v3605_v42 }
 0xae3   :  { %v3607_v48 = vpop.eup %3606 }
 0xae4   :  { %v3609_v10 = vpop.eup %3608  ;;  %v3143_v55 = vmul.f32 %v3607_v48, %v3141_v36  ;;  %3610 = vrcp.f32 %v3180_v35  ;;  %vm3148_vm5 = vweird.f32 %v3607_v48  ;;  %v3192_v41 = vand.u32 2147483648, %v3180_v35 }
 0xae5   :  { %v3162_v62 = vmul.f32 %v3609_v10, %v3160_v47  ;;  %3612 = vtanh.f32 %v3136_v58  ;;  %vm3167_vm6 = vweird.f32 %v3609_v10  ;;  %vm3149_vm9 = vmor %vm3147_vm7, %vm3148_vm5  ;;  %vm3186_vm14 = vweird.f32 %v3180_v35 }
 0xae6   :  { %v3144_v2 = vsub.f32 1.0, %v3143_v55  ;;  %vm3168_vm10 = vmor %vm3166_vm8, %vm3167_vm6  ;;  %v3190_v0 = vand.u32 2147483647, %v3180_v35 }
 0xae7   :  { %v3163_v61 = vsub.f32 1.0, %v3162_v62 }
 0xae8   :  { %v3145_v4 = vmul.f32 %v3607_v48, %v3144_v2  ;;  %vm3191_vm0 = vcmp.eq.f32.partialorder %v3190_v0, 8.507059e+37 }
 0xae9   :  { %v3164_v29 = vmul.f32 %v3609_v10, %v3163_v61 }
 0xaea   :  { %v3611_v33 = vpop.eup %3610  ;;  %v3146_v52 = vadd.f32 %v3607_v48, %v3145_v4 }
 0xaeb   :  { %v3165_v21 = vadd.f32 %v3609_v10, %v3164_v29  ;;  %v3182_v20 = vmul.f32 %v3611_v33, %v3180_v35  ;;  %v3613_v63 = vpop.eup %3612  ;;  %vm3187_vm13 = vweird.f32 %v3611_v33 }
 0xaec   :  { %v3150_v8 = vsel %vm3149_vm9, %v3607_v48, %v3146_v52  ;;  %vm3188_vm15 = vmor %vm3186_vm14, %vm3187_vm13 }
 0xaed   :  { %v3155_v6 = vsel %vm3152_vm11, %v3154_v18, %v3150_v8  ;;  %v3169_v17 = vsel %vm3168_vm10, %v3609_v10, %v3165_v21  ;;  %v3183_v50 = vsub.f32 1.0, %v3182_v20 }
 0xaee   :  { %v3174_v49 = vsel %vm3171_vm12, %v3173_v24, %v3169_v17  ;;  %v3197_v38 = vmul.f32 %v3613_v63, %v3155_v6 }
 0xaef   :  { %v3196_v37 = vmul.f32 %v3174_v49, %v5992_v19  ;;  %v3184_v15 = vmul.f32 %v3611_v33, %v3183_v50  ;;  %v3193_v19 = vor.u32 1.1754944e-38, %v3192_v41 }
 0xaf1   :  { %v3198_v56 = vadd.f32 %v3197_v38, %v3196_v37  ;;  %v3185_v34 = vadd.f32 %v3611_v33, %v3184_v15 }
 0xaf3   :  { %3614 = vtanh.f32 %v3198_v56  ;;  %3206 = vst [vmem:[#allocation14 + $0x8] sm:$0xff] %v3198_v56  ;;  %v3189_v14 = vsel %vm3188_vm15, %v3611_v33, %v3185_v34 }
 0xaf4   :  { %v3194_v23 = vsel %vm3191_vm0, %v3193_v19, %v3189_v14 }
 0xaf9   :  { %v3615_v22 = vpop.eup %3614 }
 0xafa   :  { %v3200_v44 = vmul.f32 %v3615_v22, %v3194_v23 }
 0xafc   :  { %3202 = vst [vmem:[#allocation11 + $0x38] sm:$0xff] %v3200_v44 }
 0xafd   :  { %3204 = vst [vmem:[#allocation12 + $0x8] sm:$0xff] %v3200_v44  ;;  %3219 = dma.vmem_to_hbm [thread:$0]  %s3212_s16, 1024, %s3214_s19, [#allocation7], %s3905_s8, %s3905_s8, %s3906_s7  }
 0xafe   :  { %3232 = dma.vmem_to_hbm [thread:$0]  %s3225_s11, 256, %s3227_s14, [#allocation13], %s3905_s8, %s3905_s8, %s3906_s7  }
 0xaff   :  { %3245 = dma.vmem_to_hbm [thread:$0]  %s3238_s20, 256, %s3240_s23, [#allocation13], %s3905_s8, %s3905_s8, %s3906_s7  }
 0xb00   :  { %3892 = dma.done.wait [#allocation7], 1024  }
 0xb01   :  { %3893 = vsyncadd [#allocation7], 4294966272 }
 0xb02   :  { %3894 = dma.done.wait [#allocation13], 512  }
 0xb03   :  { %3895 = vsyncadd [#allocation13], 4294966784 }
 0xb04   :  { %3258 = vsyncpa [#allocation6], 1 }
 0xb05   :  { %3259 = vsyncpa [#allocation9], 1 }
 0xb06   :  { %3260 = vsyncpa [#allocation7], 1 }
 0xb07   :  { %3261 = vsyncpa [#allocation13], 1 }

</bundles_post_ra>
